<compile_context>
chip_gen: v6e
topology: v6e:2x2x1
jax: 0.10.0
libtpu: 0.0.40
codegen_flags: <defaults>
</compile_context>

<pallas_src>
import functools

import jax
import jax.numpy as jnp
from jax import lax
from jax.experimental import pallas as pl
from jax.experimental.pallas import tpu as pltpu


def _round_up(x, m):
    return ((x + m - 1) // m) * m


# ------------------------- Pallas kernel -------------------------

def _conv_stats_kernel(x_ref, w_ref, y_ref, sum_ref, m2_ref, acc_ref,
                       *, K, Wp, Cin, Wo, Q, count):
    """Fused conv (K*K shifted-tap matmuls over flattened spatial rows) + masked channel stats.

    x_ref   : (Xrows, Cin)  bf16  padded image, pixel-major rows (Xrows >= Qp + (K-1)*(Wp+1))
    w_ref   : (K*K*Cin, Cpad) bf16  weights, rows ordered (di, dj, c), Cout zero-padded to Cpad
    y_ref   : (Qp, Cpad)    bf16  conv output rows (incl. wrap-around junk rows, masked later)
    sum_ref : (1, Cpad)     f32   per-image channel sum over VALID rows
    m2_ref  : (1, Cpad)     f32   per-image channel sum of squared deviations from image mean
    acc_ref : (Qp, Cpad)    f32   VMEM accumulator scratch

    Flattened-row identity: for q = h*Wp + w, conv(h, w) = sum_t X[q + di*Wp + dj] @ W_t.
    Rows with (q % Wp) >= Wo (or q >= Q) wrap across image rows and are junk: they are
    excluded from the statistics here and dropped in the wrapper epilogue.
    """
    Qp, Cpad = acc_ref.shape

    # K*K statically-offset tap matmuls, f32 accumulation in VMEM (bounded vreg pressure).
    for t in range(K * K):
        di, dj = divmod(t, K)
        off = di * Wp + dj
        contrib = jnp.dot(x_ref[off:off + Qp, :],
                          w_ref[t * Cin:(t + 1) * Cin, :],
                          preferred_element_type=jnp.float32)
        if t == 0:
            acc_ref[...] = contrib
        else:
            acc_ref[...] += contrib

    acc = acc_ref[...]
    y_ref[...] = acc.astype(y_ref.dtype)          # bf16 intermediate (review item)

    # Masked per-image statistics (two-pass within the image: sum, then centered M2).
    q = lax.broadcasted_iota(jnp.int32, (Qp, 1), 0)
    valid = ((q % Wp) < Wo) & (q < Q)
    acc_v = jnp.where(valid, acc, 0.0)
    s = jnp.sum(acc_v, axis=0, keepdims=True)                       # (1, Cpad)
    mean_img = s * (1.0 / count)
    dev = jnp.where(valid, acc - mean_img, 0.0)
    m2 = jnp.sum(dev * dev, axis=0, keepdims=True)                  # (1, Cpad)
    sum_ref[...] = s
    m2_ref[...] = m2


# ------------------------- Wrapper -------------------------

def conv_norm_forward(x_nchw, weight_oihw, gamma, beta, prelu_alpha,
                      *, stride=1, eps=1e-5):
    """ConvNorm forward, default config (norm='BATCH', leaky=True, activation=True).

    x_nchw: (N, Cin, H, W) f32; weight_oihw: (Cout, Cin, K, K) f32.
    Returns (N, Cout, Ho, Wo) f32 in NCHW (matching the PyTorch module).
    """
    N, Cin, H, W = x_nchw.shape
    Cout, Cin_w, K, K2 = weight_oihw.shape
    assert Cin_w == Cin and K == K2
    # TODO(synk): stride > 1 needs strided-tap gathers (or mask-and-decimate with a strided
    # stats mask); the module default stride=1 is what is implemented here.
    assert stride == 1, "only stride=1 implemented in the Pallas path"

    pad = (K - 1) // 2
    Hp, Wp = H + 2 * pad, W + 2 * pad
    Ho, Wo = H, W
    Cpad = _round_up(Cout, 128)            # lane-dense output channels
    Kdim = K * K * Cin
    count = Ho * Wo                        # valid output pixels per image
    Qp = _round_up(Ho * Wp, 8)             # flattened output rows per image (incl. junk)
    Q = (Ho - 1) * Wp + Wo                 # last valid flattened output row + 1
    Xrows = Qp + (K - 1) * Wp + (K - 1)    # input rows the last tap of the last output needs

    # ---- XLA-side layout prep: ONE ~1x copy of the input (no im2col materialization) ----
    x = jnp.transpose(x_nchw, (0, 2, 3, 1))                        # NHWC
    x = jnp.pad(x, ((0, 0), (pad, pad), (pad, pad), (0, 0)))       # spatial zero pad
    x = x.reshape(N, Hp * Wp, Cin)                                 # pixel-major rows
    x = jnp.pad(x, ((0, 0), (0, Xrows - Hp * Wp), (0, 0)))
    x = x.astype(jnp.bfloat16)

    # weights (Cout, Cin, K, K) -> rows ordered (di, dj, c), Cout padded to Cpad, bf16
    w2 = jnp.transpose(weight_oihw, (2, 3, 1, 0)).reshape(Kdim, Cout)
    w2 = jnp.pad(w2, ((0, 0), (0, Cpad - Cout))).astype(jnp.bfloat16)

    kernel = functools.partial(_conv_stats_kernel, K=K, Wp=Wp, Cin=Cin,
                               Wo=Wo, Q=Q, count=count)

    flops = 2 * N * Qp * Kdim * Cpad
    bytes_accessed = (x.size * 2 + w2.size * 2 + N * Qp * Cpad * 2 + 2 * N * Cpad * 4)

    y, ssum, sm2 = pl.pallas_call(
        kernel,
        out_shape=(jax.ShapeDtypeStruct((N, Qp, Cpad), jnp.bfloat16),  # bf16 intermediate y
                   jax.ShapeDtypeStruct((N, 1, Cpad), jnp.float32),    # per-image channel sum
                   jax.ShapeDtypeStruct((N, 1, Cpad), jnp.float32)),   # per-image channel M2
        grid_spec=pltpu.PrefetchScalarGridSpec(
            num_scalar_prefetch=0,
            grid=(N,),                                                  # one image per step
            in_specs=[pl.BlockSpec((None, Xrows, Cin), lambda n: (n, 0, 0)),
                      pl.BlockSpec((Kdim, Cpad), lambda n: (0, 0))],
            out_specs=(pl.BlockSpec((None, Qp, Cpad), lambda n: (n, 0, 0)),
                       pl.BlockSpec((None, 1, Cpad), lambda n: (n, 0, 0)),
                       pl.BlockSpec((None, 1, Cpad), lambda n: (n, 0, 0))),
            scratch_shapes=[pltpu.VMEM((Qp, Cpad), jnp.float32)]),
        compiler_params=pltpu.CompilerParams(
            # Stats are per-image partials -> every output block is written exactly once,
            # so the image axis is truly parallel (v7x megacore sharding).
            dimension_semantics=("parallel",),
            # Conservative, valid on v5e/v6e/v7x for these block sizes; derive from the
            # block footprint per generation for large layers (see TODOs above).
            vmem_limit_bytes=32 * 1024 * 1024),
        cost_estimate=pl.CostEstimate(flops=flops, transcendentals=0,
                                      bytes_accessed=bytes_accessed),
    )(x, w2)

    # ---- tiny per-channel scalar math: Chan-combine per-image (sum, M2) partials ----
    # (centered M2 per image avoids the E[y^2] - mean^2 catastrophic-cancellation concern)
    sums = ssum[:, 0, :Cout]                     # (N, Cout)
    m2s = sm2[:, 0, :Cout]                       # (N, Cout)
    mean_n = sums / count
    mean = jnp.mean(mean_n, axis=0)              # (Cout,) batch mean (equal counts per image)
    M = N * count
    var = (jnp.sum(m2s, axis=0) + count * jnp.sum((mean_n - mean) ** 2, axis=0)) / M
    inv_std = lax.rsqrt(var + eps)               # biased variance (PyTorch BN forward)
    g = gamma.astype(jnp.float32).reshape(-1)
    b = beta.astype(jnp.float32).reshape(-1)
    scale = g * inv_std
    shift = b - mean * scale
    # nn.PReLU() default: single shared alpha; a per-channel (Cout,) vector also works.
    alpha = jnp.broadcast_to(jnp.asarray(prelu_alpha, jnp.float32).reshape(-1), (Cout,))

    # ---- epilogue (review option a): BN affine + PReLU + un-pad + NCHW in ONE fused XLA pass ----
    y4 = y[:, :Ho * Wp, :Cout].reshape(N, Ho, Wp, Cout)[:, :, :Wo, :].astype(jnp.float32)
    yn = y4 * scale + shift
    out = jnp.where(yn >= 0.0, yn, alpha * yn)
    return jnp.transpose(out, (0, 3, 1, 2))


# ------------------------- Pure-JAX reference (for sanity) -------------------------

def conv_norm_reference(x_nchw, weight_oihw, gamma, beta, prelu_alpha,
                        *, stride=1, eps=1e-5):
    K = weight_oihw.shape[2]
    pad = (K - 1) // 2
    y = lax.conv_general_dilated(
        x_nchw, weight_oihw, window_strides=(stride, stride),
        padding=[(pad, pad), (pad, pad)],
        dimension_numbers=("NCHW", "OIHW", "NCHW"),
        precision=lax.Precision.HIGHEST)
    # Mirror the kernel's intentional bf16 conv intermediate (review item 3).
    y = y.astype(jnp.bfloat16).astype(jnp.float32)
    mean = jnp.mean(y, axis=(0, 2, 3), keepdims=True)
    var = jnp.mean((y - mean) ** 2, axis=(0, 2, 3), keepdims=True)
    yn = (y - mean) * lax.rsqrt(var + eps)
    yn = yn * gamma.reshape(1, -1, 1, 1) + beta.reshape(1, -1, 1, 1)
    a = jnp.asarray(prelu_alpha, jnp.float32)
    return jnp.where(yn >= 0, yn, a * yn)


# ------------------------- Main -------------------------

if __name__ == "__main__":
    key = jax.random.PRNGKey(0)
    k1, k2, k3, k4 = jax.random.split(key, 4)

    def make_case(kx, kw, N, Cin, H, W, Cout, K):
        x = jax.random.normal(kx, (N, Cin, H, W), dtype=jnp.float32)
        fan_in = Cin * K * K
        w = jax.random.normal(kw, (Cout, Cin, K, K), jnp.float32) * (2.0 / fan_in) ** 0.5
        gamma = jnp.ones((Cout,), jnp.float32)    # BatchNorm2d weight init
        beta = jnp.zeros((Cout,), jnp.float32)    # BatchNorm2d bias init
        alpha = jnp.float32(0.25)                 # nn.PReLU default
        return x, w, gamma, beta, alpha

    fwd = jax.jit(conv_norm_forward)

    # Case 1: module config ConvNorm(in_channels=4, out_channels=8, kernel_size=3), 16x16, batch=2.
    x, w, gamma, beta, alpha = make_case(k1, k2, 2, 4, 16, 16, 8, 3)
    out = jax.block_until_ready(fwd(x, w, gamma, beta, alpha))
    assert out.shape == (2, 8, 16, 16)
    # The kernel uses bf16 conv inputs (f32 accumulation) and a bf16 conv intermediate; the
    # reference uses the same bf16-rounded inputs/intermediate.  Tolerance leaves headroom for
    # 1-ulp bf16 rounding differences on near-tie values (accumulation-order dependent).
    ref = conv_norm_reference(x.astype(jnp.bfloat16).astype(jnp.float32),
                              w.astype(jnp.bfloat16).astype(jnp.float32),
                              gamma, beta, alpha)
    assert jnp.allclose(out, ref, atol=5e-3, rtol=5e-3), "mismatch vs reference (case 1)"

    # Case 2: exercises channel padding (Cout=5 -> 128), odd shapes, batch=3.
    x2, w2_, gamma2, beta2, alpha2 = make_case(k3, k4, 3, 3, 12, 12, 5, 3)
    out2 = jax.block_until_ready(fwd(x2, w2_, gamma2, beta2, alpha2))
    assert out2.shape == (3, 5, 12, 12)
    ref2 = conv_norm_reference(x2.astype(jnp.bfloat16).astype(jnp.float32),
                               w2_.astype(jnp.bfloat16).astype(jnp.float32),
                               gamma2, beta2, alpha2)
    assert jnp.allclose(out2, ref2, atol=5e-3, rtol=5e-3), "mismatch vs reference (case 2)"

    print("KERNEL_OK")
</pallas_src>

<mosaic_0001>
module attributes {stable_mosaic.version = 11 : i64} {
  func.func @_conv_stats_kernel(%arg0: i32, %arg1: memref<1x326x4xbf16, #tpu.memory_space<vmem>>, %arg2: memref<36x128xbf16, #tpu.memory_space<vmem>>, %arg3: memref<1x288x128xbf16, #tpu.memory_space<vmem>>, %arg4: memref<1x1x128xf32, #tpu.memory_space<vmem>>, %arg5: memref<1x1x128xf32, #tpu.memory_space<vmem>>, %arg6: memref<288x128xf32, #tpu.memory_space<vmem>>) attributes {dimension_semantics = [#tpu.dimension_semantics<parallel>], iteration_bounds = array<i64: 2>, scalar_prefetch = 0 : i64, scratch_operands = 1 : i64, tpu.core_type = #tpu.core_type<tc>, window_params = [{transform_indices = @transform_0, window_bounds = array<i64: 1, 326, 4>}, {pipeline_mode = #tpu.pipeline_mode<synchronous>, transform_indices = @transform_1, window_bounds = array<i64: 36, 128>}, {transform_indices = @transform_2, window_bounds = array<i64: 1, 288, 128>}, {transform_indices = @transform_3, window_bounds = array<i64: 1, 1, 128>}, {transform_indices = @transform_4, window_bounds = array<i64: 1, 1, 128>}]} {
    %c0 = arith.constant 0 : index
    %c0_0 = arith.constant 0 : index
    %c0_1 = arith.constant 0 : index
    %0 = vector.load %arg1[%c0, %c0_0, %c0_1] : memref<1x326x4xbf16, #tpu.memory_space<vmem>>, vector<1x288x4xbf16>
    %1 = vector.shape_cast %0 : vector<1x288x4xbf16> to vector<288x4xbf16>
    %c0_2 = arith.constant 0 : index
    %c0_3 = arith.constant 0 : index
    %2 = vector.load %arg2[%c0_2, %c0_3] : memref<36x128xbf16, #tpu.memory_space<vmem>>, vector<4x128xbf16>
    %cst = arith.constant dense<0.000000e+00> : vector<288x128xf32>
    %3 = tpu.matmul %1, %2, %cst {dimension_numbers = #tpu.dot_dimension_numbers<[1], [0], [0], [1], [0, 0, 1, 1], [], []>} : vector<288x4xbf16>, vector<4x128xbf16>, vector<288x128xf32> -> vector<288x128xf32>
    %c0_4 = arith.constant 0 : index
    %c0_5 = arith.constant 0 : index
    %4 = vector.load %arg6[%c0_4, %c0_5] : memref<288x128xf32, #tpu.memory_space<vmem>>, vector<288x128xf32>
    tpu.vector_store %arg6[%c0_4, %c0_5], %3 {strides = array<i32>} : memref<288x128xf32, #tpu.memory_space<vmem>>, vector<288x128xf32>,
    %c0_6 = arith.constant 0 : index
    %c1 = arith.constant 1 : index
    %c0_7 = arith.constant 0 : index
    %5 = vector.load %arg1[%c0_6, %c1, %c0_7] : memref<1x326x4xbf16, #tpu.memory_space<vmem>>, vector<1x288x4xbf16>
    %6 = vector.shape_cast %5 : vector<1x288x4xbf16> to vector<288x4xbf16>
    %c4 = arith.constant 4 : index
    %c0_8 = arith.constant 0 : index
    %7 = vector.load %arg2[%c4, %c0_8] : memref<36x128xbf16, #tpu.memory_space<vmem>>, vector<4x128xbf16>
    %cst_9 = arith.constant dense<0.000000e+00> : vector<288x128xf32>
    %8 = tpu.matmul %6, %7, %cst_9 {dimension_numbers = #tpu.dot_dimension_numbers<[1], [0], [0], [1], [0, 0, 1, 1], [], []>} : vector<288x4xbf16>, vector<4x128xbf16>, vector<288x128xf32> -> vector<288x128xf32>
    %c0_10 = arith.constant 0 : index
    %c0_11 = arith.constant 0 : index
    %9 = vector.load %arg6[%c0_10, %c0_11] : memref<288x128xf32, #tpu.memory_space<vmem>>, vector<288x128xf32>
    %10 = arith.addf %9, %8 : vector<288x128xf32>
    %c0_12 = arith.constant 0 : index
    %c0_13 = arith.constant 0 : index
    %11 = vector.load %arg6[%c0_12, %c0_13] : memref<288x128xf32, #tpu.memory_space<vmem>>, vector<288x128xf32>
    tpu.vector_store %arg6[%c0_12, %c0_13], %10 {strides = array<i32>} : memref<288x128xf32, #tpu.memory_space<vmem>>, vector<288x128xf32>,
    %c0_14 = arith.constant 0 : index
    %c2 = arith.constant 2 : index
    %c0_15 = arith.constant 0 : index
    %12 = vector.load %arg1[%c0_14, %c2, %c0_15] : memref<1x326x4xbf16, #tpu.memory_space<vmem>>, vector<1x288x4xbf16>
    %13 = vector.shape_cast %12 : vector<1x288x4xbf16> to vector<288x4xbf16>
    %c8 = arith.constant 8 : index
    %c0_16 = arith.constant 0 : index
    %14 = vector.load %arg2[%c8, %c0_16] : memref<36x128xbf16, #tpu.memory_space<vmem>>, vector<4x128xbf16>
    %cst_17 = arith.constant dense<0.000000e+00> : vector<288x128xf32>
    %15 = tpu.matmul %13, %14, %cst_17 {dimension_numbers = #tpu.dot_dimension_numbers<[1], [0], [0], [1], [0, 0, 1, 1], [], []>} : vector<288x4xbf16>, vector<4x128xbf16>, vector<288x128xf32> -> vector<288x128xf32>
    %c0_18 = arith.constant 0 : index
    %c0_19 = arith.constant 0 : index
    %16 = vector.load %arg6[%c0_18, %c0_19] : memref<288x128xf32, #tpu.memory_space<vmem>>, vector<288x128xf32>
    %17 = arith.addf %16, %15 : vector<288x128xf32>
    %c0_20 = arith.constant 0 : index
    %c0_21 = arith.constant 0 : index
    %18 = vector.load %arg6[%c0_20, %c0_21] : memref<288x128xf32, #tpu.memory_space<vmem>>, vector<288x128xf32>
    tpu.vector_store %arg6[%c0_20, %c0_21], %17 {strides = array<i32>} : memref<288x128xf32, #tpu.memory_space<vmem>>, vector<288x128xf32>,
    %c0_22 = arith.constant 0 : index
    %c18 = arith.constant 18 : index
    %c0_23 = arith.constant 0 : index
    %19 = vector.load %arg1[%c0_22, %c18, %c0_23] : memref<1x326x4xbf16, #tpu.memory_space<vmem>>, vector<1x288x4xbf16>
    %20 = vector.shape_cast %19 : vector<1x288x4xbf16> to vector<288x4xbf16>
    %c12 = arith.constant 12 : index
    %c0_24 = arith.constant 0 : index
    %21 = vector.load %arg2[%c12, %c0_24] : memref<36x128xbf16, #tpu.memory_space<vmem>>, vector<4x128xbf16>
    %cst_25 = arith.constant dense<0.000000e+00> : vector<288x128xf32>
    %22 = tpu.matmul %20, %21, %cst_25 {dimension_numbers = #tpu.dot_dimension_numbers<[1], [0], [0], [1], [0, 0, 1, 1], [], []>} : vector<288x4xbf16>, vector<4x128xbf16>, vector<288x128xf32> -> vector<288x128xf32>
    %c0_26 = arith.constant 0 : index
    %c0_27 = arith.constant 0 : index
    %23 = vector.load %arg6[%c0_26, %c0_27] : memref<288x128xf32, #tpu.memory_space<vmem>>, vector<288x128xf32>
    %24 = arith.addf %23, %22 : vector<288x128xf32>
    %c0_28 = arith.constant 0 : index
    %c0_29 = arith.constant 0 : index
    %25 = vector.load %arg6[%c0_28, %c0_29] : memref<288x128xf32, #tpu.memory_space<vmem>>, vector<288x128xf32>
    tpu.vector_store %arg6[%c0_28, %c0_29], %24 {strides = array<i32>} : memref<288x128xf32, #tpu.memory_space<vmem>>, vector<288x128xf32>,
    %c0_30 = arith.constant 0 : index
    %c19 = arith.constant 19 : index
    %c0_31 = arith.constant 0 : index
    %26 = vector.load %arg1[%c0_30, %c19, %c0_31] : memref<1x326x4xbf16, #tpu.memory_space<vmem>>, vector<1x288x4xbf16>
    %27 = vector.shape_cast %26 : vector<1x288x4xbf16> to vector<288x4xbf16>
    %c16 = arith.constant 16 : index
    %c0_32 = arith.constant 0 : index
    %28 = vector.load %arg2[%c16, %c0_32] : memref<36x128xbf16, #tpu.memory_space<vmem>>, vector<4x128xbf16>
    %cst_33 = arith.constant dense<0.000000e+00> : vector<288x128xf32>
    %29 = tpu.matmul %27, %28, %cst_33 {dimension_numbers = #tpu.dot_dimension_numbers<[1], [0], [0], [1], [0, 0, 1, 1], [], []>} : vector<288x4xbf16>, vector<4x128xbf16>, vector<288x128xf32> -> vector<288x128xf32>
    %c0_34 = arith.constant 0 : index
    %c0_35 = arith.constant 0 : index
    %30 = vector.load %arg6[%c0_34, %c0_35] : memref<288x128xf32, #tpu.memory_space<vmem>>, vector<288x128xf32>
    %31 = arith.addf %30, %29 : vector<288x128xf32>
    %c0_36 = arith.constant 0 : index
    %c0_37 = arith.constant 0 : index
    %32 = vector.load %arg6[%c0_36, %c0_37] : memref<288x128xf32, #tpu.memory_space<vmem>>, vector<288x128xf32>
    tpu.vector_store %arg6[%c0_36, %c0_37], %31 {strides = array<i32>} : memref<288x128xf32, #tpu.memory_space<vmem>>, vector<288x128xf32>,
    %c0_38 = arith.constant 0 : index
    %c20 = arith.constant 20 : index
    %c0_39 = arith.constant 0 : index
    %33 = vector.load %arg1[%c0_38, %c20, %c0_39] : memref<1x326x4xbf16, #tpu.memory_space<vmem>>, vector<1x288x4xbf16>
    %34 = vector.shape_cast %33 : vector<1x288x4xbf16> to vector<288x4xbf16>
    %c20_40 = arith.constant 20 : index
    %c0_41 = arith.constant 0 : index
    %35 = vector.load %arg2[%c20_40, %c0_41] : memref<36x128xbf16, #tpu.memory_space<vmem>>, vector<4x128xbf16>
    %cst_42 = arith.constant dense<0.000000e+00> : vector<288x128xf32>
    %36 = tpu.matmul %34, %35, %cst_42 {dimension_numbers = #tpu.dot_dimension_numbers<[1], [0], [0], [1], [0, 0, 1, 1], [], []>} : vector<288x4xbf16>, vector<4x128xbf16>, vector<288x128xf32> -> vector<288x128xf32>
    %c0_43 = arith.constant 0 : index
    %c0_44 = arith.constant 0 : index
    %37 = vector.load %arg6[%c0_43, %c0_44] : memref<288x128xf32, #tpu.memory_space<vmem>>, vector<288x128xf32>
    %38 = arith.addf %37, %36 : vector<288x128xf32>
    %c0_45 = arith.constant 0 : index
    %c0_46 = arith.constant 0 : index
    %39 = vector.load %arg6[%c0_45, %c0_46] : memref<288x128xf32, #tpu.memory_space<vmem>>, vector<288x128xf32>
    tpu.vector_store %arg6[%c0_45, %c0_46], %38 {strides = array<i32>} : memref<288x128xf32, #tpu.memory_space<vmem>>, vector<288x128xf32>,
    %c0_47 = arith.constant 0 : index
    %c36 = arith.constant 36 : index
    %c0_48 = arith.constant 0 : index
    %40 = vector.load %arg1[%c0_47, %c36, %c0_48] : memref<1x326x4xbf16, #tpu.memory_space<vmem>>, vector<1x288x4xbf16>
    %41 = vector.shape_cast %40 : vector<1x288x4xbf16> to vector<288x4xbf16>
    %c24 = arith.constant 24 : index
    %c0_49 = arith.constant 0 : index
    %42 = vector.load %arg2[%c24, %c0_49] : memref<36x128xbf16, #tpu.memory_space<vmem>>, vector<4x128xbf16>
    %cst_50 = arith.constant dense<0.000000e+00> : vector<288x128xf32>
    %43 = tpu.matmul %41, %42, %cst_50 {dimension_numbers = #tpu.dot_dimension_numbers<[1], [0], [0], [1], [0, 0, 1, 1], [], []>} : vector<288x4xbf16>, vector<4x128xbf16>, vector<288x128xf32> -> vector<288x128xf32>
    %c0_51 = arith.constant 0 : index
    %c0_52 = arith.constant 0 : index
    %44 = vector.load %arg6[%c0_51, %c0_52] : memref<288x128xf32, #tpu.memory_space<vmem>>, vector<288x128xf32>
    %45 = arith.addf %44, %43 : vector<288x128xf32>
    %c0_53 = arith.constant 0 : index
    %c0_54 = arith.constant 0 : index
    %46 = vector.load %arg6[%c0_53, %c0_54] : memref<288x128xf32, #tpu.memory_space<vmem>>, vector<288x128xf32>
    tpu.vector_store %arg6[%c0_53, %c0_54], %45 {strides = array<i32>} : memref<288x128xf32, #tpu.memory_space<vmem>>, vector<288x128xf32>,
    %c0_55 = arith.constant 0 : index
    %c37 = arith.constant 37 : index
    %c0_56 = arith.constant 0 : index
    %47 = vector.load %arg1[%c0_55, %c37, %c0_56] : memref<1x326x4xbf16, #tpu.memory_space<vmem>>, vector<1x288x4xbf16>
    %48 = vector.shape_cast %47 : vector<1x288x4xbf16> to vector<288x4xbf16>
    %c28 = arith.constant 28 : index
    %c0_57 = arith.constant 0 : index
    %49 = vector.load %arg2[%c28, %c0_57] : memref<36x128xbf16, #tpu.memory_space<vmem>>, vector<4x128xbf16>
    %cst_58 = arith.constant dense<0.000000e+00> : vector<288x128xf32>
    %50 = tpu.matmul %48, %49, %cst_58 {dimension_numbers = #tpu.dot_dimension_numbers<[1], [0], [0], [1], [0, 0, 1, 1], [], []>} : vector<288x4xbf16>, vector<4x128xbf16>, vector<288x128xf32> -> vector<288x128xf32>
    %c0_59 = arith.constant 0 : index
    %c0_60 = arith.constant 0 : index
    %51 = vector.load %arg6[%c0_59, %c0_60] : memref<288x128xf32, #tpu.memory_space<vmem>>, vector<288x128xf32>
    %52 = arith.addf %51, %50 : vector<288x128xf32>
    %c0_61 = arith.constant 0 : index
    %c0_62 = arith.constant 0 : index
    %53 = vector.load %arg6[%c0_61, %c0_62] : memref<288x128xf32, #tpu.memory_space<vmem>>, vector<288x128xf32>
    tpu.vector_store %arg6[%c0_61, %c0_62], %52 {strides = array<i32>} : memref<288x128xf32, #tpu.memory_space<vmem>>, vector<288x128xf32>,
    %c0_63 = arith.constant 0 : index
    %c38 = arith.constant 38 : index
    %c0_64 = arith.constant 0 : index
    %54 = vector.load %arg1[%c0_63, %c38, %c0_64] : memref<1x326x4xbf16, #tpu.memory_space<vmem>>, vector<1x288x4xbf16>
    %55 = vector.shape_cast %54 : vector<1x288x4xbf16> to vector<288x4xbf16>
    %c32 = arith.constant 32 : index
    %c0_65 = arith.constant 0 : index
    %56 = vector.load %arg2[%c32, %c0_65] : memref<36x128xbf16, #tpu.memory_space<vmem>>, vector<4x128xbf16>
    %cst_66 = arith.constant dense<0.000000e+00> : vector<288x128xf32>
    %57 = tpu.matmul %55, %56, %cst_66 {dimension_numbers = #tpu.dot_dimension_numbers<[1], [0], [0], [1], [0, 0, 1, 1], [], []>} : vector<288x4xbf16>, vector<4x128xbf16>, vector<288x128xf32> -> vector<288x128xf32>
    %c0_67 = arith.constant 0 : index
    %c0_68 = arith.constant 0 : index
    %58 = vector.load %arg6[%c0_67, %c0_68] : memref<288x128xf32, #tpu.memory_space<vmem>>, vector<288x128xf32>
    %59 = arith.addf %58, %57 : vector<288x128xf32>
    %c0_69 = arith.constant 0 : index
    %c0_70 = arith.constant 0 : index
    %60 = vector.load %arg6[%c0_69, %c0_70] : memref<288x128xf32, #tpu.memory_space<vmem>>, vector<288x128xf32>
    tpu.vector_store %arg6[%c0_69, %c0_70], %59 {strides = array<i32>} : memref<288x128xf32, #tpu.memory_space<vmem>>, vector<288x128xf32>,
    %c0_71 = arith.constant 0 : index
    %c0_72 = arith.constant 0 : index
    %61 = vector.load %arg6[%c0_71, %c0_72] : memref<288x128xf32, #tpu.memory_space<vmem>>, vector<288x128xf32>
    %62 = arith.truncf %61 : vector<288x128xf32> to vector<288x128xbf16>
    %c0_73 = arith.constant 0 : index
    %c0_74 = arith.constant 0 : index
    %c0_75 = arith.constant 0 : index
    %63 = vector.load %arg3[%c0_73, %c0_74, %c0_75] : memref<1x288x128xbf16, #tpu.memory_space<vmem>>, vector<1x288x128xbf16>
    %64 = vector.shape_cast %63 : vector<1x288x128xbf16> to vector<288x128xbf16>
    %65 = vector.shape_cast %62 : vector<288x128xbf16> to vector<1x288x128xbf16>
    tpu.vector_store %arg3[%c0_73, %c0_74, %c0_75], %65 {strides = array<i32>} : memref<1x288x128xbf16, #tpu.memory_space<vmem>>, vector<1x288x128xbf16>,
    %66 = tpu.iota {dimensions = array<i32: 0>} : vector<288x1xi32>
    %c18_i32 = arith.constant 18 : i32
    %c0_i32 = arith.constant 0 : i32
    %67 = arith.cmpi eq, %c18_i32, %c0_i32 : i32
    %c1_i32 = arith.constant 1 : i32
    %68 = arith.select %67, %c1_i32, %c18_i32 : i32
    %69 = vector.broadcast %68 : i32 to vector<288x1xi32>
    %70 = arith.remsi %66, %69 : vector<288x1xi32>
    %c0_i32_76 = arith.constant 0 : i32
    %71 = vector.broadcast %c0_i32_76 : i32 to vector<288x1xi32>
    %72 = arith.cmpi ne, %70, %71 : vector<288x1xi32>
    %c0_i32_77 = arith.constant 0 : i32
    %73 = vector.broadcast %c0_i32_77 : i32 to vector<288x1xi32>
    %74 = arith.cmpi slt, %70, %73 : vector<288x1xi32>
    %c0_i32_78 = arith.constant 0 : i32
    %75 = arith.cmpi slt, %68, %c0_i32_78 : i32
    %76 = vector.broadcast %75 : i1 to vector<288x1xi1>
    %77 = vector.broadcast %76 : vector<288x1xi1> to vector<288x1xi1>
    %78 = arith.xori %74, %77 : vector<288x1xi1>
    %79 = arith.andi %78, %72 : vector<288x1xi1>
    %80 = vector.broadcast %68 : i32 to vector<288x1xi32>
    %81 = arith.addi %70, %80 : vector<288x1xi32>
    %82 = arith.select %79, %81, %70 : vector<288x1xi1>, vector<288x1xi32>
    %c16_i32 = arith.constant 16 : i32
    %83 = vector.broadcast %c16_i32 : i32 to vector<288x1xi32>
    %84 = arith.cmpi slt, %82, %83 : vector<288x1xi32>
    %c286_i32 = arith.constant 286 : i32
    %85 = vector.broadcast %c286_i32 : i32 to vector<288x1xi32>
    %86 = arith.cmpi slt, %66, %85 : vector<288x1xi32>
    %87 = arith.andi %84, %86 : vector<288x1xi1>
    %cst_79 = arith.constant 0.000000e+00 : f32
    %88 = vector.shape_cast %87 : vector<288x1xi1> to vector<288x1xi1>
    %89 = vector.broadcast %88 : vector<288x1xi1> to vector<288x128xi1>
    %90 = vector.broadcast %cst_79 : f32 to vector<288x128xf32>
    %91 = arith.select %89, %61, %90 : vector<288x128xi1>, vector<288x128xf32>
    %cst_80 = arith.constant dense<0.000000e+00> : vector<128xf32>
    %92 = vector.multi_reduction <add>, %91, %cst_80 [0] : vector<288x128xf32> to vector<128xf32>
    %93 = vector.shape_cast %92 : vector<128xf32> to vector<1x128xf32>
    %cst_81 = arith.constant 3.906250e-03 : f32
    %94 = vector.broadcast %cst_81 : f32 to vector<1x128xf32>
    %95 = arith.mulf %93, %94 : vector<1x128xf32>
    %96 = vector.broadcast %95 : vector<1x128xf32> to vector<288x128xf32>
    %97 = arith.subf %61, %96 : vector<288x128xf32>
    %cst_82 = arith.constant 0.000000e+00 : f32
    %98 = vector.shape_cast %87 : vector<288x1xi1> to vector<288x1xi1>
    %99 = vector.broadcast %98 : vector<288x1xi1> to vector<288x128xi1>
    %100 = vector.broadcast %cst_82 : f32 to vector<288x128xf32>
    %101 = arith.select %99, %97, %100 : vector<288x128xi1>, vector<288x128xf32>
    %102 = arith.mulf %101, %101 : vector<288x128xf32>
    %cst_83 = arith.constant dense<0.000000e+00> : vector<128xf32>
    %103 = vector.multi_reduction <add>, %102, %cst_83 [0] : vector<288x128xf32> to vector<128xf32>
    %104 = vector.shape_cast %103 : vector<128xf32> to vector<1x128xf32>
    %c0_84 = arith.constant 0 : index
    %c0_85 = arith.constant 0 : index
    %c0_86 = arith.constant 0 : index
    %105 = vector.load %arg4[%c0_84, %c0_85, %c0_86] : memref<1x1x128xf32, #tpu.memory_space<vmem>>, vector<1x1x128xf32>
    %106 = vector.shape_cast %105 : vector<1x1x128xf32> to vector<1x128xf32>
    %107 = vector.shape_cast %93 : vector<1x128xf32> to vector<1x1x128xf32>
    tpu.vector_store %arg4[%c0_84, %c0_85, %c0_86], %107 {strides = array<i32>} : memref<1x1x128xf32, #tpu.memory_space<vmem>>, vector<1x1x128xf32>,
    %c0_87 = arith.constant 0 : index
    %c0_88 = arith.constant 0 : index
    %c0_89 = arith.constant 0 : index
    %108 = vector.load %arg5[%c0_87, %c0_88, %c0_89] : memref<1x1x128xf32, #tpu.memory_space<vmem>>, vector<1x1x128xf32>
    %109 = vector.shape_cast %108 : vector<1x1x128xf32> to vector<1x128xf32>
    %110 = vector.shape_cast %104 : vector<1x128xf32> to vector<1x1x128xf32>
    tpu.vector_store %arg5[%c0_87, %c0_88, %c0_89], %110 {strides = array<i32>} : memref<1x1x128xf32, #tpu.memory_space<vmem>>, vector<1x1x128xf32>,
    return
  }
  func.func @transform_0(%arg0: i32) -> (i32, i32, i32) {
    %c0_i32 = arith.constant 0 : i32
    %c0_i32_0 = arith.constant 0 : i32
    %c0_i32_1 = arith.constant 0 : i32
    return %arg0, %c0_i32, %c0_i32_0 : i32, i32, i32
  }
  func.func @transform_1(%arg0: i32) -> (i32, i32) {
    %c0_i32 = arith.constant 0 : i32
    %c0_i32_0 = arith.constant 0 : i32
    %c0_i32_1 = arith.constant 0 : i32
    return %c0_i32, %c0_i32_0 : i32, i32
  }
  func.func @transform_2(%arg0: i32) -> (i32, i32, i32) {
    %c0_i32 = arith.constant 0 : i32
    %c0_i32_0 = arith.constant 0 : i32
    %c0_i32_1 = arith.constant 0 : i32
    return %arg0, %c0_i32, %c0_i32_0 : i32, i32, i32
  }
  func.func @transform_3(%arg0: i32) -> (i32, i32, i32) {
    %c0_i32 = arith.constant 0 : i32
    %c0_i32_0 = arith.constant 0 : i32
    %c0_i32_1 = arith.constant 0 : i32
    return %arg0, %c0_i32, %c0_i32_0 : i32, i32, i32
  }
  func.func @transform_4(%arg0: i32) -> (i32, i32, i32) {
    %c0_i32 = arith.constant 0 : i32
    %c0_i32_0 = arith.constant 0 : i32
    %c0_i32_1 = arith.constant 0 : i32
    return %arg0, %c0_i32, %c0_i32_0 : i32, i32, i32
  }
}

</mosaic_0001>

<bundles_post_ra>
// kernel: conv_norm_forward.1
= control target key start
LH: loop header
LB: loop body
LE: loop exit
PB: predicated region body
PF: predicated region fallthrough
CT: control target
= control target key end

     0   :  { %s7775_s15 = smov 0   ;;  %s10555_s0 = inlined_call_operand.vmem [shape: bf16[2,326,4], index: 0, kind: input, shape index: {}]   ;;  %s10556_s1 = inlined_call_operand.vmem [shape: bf16[36,128], index: 1, kind: input, shape index: {}]   ;;  %s10557_s2 = inlined_call_operand.vmem [shape: bf16[2,288,128], index: 2, kind: output, shape index: {0}]   ;;  %s10558_s3 = inlined_call_operand.vmem [shape: f32[2,1,128], index: 3, kind: output, shape index: {1}]   ;;  %s10559_s4 = inlined_call_operand.vmem [shape: f32[2,1,128], index: 4, kind: output, shape index: {2}]  }
   0x1 LB: > { %s6437_s16 = sadd.s32 4294967295, %s7748_s15   ;;  %p6441_p0 = scmp.ge.s32.totalorder %s7748_s15, 1  ;;  %s7748_s15 = sphi %s7775_s15, %s15_s15  }
   0x2   : > { %p167_p1 = scmp.lt.s32.totalorder %s7748_s15, 3 }
   0x4   : > { %p168_p2 = pnand %p6441_p0, %p167_p1 }
   0x6   : > { %171 = sbr.rel (%p168_p2) target bundleno = 690 (0x2b2), region = 28 }
   0xb   : > { %v252_v0 = vld [vmem:[%s10556_s1] sm:$0x3]  ;;  %vm398_vm0 = vcmask 1041408   ;;  %p199_p3 = scmp.lt.s32.totalorder %s6437_s16, 1  ;;  %v1278_v2 = vld [vmem:[%s10556_s1 + $0x4] sm:$0x3] }
   0xc   : > { %7476 = vmatprep.subr.msk.bf16.mxu0 %vm398_vm0, %v252_v0  ;;  %7477 = vmatprep.subr.msk.bf16.mxu1 %vm398_vm0, %v252_v0  ;;  %v400_v1 = vsel %vm398_vm0, %v252_v0, 0  ;;  %v7572_v3 = vld [vmem:[%s10556_s1] ss:$0 sps:$4 sm:$0xcc]   ;;  %vm343_vm1 = vcmask 31744   ;;  %v1465_v8 = vsel %vm398_vm0, %v1278_v2, 0 }
   0xd   : > { %7133 = vmatpush3.bf16.msra.mxu0 %v400_v1  ;;  %7475 = vmatpush3.bf16.msra.mxu1 %v400_v1  ;;  %s11106_s16 = smov (!%p199_p3, %s6437_s16), 1  ;;  %v898_v4 = vrot.slane %v7572_v3, 2  ;;  %v7808_v5 = vld [vmem:[%s10556_s1 + $0x4] ss:$0 sps:$4 sm:$0xcc]   ;;  %vm1372_vm3 = vcmask 1046528  }
   0xe   : > { %7479 = vmatprep.subr.msk.bf16.mxu0 %vm398_vm0, %v1278_v2  ;;  %s7486_s23 = smul.u32 164, %s11106_s16  ;;  %v1923_v12 = vrot.slane %v7808_v5, 2  ;;  %v7822_v13 = vld [vmem:[%s10556_s1 + $0x8] sm:$0x3]  ;;  %vm746_vm2 = vsmask.f32 7424  ;;  %s211_s21 = scalar_lea.vmem %s10558_s3, %s11106_s16 }
   0xf   : > { %7478 = vmatprep.subr.msk.bf16.mxu1 %vm398_vm0, %v898_v4  ;;  %v954_v10 = vsel %vm398_vm0, %v898_v4, 0  ;;  %v7864_v44 = vld [vmem:[%s10556_s1 + $0x8] ss:$0 sps:$4 sm:$0xcc]   ;;  %vm2397_vm4 = vsmask.f32 6400  ;;  %s214_s24 = scalar_lea.vmem %s10559_s4, %s11106_s16 }
  0x10   : > { %s7802_s26 = scalar_lea.vmem %s10555_s0, %s7486_s23  ;;  %v3082_v56 = vrot.slane %v7864_v44, 2  ;;  %v1979_v61 = vsel %vm398_vm0, %v1923_v12, 0  ;;  %vm3041_vm5 = vcmask 1045504   ;;  %vm4066_vm6 = vsmask.f32 5376  ;;  %s7487_s13 = smul.u32 144, %s11106_s16 }
  0x11   : > { %v7568_v6 = vld [vmem:[%s7802_s26] sm:$0xff]   ;;  %v7569_v7 = vld [vmem:[%s7802_s26 + $0x50] sm:$0xff]   ;;  %v7570_v9 = vld [vmem:[%s7802_s26 + $0x8] sm:$0xff]   ;;  %vm4714_vm7 = vcmask 1044480  }
  0x12   : > { %7134 = vmatprep.mubr.msk.bf16.mxu0 %vm343_vm1, %v7568_v6  ;;  %7154 = vmatprep.mubr.msk.bf16.mxu1 %vm343_vm1, %v7569_v7  ;;  %v7571_v11 = vld [vmem:[%s7802_s26 + $0x58] sm:$0xff]   ;;  %v7573_v14 = vld [vmem:[%s7802_s26 + $0x10] sm:$0xff]   ;;  %v7574_v15 = vld [vmem:[%s7802_s26 + $0x60] sm:$0xff]   ;;  %s9494_s18 = scalar_lea.vmem %s10557_s2, %s7487_s13 }
  0x13   : > { %7135 = vmatmul.mubr.msk.bf16.vlgmr.msra.gmra.mxu0 %vm343_vm1, %v7570_v9  ;;  %7155 = vmatmul.mubr.msk.bf16.vlgmr.msra.gmra.mxu1 %vm343_vm1, %v7571_v11  ;;  %v7575_v16 = vld [vmem:[%s7802_s26 + $0x18] sm:$0xff]   ;;  %v7576_v17 = vld [vmem:[%s7802_s26 + $0x68] sm:$0xff]   ;;  %v7577_v18 = vld [vmem:[%s7802_s26 + $0x20] sm:$0xff]   ;;  %v2623_v11 = vsel %vm398_vm0, %v7822_v13, 0 }
  0x14   : > { %7209 = vmatpush3.bf16.msra.mxu0 %v1465_v8  ;;  %7171 = vmatpush3.bf16.msra.mxu1 %v954_v10  ;;  %v7578_v19 = vld [vmem:[%s7802_s26 + $0x70] sm:$0xff]   ;;  %v7579_v20 = vld [vmem:[%s7802_s26 + $0x28] sm:$0xff]   ;;  %v7580_v21 = vld [vmem:[%s7802_s26 + $0x78] sm:$0xff]  }
  0x15   : > { %7138 = vmatprep.mubr.msk.bf16.mxu0 %vm343_vm1, %v7573_v14  ;;  %7158 = vmatprep.mubr.msk.bf16.mxu1 %vm343_vm1, %v7574_v15  ;;  %v7581_v22 = vld [vmem:[%s7802_s26 + $0x30] sm:$0xff]   ;;  %v7582_v23 = vld [vmem:[%s7802_s26 + $0x80] sm:$0xff]   ;;  %v7587_v25 = vld [vmem:[%s7802_s26 + $0x8] sm:$0xff]  }
  0x16   : > { %7480 = vmatprep.subr.msk.bf16.mxu1 %vm398_vm0, %v1923_v12  ;;  %7481 = vmatprep.subr.msk.bf16.mxu0 %vm398_vm0, %v7822_v13  ;;  %v7586_v24 = vld [vmem:[%s7802_s26] sm:$0xff]   ;;  %v755_v28 = vshll.u32 %v7587_v25, 16  ;;  %v7589_v29 = vld [vmem:[%s7802_s26 + $0x10] sm:$0xff]   ;;  %v7583_v30 = vld [vmem:[%s7802_s26 + $0x38] sm:$0xff]   ;;  %v759_v37 = vshrl.u32 %v7587_v25, 16 }
  0x17   : > { %v748_v26 = vshrl.u32 %v7586_v24, 16  ;;  %v750_v27 = vshll.u32 %v7586_v24, 16  ;;  %v7591_v33 = vld [vmem:[%s7802_s26 + $0x18] sm:$0xff]   ;;  %v7584_v34 = vld [vmem:[%s7802_s26 + $0x88] sm:$0xff]   ;;  %v7585_v36 = vld [vmem:[%s7802_s26 + $0x40] sm:$0xff]   ;;  %v763_v38 = vshll.u32 %v7589_v29, 16 }
  0x18   : > { %v757_v32 = vrot.slane %v755_v28, 1  ;;  %v7593_v39 = vld [vmem:[%s7802_s26 + $0x8] sm:$0xff]   ;;  %v7592_v40 = vld [vmem:[%s7802_s26] sm:$0xfe]   ;;  %v767_v42 = vshrl.u32 %v7589_v29, 16  ;;  %v771_v43 = vshll.u32 %v7591_v33, 16 }
  0x19   : > { %v752_v31 = vrot.slane %v750_v27, 1  ;;  %v7594_v45 = vld [vmem:[%s7802_s26 + $0x20] sm:$0xff]   ;;  %v765_v46 = vrot.slane %v763_v38, 1  ;;  %v1373_v48 = vrot.slane %v7592_v40, 1  ;;  %v1374_v49 = vrot.slane %v7593_v39, 1  ;;  %v7596_v52 = vld [vmem:[%s7802_s26 + $0x28] sm:$0xff]  }
  0x1a   : > { %v761_v47 = vor.u32 %v759_v37, %v757_v32  ;;  %v773_v51 = vrot.slane %v771_v43, 1  ;;  %v7588_v53 = vld [vmem:[%s7802_s26 + $0x48] sm:$0xff]   ;;  %v779_v54 = vshll.u32 %v7594_v45, 16  ;;  %v7595_v55 = vld [vmem:[%s7802_s26 + $0x10] sm:$0xff]   ;;  %v775_v59 = vshrl.u32 %v7591_v33, 16  ;;  %v7597_v60 = vld [vmem:[%s7802_s26 + $0x18] sm:$0xff]  }
  0x1b   : > { %7139 = vmatmul.mubr.msk.bf16.gmra.mxu0 %vm343_vm1, %v7575_v16  ;;  %7159 = vmatmul.mubr.msk.bf16.gmra.mxu1 %vm343_vm1, %v7576_v17  ;;  %v753_v35 = vor.u32 %v752_v31, %v748_v26  ;;  %v769_v50 = vor.u32 %v767_v42, %v765_v46  ;;  %v1375_v58 = vsel %vm1372_vm3, %v1373_v48, %v1374_v49  ;;  %v783_v63 = vshrl.u32 %v7594_v45, 16  ;;  %v7598_v3 = vld [vmem:[%s7802_s26 + $0x30] sm:$0xff]   ;;  %v7600_v8 = vld [vmem:[%s7802_s26 + $0x38] sm:$0xff]   ;;  %v7599_v9 = vld [vmem:[%s7802_s26 + $0x20] sm:$0xff]  }
  0x1c   : > { %7142 = vmatprep.mubr.msk.bf16.mxu0 %vm343_vm1, %v7577_v18  ;;  %7162 = vmatprep.mubr.msk.bf16.mxu1 %vm343_vm1, %v7578_v19  ;;  %v766_v57 = vsel %vm746_vm2, %v761_v47, %v765_v46  ;;  %v787_v0 = vshll.u32 %v7596_v52, 16  ;;  %v781_v1 = vrot.slane %v779_v54, 1  ;;  %v1376_v2 = vrot.slane %v7595_v55, 1  ;;  %v7601_v16 = vld [vmem:[%s7802_s26 + $0x28] sm:$0xff]   ;;  %v7606_v39 = vld [vmem:[%s7802_s26 + $0x50] sm:$0xff]   ;;  %v7608_v48 = vld [vmem:[%s7802_s26 + $0x58] sm:$0xff]  }
  0x1d   : > { %v758_v41 = vsel %vm746_vm2, %v753_v35, %v757_v32  ;;  %v774_v62 = vsel %vm746_vm2, %v769_v50, %v773_v51  ;;  %v777_v4 = vor.u32 %v775_v59, %v773_v51  ;;  %v1378_v5 = vrot.slane %v7597_v60, 1  ;;  %v7900_v17 = vld [vmem:[%s10556_s1 + $0xc] sm:$0x3]  ;;  %v7603_v32 = vld [vmem:[%s7802_s26 + $0x30] sm:$0xff]  }
  0x1e   : > { %v785_v6 = vor.u32 %v783_v63, %v781_v1  ;;  %v789_v7 = vrot.slane %v787_v0, 1  ;;  %v1377_v10 = vsel %vm1372_vm3, %v1374_v49, %v1376_v2  ;;  %v795_v12 = vshll.u32 %v7598_v3, 16  ;;  %v7604_v28 = vld [vmem:[%s7802_s26 + $0x48] sm:$0xff]   ;;  %v7607_v49 = vld [vmem:[%s7802_s26 + $0x40] sm:$0xff]  }
  0x1f   : > { %v782_v14 = vsel %vm746_vm2, %v777_v4, %v781_v1  ;;  %v791_v15 = vshrl.u32 %v7596_v52, 16  ;;  %v1379_v19 = vsel %vm1372_vm3, %v1376_v2, %v1378_v5  ;;  %v1380_v13 = vrot.slane %v7599_v9, 1  ;;  %v7609_v52 = vld [vmem:[%s7802_s26 + $0x48] sm:$0xff]  }
  0x20   : > { %v790_v18 = vsel %vm746_vm2, %v785_v6, %v789_v7  ;;  %v1382_v25 = vrot.slane %v7601_v16, 1  ;;  %v819_v38 = vshll.u32 %v7604_v28, 16  ;;  %v827_v47 = vshll.u32 %v7606_v39, 16  ;;  %v7612_v0 = vld [vmem:[%s7802_s26 + $0x68] sm:$0xff]   ;;  %v7614_v16 = vld [vmem:[%s7802_s26 + $0x70] sm:$0xff]  }
  0x21   : > { %v793_v24 = vor.u32 %v791_v15, %v789_v7  ;;  %v1381_v29 = vsel %vm1372_vm3, %v1378_v5, %v1380_v13  ;;  %v823_v51 = vshrl.u32 %v7604_v28, 16  ;;  %v835_v59 = vshll.u32 %v7608_v48, 16  ;;  %v7617_v28 = vld [vmem:[%s7802_s26 + $0x68] sm:$0xff]  }
  0x22   : > { %v821_v46 = vrot.slane %v819_v38, 1  ;;  %v1388_v60 = vrot.slane %v7607_v49, 1  ;;  %v1390_v63 = vrot.slane %v7609_v52, 1 }
  0x23   : > { %7143 = vmatmul.mubr.msk.bf16.gmra.mxu0 %vm343_vm1, %v7579_v20  ;;  %7163 = vmatmul.mubr.msk.bf16.gmra.mxu1 %vm343_vm1, %v7580_v21  ;;  %v799_v20 = vshrl.u32 %v7598_v3, 16  ;;  %v803_v21 = vshll.u32 %v7600_v8, 16  ;;  %v837_v2 = vrot.slane %v835_v59, 1  ;;  %v7611_v3 = vld [vmem:[%s7802_s26 + $0x50] sm:$0xff]  }
  0x24   : > { %7146 = vmatprep.mubr.msk.bf16.mxu0 %vm343_vm1, %v7581_v22  ;;  %7166 = vmatprep.mubr.msk.bf16.mxu1 %vm343_vm1, %v7582_v23  ;;  %v797_v22 = vrot.slane %v795_v12, 1  ;;  %v7602_v23 = vld [vmem:[%s7802_s26 + $0x40] sm:$0xff]   ;;  %v1391_v7 = vsel %vm1372_vm3, %v1388_v60, %v1390_v63 }
  0x25   : > { %v805_v27 = vrot.slane %v803_v21, 1  ;;  %v811_v31 = vshll.u32 %v7602_v23, 16  ;;  %v815_v35 = vshrl.u32 %v7602_v23, 16  ;;  %v859_v23 = vshll.u32 %v7614_v16, 16 }
  0x26   : > { %v801_v26 = vor.u32 %v799_v20, %v797_v22  ;;  %v798_v33 = vsel %vm746_vm2, %v793_v24, %v797_v22  ;;  %v7615_v24 = vld [vmem:[%s7802_s26 + $0x60] sm:$0xff]  }
  0x27   : > { %v813_v40 = vrot.slane %v811_v31, 1 }
  0x28   : > { %v806_v37 = vsel %vm746_vm2, %v801_v26, %v805_v27 }
  0x29   : > { %v817_v45 = vor.u32 %v815_v35, %v813_v40 }
  0x2b   : > { %7147 = vmatmul.mubr.msk.bf16.gmra.mxu0 %vm343_vm1, %v7583_v30  ;;  %7167 = vmatmul.mubr.msk.bf16.gmra.mxu1 %vm343_vm1, %v7584_v34  ;;  %v807_v30 = vshrl.u32 %v7600_v8, 16  ;;  %v1383_v34 = vsel %vm1372_vm3, %v1380_v13, %v1382_v25  ;;  %v822_v55 = vsel %vm746_vm2, %v817_v45, %v821_v46  ;;  %v839_v8 = vshrl.u32 %v7608_v48, 16  ;;  %v7616_v13 = vld [vmem:[%s7802_s26 + $0x78] sm:$0xff]  }
  0x2c   : > { %7150 = vmatprep.mubr.msk.bf16.mxu0 %vm343_vm1, %v7585_v36  ;;  %7172 = vmatprep.mubr.msk.bf16.mxu1 %vm343_vm1, %v758_v41  ;;  %v7605_v36 = vld [vmem:[%s7802_s26 + $0x38] sm:$0xff]   ;;  %v1384_v41 = vrot.slane %v7603_v32, 1  ;;  %v867_v31 = vshll.u32 %v7616_v13, 16  ;;  %v861_v32 = vrot.slane %v859_v23, 1  ;;  %v7630_v23 = vld [vmem:[%s7802_s26 + $0x20] sm:$0xff]  }
  0x2d   : > { %v809_v42 = vor.u32 %v807_v30, %v805_v27  ;;  %v1386_v43 = vrot.slane %v7605_v36, 1  ;;  %v855_v27 = vshrl.u32 %v7612_v0, 16  ;;  %v863_v30 = vshrl.u32 %v7614_v16, 16 }
  0x2e   : > { %v1385_v50 = vsel %vm1372_vm3, %v1382_v25, %v1384_v41  ;;  %v1398_v36 = vrot.slane %v7617_v28, 1  ;;  %v869_v38 = vrot.slane %v867_v31, 1 }
  0x2f   : > { %v1387_v54 = vsel %vm1372_vm3, %v1384_v41, %v1386_v43  ;;  %v1389_v5 = vsel %vm1372_vm3, %v1386_v43, %v1388_v60  ;;  %v7623_v60 = vld [vmem:[%s7802_s26 + $0x80] sm:$0xff]  }
  0x33   : > { %7151 = vmatmul.mubr.msk.bf16.gmra.mxu0 %vm343_vm1, %v7588_v53  ;;  %7173 = vmatmul.mubr.msk.bf16.vlgmr.msra.gmra.mxu1 %vm343_vm1, %v766_v57  ;;  %v814_v53 = vsel %vm746_vm2, %v809_v42, %v813_v40  ;;  %v829_v57 = vrot.slane %v827_v47, 1  ;;  %v7619_v42 = vld [vmem:[%s7802_s26 + $0x70] sm:$0xff]   ;;  %v7621_v47 = vld [vmem:[%s7802_s26 + $0x78] sm:$0xff]  }
  0x34   : > { %7210 = vmatprep.mubr.msk.bf16.mxu0 %vm343_vm1, %v1375_v58  ;;  %7247 = vmatpush3.bf16.msra.mxu1 %v1979_v61  ;;  %v831_v58 = vshrl.u32 %v7606_v39, 16  ;;  %v7610_v61 = vld [vmem:[%s7802_s26 + $0x60] sm:$0xff]   ;;  %v7620_v39 = vld [vmem:[%s7802_s26 + $0x88] sm:$0xff]  }
  0x35   : > { %7176 = vmatprep.mubr.msk.bf16.mxu1 %vm343_vm1, %v774_v62  ;;  %7482 = vmatprep.subr.msk.bf16.mxu1 %vm398_vm0, %v3082_v56  ;;  %v825_v62 = vor.u32 %v823_v51, %v821_v46  ;;  %v843_v6 = vshll.u32 %v7610_v61, 16  ;;  %v847_v9 = vshrl.u32 %v7610_v61, 16  ;;  %v871_v46 = vshrl.u32 %v7616_v13, 16  ;;  %v7622_v51 = vld [vmem:[%s7802_s26 + $0x90] ss:$0 sps:$4 sm:$0x11]  }
  0x36   : > { %v833_v1 = vor.u32 %v831_v58, %v829_v57  ;;  %v887_v59 = vshrl.u32 %v7620_v39, 16  ;;  %v7624_v61 = vld [vmem:[%s7802_s26 + $0x88] sm:$0xff]  }
  0x37   : > { %v830_v4 = vsel %vm746_vm2, %v825_v62, %v829_v57  ;;  %v845_v15 = vrot.slane %v843_v6, 1  ;;  %v891_v62 = vshll.u32 %v7622_v51, 16  ;;  %v1404_v6 = vrot.slane %v7623_v60, 1 }
  0x38   : > { %v838_v12 = vsel %vm746_vm2, %v833_v1, %v837_v2  ;;  %v7631_v1 = vld [vmem:[%s7802_s26 + $0x8] sm:$0xfe]  }
  0x39   : > { %v849_v20 = vor.u32 %v847_v9, %v845_v15  ;;  %v893_v9 = vrot.slane %v891_v62, 1  ;;  %v7637_v62 = vld [vmem:[%s7802_s26 + $0x38] sm:$0xff]  }
  0x3b   : > { %7211 = vmatmul.mubr.msk.bf16.vlgmr.msra.gmra.mxu0 %vm343_vm1, %v1377_v10  ;;  %7177 = vmatmul.mubr.msk.bf16.gmra.mxu1 %vm343_vm1, %v782_v14  ;;  %v851_v10 = vshll.u32 %v7612_v0, 16  ;;  %v1392_v14 = vrot.slane %v7611_v3, 1 }
  0x3c   : > { %7285 = vmatpush3.bf16.msra.mxu0 %v2623_v11  ;;  %7180 = vmatprep.mubr.msk.bf16.mxu1 %vm343_vm1, %v790_v18  ;;  %v7613_v11 = vld [vmem:[%s7802_s26 + $0x58] sm:$0xff]   ;;  %v841_v18 = vor.u32 %v839_v8, %v837_v2 }
  0x3d   : > { %7214 = vmatprep.mubr.msk.bf16.mxu0 %vm343_vm1, %v1379_v19  ;;  %7483 = vmatprep.subr.msk.bf16.mxu0 %vm398_vm0, %v7900_v17  ;;  %v1394_v19 = vrot.slane %v7613_v11, 1  ;;  %v853_v21 = vrot.slane %v851_v10, 1  ;;  %v1393_v22 = vsel %vm1372_vm3, %v1390_v63, %v1392_v14  ;;  %v7632_v63 = vld [vmem:[%s7802_s26 + $0x10] sm:$0xff]   ;;  %v1406_v10 = vrot.slane %v7624_v61, 1 }
  0x3e   : > { %v846_v25 = vsel %vm746_vm2, %v841_v18, %v845_v15  ;;  %v2399_v11 = vshrl.u32 %v7631_v1, 16  ;;  %v2410_v15 = vshll.u32 %v7632_v63, 16  ;;  %v3648_v61 = vsel %vm398_vm0, %v7900_v17, 0 }
  0x3f   : > { %v1395_v26 = vsel %vm1372_vm3, %v1392_v14, %v1394_v19  ;;  %v857_v35 = vor.u32 %v855_v27, %v853_v21  ;;  %v2407_v14 = vshrl.u32 %v7632_v63, 16  ;;  %v7642_v63 = vld [vmem:[%s7802_s26 + $0x38] sm:$0xff]  }
  0x40   : > { %v2412_v28 = vrot.slane %v2410_v15, 2  ;;  %v2455_v15 = vshll.u32 %v7642_v63, 16 }
  0x41   : > { %v862_v43 = vsel %vm746_vm2, %v857_v35, %v861_v32  ;;  %v2409_v27 = vrot.slane %v2407_v14, 1 }
  0x43   : > { %7215 = vmatmul.mubr.msk.bf16.gmra.mxu0 %vm343_vm1, %v1381_v29  ;;  %7181 = vmatmul.mubr.msk.bf16.gmra.mxu1 %vm343_vm1, %v798_v33  ;;  %v854_v29 = vsel %vm746_vm2, %v849_v20, %v853_v21  ;;  %v1396_v33 = vrot.slane %v7615_v24, 1  ;;  %v7628_v20 = vld [vmem:[%s7802_s26 + $0x18] sm:$0xff]  }
  0x44   : > { %7218 = vmatprep.mubr.msk.bf16.mxu0 %vm343_vm1, %v1383_v34  ;;  %7184 = vmatprep.mubr.msk.bf16.mxu1 %vm343_vm1, %v806_v37  ;;  %v7618_v34 = vld [vmem:[%s7802_s26 + $0x80] sm:$0xff]   ;;  %v865_v37 = vor.u32 %v863_v30, %v861_v32  ;;  %v7634_v24 = vld [vmem:[%s7802_s26 + $0x18] sm:$0xff]  }
  0x45   : > { %v1397_v40 = vsel %vm1372_vm3, %v1394_v19, %v1396_v33  ;;  %v875_v41 = vshll.u32 %v7618_v34, 16  ;;  %v1399_v45 = vsel %vm1372_vm3, %v1396_v33, %v1398_v36  ;;  %v879_v49 = vshrl.u32 %v7618_v34, 16  ;;  %v7627_v19 = vld [vmem:[%s7802_s26 + $0x90] ss:$0 sps:$4 sm:$0x11]   ;;  %v7636_v30 = vld [vmem:[%s7802_s26 + $0x20] sm:$0xff]  }
  0x46   : > { %v870_v48 = vsel %vm746_vm2, %v865_v37, %v869_v38  ;;  %v1408_v31 = vrot.slane %v7627_v19, 1  ;;  %v2416_v32 = vshrl.u32 %v7634_v24, 16  ;;  %v2419_v33 = vshll.u32 %v7634_v24, 16 }
  0x47   : > { %v877_v52 = vrot.slane %v875_v41, 1  ;;  %v1886_v34 = vrot.slane %v7628_v20, 1  ;;  %v1888_v37 = vrot.slane %v7630_v23, 1  ;;  %v7633_v41 = vld [vmem:[%s7802_s26 + $0x28] sm:$0xff]   ;;  %v8036_v20 = vld [vmem:[%s10556_s1 + $0x10] sm:$0x3] }
  0x48   : > { %v7646_v23 = vld [vmem:[%s7802_s26 + $0x48] sm:$0xff]  }
  0x49   : > { %v881_v57 = vor.u32 %v879_v49, %v877_v52  ;;  %v1889_v51 = vsel %vm1372_vm3, %v1886_v34, %v1888_v37 }
  0x4b   : > { %7219 = vmatmul.mubr.msk.bf16.gmra.mxu0 %vm343_vm1, %v1385_v50  ;;  %7185 = vmatmul.mubr.msk.bf16.gmra.mxu1 %vm343_vm1, %v814_v53  ;;  %v883_v50 = vshll.u32 %v7620_v39, 16  ;;  %v1400_v53 = vrot.slane %v7619_v42, 1  ;;  %v2428_v39 = vshll.u32 %v7636_v30, 16  ;;  %v2418_v42 = vrot.slane %v2416_v32, 1  ;;  %v7643_v32 = vld [vmem:[%s7802_s26 + $0x50] sm:$0xff]  }
  0x4c   : > { %7222 = vmatprep.mubr.msk.bf16.mxu0 %vm343_vm1, %v1387_v54  ;;  %7188 = vmatprep.mubr.msk.bf16.mxu1 %vm343_vm1, %v822_v55  ;;  %v873_v54 = vor.u32 %v871_v46, %v869_v38  ;;  %v1402_v55 = vrot.slane %v7621_v47, 1  ;;  %v2425_v38 = vshrl.u32 %v7636_v30, 16  ;;  %v7638_v46 = vld [vmem:[%s7802_s26 + $0x28] sm:$0xff]  }
  0x4d   : > { %v885_v58 = vrot.slane %v883_v50, 1  ;;  %v1401_v0 = vsel %vm1372_vm3, %v1398_v36, %v1400_v53  ;;  %v2413_v36 = vor.u32 %v2412_v28, %v2409_v27  ;;  %v7640_v50 = vld [vmem:[%s7802_s26 + $0x30] sm:$0xff]   ;;  %v2434_v44 = vshrl.u32 %v7638_v46, 16 }
  0x4e   : > { %v878_v2 = vsel %vm746_vm2, %v873_v54, %v877_v52  ;;  %v1403_v3 = vsel %vm1372_vm3, %v1400_v53, %v1402_v55  ;;  %v1405_v13 = vsel %vm1372_vm3, %v1402_v55, %v1404_v6  ;;  %v2427_v52 = vrot.slane %v2425_v38, 1 }
  0x4f   : > { %v889_v8 = vor.u32 %v887_v59, %v885_v58  ;;  %v2430_v53 = vrot.slane %v2428_v39, 2  ;;  %v2437_v55 = vshll.u32 %v7638_v46, 16 }
  0x51   : > { %v894_v21 = vsel %vm746_vm2, %v889_v8, %v893_v9  ;;  %v2431_v60 = vor.u32 %v2430_v53, %v2427_v52  ;;  %v8024_v8 = vld [vmem:[%s10556_s1 + $0xc] ss:$0 sps:$4 sm:$0xcc]   ;;  %v7647_v53 = vld [vmem:[%s7802_s26 + $0x60] sm:$0xff]  }
  0x53   : > { %7223 = vmatmul.mubr.msk.bf16.gmra.mxu0 %vm343_vm1, %v1389_v5  ;;  %7189 = vmatmul.mubr.msk.bf16.gmra.mxu1 %vm343_vm1, %v830_v4  ;;  %v7625_v4 = vld [vmem:[%s7802_s26 + $0x8] sm:$0xfe]   ;;  %v886_v5 = vsel %vm746_vm2, %v881_v57, %v885_v58  ;;  %v2443_v57 = vshrl.u32 %v7640_v50, 16  ;;  %v2446_v58 = vshll.u32 %v7640_v50, 16 }
  0x54   : > { %7226 = vmatprep.mubr.msk.bf16.mxu0 %vm343_vm1, %v1391_v7  ;;  %7192 = vmatprep.mubr.msk.bf16.mxu1 %vm343_vm1, %v838_v12  ;;  %v7626_v7 = vld [vmem:[%s7802_s26 + $0x10] sm:$0xff]   ;;  %v2402_v12 = vshll.u32 %v7631_v1, 16  ;;  %v1883_v16 = vrot.slane %v7625_v4, 1  ;;  %v2436_v1 = vrot.slane %v2434_v44, 1 }
  0x55   : > { %v1884_v18 = vrot.slane %v7626_v7, 1  ;;  %v7644_v7 = vld [vmem:[%s7802_s26 + $0x40] sm:$0xff]  }
  0x56   : > { %v2464_v19 = vshll.u32 %v7644_v7, 16 }
  0x57   : > { %v1887_v47 = vsel %vm1372_vm3, %v1884_v18, %v1886_v34 }
  0x58   : > { %v2466_v30 = vrot.slane %v2464_v19, 2 }
  0x5b   : > { %7227 = vmatmul.mubr.msk.bf16.gmra.mxu0 %vm343_vm1, %v1393_v22  ;;  %7193 = vmatmul.mubr.msk.bf16.gmra.mxu1 %vm343_vm1, %v846_v25  ;;  %v1407_v22 = vsel %vm1372_vm3, %v1404_v6, %v1406_v10  ;;  %v2401_v25 = vrot.slane %v2399_v11, 1  ;;  %v2448_v6 = vrot.slane %v2446_v58, 2  ;;  %v4240_v11 = vrot.slane %v8024_v8, 2 }
  0x5c   : > { %7230 = vmatprep.mubr.msk.bf16.mxu0 %vm343_vm1, %v1395_v26  ;;  %7196 = vmatprep.mubr.msk.bf16.mxu1 %vm343_vm1, %v854_v29  ;;  %v2404_v26 = vrot.slane %v2402_v12, 2  ;;  %v1885_v29 = vsel %vm1372_vm3, %v1883_v16, %v1884_v18  ;;  %v1894_v12 = vrot.slane %v7637_v62, 1  ;;  %v2461_v18 = vshrl.u32 %v7644_v7, 16 }
  0x5e   : > { %v2405_v35 = vor.u32 %v2404_v26, %v2401_v25  ;;  %v2457_v25 = vrot.slane %v2455_v15, 2  ;;  %v7648_v26 = vld [vmem:[%s7802_s26 + $0x50] sm:$0xff]  }
  0x5f   : > { %v2482_v39 = vshll.u32 %v7648_v26, 16 }
  0x60   : > { %v2414_v49 = vsel %vm2397_vm4, %v2405_v35, %v2413_v36  ;;  %v2473_v35 = vshll.u32 %v7646_v23, 16 }
  0x61   : > { %v2484_v50 = vrot.slane %v2482_v39, 2 }
  0x62   : > { %v2475_v46 = vrot.slane %v2473_v35, 2 }
  0x63   : > { %7231 = vmatmul.mubr.msk.bf16.gmra.mxu0 %vm343_vm1, %v1397_v40  ;;  %7197 = vmatmul.mubr.msk.bf16.gmra.mxu1 %vm343_vm1, %v862_v43  ;;  %v1409_v40 = vsel %vm1372_vm3, %v1406_v10, %v1408_v31  ;;  %v2421_v43 = vrot.slane %v2419_v33, 2  ;;  %v2452_v10 = vshrl.u32 %v7642_v63, 16  ;;  %v2470_v33 = vshrl.u32 %v7646_v23, 16  ;;  %v7654_v63 = vld [vmem:[%s7802_s26 + $0x68] sm:$0xff]  }
  0x64   : > { %7234 = vmatprep.mubr.msk.bf16.mxu0 %vm343_vm1, %v1399_v45  ;;  %7200 = vmatprep.mubr.msk.bf16.mxu1 %vm343_vm1, %v870_v48  ;;  %v7635_v45 = vld [vmem:[%s7802_s26 + $0x30] sm:$0xff]   ;;  %v3138_v48 = vsel %vm398_vm0, %v3082_v56, 0  ;;  %v1890_v56 = vrot.slane %v7633_v41, 1  ;;  %v7645_v41 = vld [vmem:[%s7802_s26 + $0x58] sm:$0xff]  }
  0x65   : > { %v2422_v54 = vor.u32 %v2421_v43, %v2418_v42  ;;  %v1892_v59 = vrot.slane %v7635_v45, 1  ;;  %v2472_v42 = vrot.slane %v2470_v33, 1  ;;  %v7650_v43 = vld [vmem:[%s7802_s26 + $0x58] sm:$0xff]   ;;  %v1902_v44 = vrot.slane %v7645_v41, 1 }
  0x66   : > { %v1891_v4 = vsel %vm1372_vm3, %v1888_v37, %v1890_v56 }
  0x67   : > { %v1893_v9 = vsel %vm1372_vm3, %v1890_v56, %v1892_v59  ;;  %v2432_v17 = vsel %vm2397_vm4, %v2422_v54, %v2431_v60  ;;  %v1895_v27 = vsel %vm1372_vm3, %v1892_v59, %v1894_v12  ;;  %v2491_v56 = vshll.u32 %v7650_v43, 16 }
  0x6b   : > { %7235 = vmatmul.mubr.msk.bf16.gmra.mxu0 %vm343_vm1, %v1401_v0  ;;  %7201 = vmatmul.mubr.msk.bf16.gmra.mxu1 %vm343_vm1, %v878_v2  ;;  %v2423_v0 = vsel %vm2397_vm4, %v2413_v36, %v2422_v54  ;;  %v2439_v2 = vrot.slane %v2437_v55, 2  ;;  %v2479_v36 = vshrl.u32 %v7648_v26, 16  ;;  %v2488_v54 = vshrl.u32 %v7650_v43, 16 }
  0x6c   : > { %7238 = vmatprep.mubr.msk.bf16.mxu0 %vm343_vm1, %v1403_v3  ;;  %7204 = vmatprep.mubr.msk.bf16.mxu1 %vm343_vm1, %v886_v5  ;;  %v7639_v3 = vld [vmem:[%s7802_s26 + $0x40] sm:$0xff]   ;;  %v2445_v5 = vrot.slane %v2443_v57, 1  ;;  %v2476_v55 = vor.u32 %v2475_v46, %v2472_v42  ;;  %v7657_v42 = vld [vmem:[%s7802_s26 + $0x88] sm:$0xff]   ;;  %v7663_v46 = vld [vmem:[%s7802_s26 + $0x90] sm:$0xff]  }
  0x6d   : > { %v2440_v14 = vor.u32 %v2439_v2, %v2436_v1  ;;  %v2490_v62 = vrot.slane %v2488_v54, 1  ;;  %v2493_v1 = vrot.slane %v2491_v56, 2  ;;  %v7656_v2 = vld [vmem:[%s7802_s26 + $0x70] sm:$0xff]   ;;  %v2551_v56 = vshrl.u32 %v7663_v46, 16 }
  0x6e   : > { %v2449_v16 = vor.u32 %v2448_v6, %v2445_v5 }
  0x6f   : > { %v2441_v24 = vsel %vm2397_vm4, %v2431_v60, %v2440_v14  ;;  %v1904_v60 = vrot.slane %v7647_v53, 1 }
  0x70   : > { %v2450_v28 = vsel %vm2397_vm4, %v2440_v14, %v2449_v16  ;;  %v2515_v14 = vshrl.u32 %v7656_v2, 16 }
  0x71   : > { %v1905_v7 = vsel %vm1372_vm3, %v1902_v44, %v1904_v60 }
  0x73   : > { %7239 = vmatmul.mubr.msk.bf16.gmra.mxu0 %vm343_vm1, %v1405_v13  ;;  %7205 = vmatmul.mubr.msk.bf16.gmra.mxu1 %vm343_vm1, %v894_v21  ;;  %v1896_v21 = vrot.slane %v7639_v3, 1  ;;  %v7641_v13 = vld [vmem:[%s7802_s26 + $0x48] sm:$0xff]  }
  0x74   : > { %7242 = vmatprep.mubr.msk.bf16.mxu0 %vm343_vm1, %v1407_v22  ;;  %7248 = vmatprep.mubr.msk.bf16.mxu1 %vm343_vm1, %v1885_v29  ;;  %v2454_v22 = vrot.slane %v2452_v10, 1  ;;  %v2463_v29 = vrot.slane %v2461_v18, 1  ;;  %v1898_v37 = vrot.slane %v7641_v13, 1  ;;  %v2509_v10 = vshll.u32 %v7654_v63, 16 }
  0x75   : > { %v1897_v31 = vsel %vm1372_vm3, %v1894_v12, %v1896_v21  ;;  %v2494_v12 = vor.u32 %v2493_v1, %v2490_v62  ;;  %v2518_v18 = vshll.u32 %v7656_v2, 16  ;;  %v7664_v1 = vld [vmem:[%s7802_s26 + $0x8] sm:$0xfc]  }
  0x76   : > { %v2458_v34 = vor.u32 %v2457_v25, %v2454_v22  ;;  %v2467_v38 = vor.u32 %v2466_v30, %v2463_v29  ;;  %v2511_v22 = vrot.slane %v2509_v10, 2  ;;  %v7658_v25 = vld [vmem:[%s7802_s26 + $0x78] sm:$0xff]   ;;  %v7660_v29 = vld [vmem:[%s7802_s26 + $0x80] sm:$0xff]  }
  0x77   : > { %v2527_v35 = vshll.u32 %v7658_v25, 16 }
  0x78   : > { %v2459_v45 = vsel %vm2397_vm4, %v2449_v16, %v2458_v34 }
  0x7b   : > { %7243 = vmatmul.mubr.msk.bf16.gmra.mxu0 %vm343_vm1, %v1409_v40  ;;  %7249 = vmatmul.mubr.msk.bf16.vlgmr.msra.gmra.mxu1 %vm343_vm1, %v1887_v47  ;;  %v1900_v40 = vrot.slane %v7643_v32, 1  ;;  %v2481_v47 = vrot.slane %v2479_v36, 1 }
  0x7c   : > { %7286 = vmatprep.mubr.msk.bf16.mxu0 %vm343_vm1, %v2414_v49  ;;  %7323 = vmatpush3.bf16.msra.mxu1 %v3138_v48  ;;  %v1899_v48 = vsel %vm1372_vm3, %v1896_v21, %v1898_v37  ;;  %v2468_v49 = vsel %vm2397_vm4, %v2458_v34, %v2467_v38  ;;  %v7653_v21 = vld [vmem:[%s7802_s26 + $0x78] sm:$0xff]   ;;  %v2524_v34 = vshrl.u32 %v7658_v25, 16 }
  0x7d   : > { %7252 = vmatprep.mubr.msk.bf16.mxu1 %vm343_vm1, %v1889_v51  ;;  %7484 = vmatprep.subr.msk.bf16.mxu1 %vm398_vm0, %v4240_v11  ;;  %v7652_v51 = vld [vmem:[%s7802_s26 + $0x60] sm:$0xff]   ;;  %v1901_v52 = vsel %vm1372_vm3, %v1898_v37, %v1900_v40  ;;  %v2485_v57 = vor.u32 %v2484_v50, %v2481_v47  ;;  %v1903_v3 = vsel %vm1372_vm3, %v1900_v40, %v1902_v44  ;;  %v1910_v32 = vrot.slane %v7653_v21, 1  ;;  %v7662_v40 = vld [vmem:[%s7802_s26 + $0x88] sm:$0xff]   ;;  %v7671_v25 = vld [vmem:[%s7802_s26 + $0x18] sm:$0xff]  }
  0x7e   : > { %v2497_v58 = vshrl.u32 %v7652_v51, 16  ;;  %v2500_v59 = vshll.u32 %v7652_v51, 16  ;;  %v2533_v37 = vshrl.u32 %v7660_v29, 16  ;;  %v2526_v43 = vrot.slane %v2524_v34, 1  ;;  %v7673_v34 = vld [vmem:[%s7802_s26 + $0x20] sm:$0xff]  }
  0x7f   : > { %v2495_v23 = vsel %vm2397_vm4, %v2485_v57, %v2494_v12  ;;  %v2542_v53 = vshrl.u32 %v7662_v40, 16  ;;  %v2545_v54 = vshll.u32 %v7662_v40, 16  ;;  %v1914_v44 = vrot.slane %v7657_v42, 1  ;;  %v7674_v40 = vld [vmem:[%s7802_s26 + $0x30] sm:$0xff]  }
  0x80   : > { %v2499_v5 = vrot.slane %v2497_v58, 1  ;;  %v2502_v6 = vrot.slane %v2500_v59, 2  ;;  %v3559_v42 = vrot.slane %v7673_v34, 2  ;;  %v7689_v34 = vld [vmem:[%s7802_s26 + $0x60] sm:$0xff]  }
  0x81   : > { %v2544_v62 = vrot.slane %v2542_v53, 1  ;;  %v7678_v53 = vld [vmem:[%s7802_s26 + $0x40] sm:$0xff]  }
  0x82   : > { %v2503_v16 = vor.u32 %v2502_v6, %v2499_v5 }
  0x83   : > { %7287 = vmatmul.mubr.msk.bf16.vlgmr.msra.gmra.mxu0 %vm343_vm1, %v2423_v0  ;;  %7253 = vmatmul.mubr.msk.bf16.gmra.mxu1 %vm343_vm1, %v1891_v4  ;;  %v2477_v0 = vsel %vm2397_vm4, %v2467_v38, %v2476_v55  ;;  %v2486_v4 = vsel %vm2397_vm4, %v2476_v55, %v2485_v57  ;;  %v2536_v38 = vshll.u32 %v7660_v29, 16  ;;  %v2554_v57 = vshll.u32 %v7663_v46, 16  ;;  %v7677_v46 = vld [vmem:[%s7802_s26 + $0x30] sm:$0xff]  }
  0x84   : > { %7361 = vmatpush3.bf16.msra.mxu0 %v3648_v61  ;;  %7256 = vmatprep.mubr.msk.bf16.mxu1 %vm343_vm1, %v1893_v9  ;;  %v7649_v61 = vld [vmem:[%s7802_s26 + $0x68] sm:$0xff]   ;;  %v7651_v9 = vld [vmem:[%s7802_s26 + $0x70] sm:$0xff]  }
  0x85   : > { %7290 = vmatprep.mubr.msk.bf16.mxu0 %vm343_vm1, %v2432_v17  ;;  %7485 = vmatprep.subr.msk.bf16.mxu0 %vm398_vm0, %v8036_v20  ;;  %v2506_v17 = vshrl.u32 %v7654_v63, 16  ;;  %v1906_v15 = vrot.slane %v7649_v61, 1  ;;  %v1908_v19 = vrot.slane %v7651_v9, 1  ;;  %v2538_v50 = vrot.slane %v2536_v38, 2 }
  0x86   : > { %v7661_v61 = vld [vmem:[%s7802_s26 + $0x98] ss:$0 sps:$4 sm:$0x11]   ;;  %v2547_v63 = vrot.slane %v2545_v54, 2  ;;  %v2556_v5 = vrot.slane %v2554_v57, 2  ;;  %v4296_v38 = vsel %vm398_vm0, %v4240_v11, 0 }
  0x87   : > { %v2508_v13 = vrot.slane %v2506_v17, 1  ;;  %v1907_v26 = vsel %vm1372_vm3, %v1904_v60, %v1906_v15  ;;  %v1909_v30 = vsel %vm1372_vm3, %v1906_v15, %v1908_v19  ;;  %v1911_v47 = vsel %vm1372_vm3, %v1908_v19, %v1910_v32  ;;  %v7666_v60 = vld [vmem:[%s7802_s26 + $0x98] ss:$0 sps:$4 sm:$0x33]   ;;  %v7681_v57 = vld [vmem:[%s7802_s26 + $0x40] sm:$0xff]  }
  0x88   : > { %v2548_v9 = vor.u32 %v2547_v63, %v2544_v62  ;;  %v2560_v17 = vshrl.u32 %v7666_v60, 16  ;;  %v2563_v10 = vshll.u32 %v7666_v60, 16  ;;  %v3042_v15 = vrot.slane %v7664_v1, 2  ;;  %v7680_v60 = vld [vmem:[%s7802_s26 + $0x48] sm:$0xff]   ;;  %v7682_v63 = vld [vmem:[%s7802_s26 + $0x50] sm:$0xff]  }
  0x89   : > { %v2512_v33 = vor.u32 %v2511_v22, %v2508_v13  ;;  %v7670_v22 = vld [vmem:[%s7802_s26 + $0x10] sm:$0xfc]   ;;  %v3563_v54 = vrot.slane %v7677_v46, 2 }
  0x8a   : > { %v2562_v21 = vrot.slane %v2560_v17, 1  ;;  %v2565_v13 = vrot.slane %v2563_v10, 2 }
  0x8b   : > { %7291 = vmatmul.mubr.msk.bf16.gmra.mxu0 %vm343_vm1, %v2441_v24  ;;  %7257 = vmatmul.mubr.msk.bf16.gmra.mxu1 %vm343_vm1, %v1895_v27  ;;  %v2517_v24 = vrot.slane %v2515_v14, 1  ;;  %v2504_v27 = vsel %vm2397_vm4, %v2494_v12, %v2503_v16  ;;  %v2513_v41 = vsel %vm2397_vm4, %v2503_v16, %v2512_v33  ;;  %v1918_v12 = vrot.slane %v7661_v61, 1  ;;  %v7683_v61 = vld [vmem:[%s7802_s26 + $0x48] sm:$0xff]  }
  0x8c   : > { %7294 = vmatprep.mubr.msk.bf16.mxu0 %vm343_vm1, %v2450_v28  ;;  %7260 = vmatprep.mubr.msk.bf16.mxu1 %vm343_vm1, %v1897_v31  ;;  %v2520_v28 = vrot.slane %v2518_v18, 2  ;;  %v7655_v31 = vld [vmem:[%s7802_s26 + $0x80] sm:$0xff]   ;;  %v7667_v18 = vld [vmem:[%s7802_s26 + $0x18] sm:$0xff]  }
  0x8d   : > { %v1912_v39 = vrot.slane %v7655_v31, 1  ;;  %v3045_v29 = vrot.slane %v7667_v18, 2  ;;  %v3557_v31 = vrot.slane %v7671_v25, 2  ;;  %v7684_v18 = vld [vmem:[%s7802_s26 + $0x58] sm:$0xff]  }
  0x8e   : > { %v2521_v36 = vor.u32 %v2520_v28, %v2517_v24  ;;  %v2566_v28 = vor.u32 %v2565_v13, %v2562_v21 }
  0x8f   : > { %v1913_v51 = vsel %vm1372_vm3, %v1910_v32, %v1912_v39  ;;  %v1915_v2 = vsel %vm1372_vm3, %v1912_v39, %v1914_v44 }
  0x93   : > { %7295 = vmatmul.mubr.msk.bf16.gmra.mxu0 %vm343_vm1, %v2459_v45  ;;  %7261 = vmatmul.mubr.msk.bf16.gmra.mxu1 %vm343_vm1, %v1899_v48  ;;  %v2529_v45 = vrot.slane %v2527_v35, 2  ;;  %v2522_v48 = vsel %vm2397_vm4, %v2512_v33, %v2521_v36 }
  0x94   : > { %7298 = vmatprep.mubr.msk.bf16.mxu0 %vm343_vm1, %v2468_v49  ;;  %7264 = vmatprep.mubr.msk.bf16.mxu1 %vm343_vm1, %v1901_v52  ;;  %v2535_v49 = vrot.slane %v2533_v37, 1  ;;  %v7659_v52 = vld [vmem:[%s7802_s26 + $0x90] sm:$0xff]   ;;  %v7672_v37 = vld [vmem:[%s7802_s26 + $0x28] sm:$0xff]  }
  0x95   : > { %v2530_v55 = vor.u32 %v2529_v45, %v2526_v43  ;;  %v1916_v59 = vrot.slane %v7659_v52, 1  ;;  %v3049_v8 = vrot.slane %v7672_v37, 2  ;;  %v3051_v43 = vrot.slane %v7674_v40, 2 }
  0x96   : > { %v2539_v58 = vor.u32 %v2538_v50, %v2535_v49  ;;  %v3560_v45 = vsel %vm3041_vm5, %v3557_v31, %v3559_v42  ;;  %v7676_v49 = vld [vmem:[%s7802_s26 + $0x38] sm:$0xff]  }
  0x97   : > { %v1917_v6 = vsel %vm1372_vm3, %v1914_v44, %v1916_v59  ;;  %v7679_v50 = vld [vmem:[%s7802_s26 + $0x38] sm:$0xff]  }
  0x98   : > { %v2549_v19 = vsel %vm2397_vm4, %v2539_v58, %v2548_v9  ;;  %v3565_v44 = vrot.slane %v7679_v50, 2 }
  0x9b   : > { %7299 = vmatmul.mubr.msk.bf16.gmra.mxu0 %vm343_vm1, %v2477_v0  ;;  %7265 = vmatmul.mubr.msk.bf16.gmra.mxu1 %vm343_vm1, %v1903_v3  ;;  %v2531_v0 = vsel %vm2397_vm4, %v2521_v36, %v2530_v55  ;;  %v2540_v3 = vsel %vm2397_vm4, %v2530_v55, %v2539_v58  ;;  %v3055_v55 = vrot.slane %v7678_v53, 2  ;;  %v7693_v53 = vld [vmem:[%s7802_s26 + $0x70] sm:$0xff]  }
  0x9c   : > { %7302 = vmatprep.mubr.msk.bf16.mxu0 %vm343_vm1, %v2486_v4  ;;  %7268 = vmatprep.mubr.msk.bf16.mxu1 %vm343_vm1, %v1905_v7  ;;  %v2553_v4 = vrot.slane %v2551_v56, 1  ;;  %v7665_v7 = vld [vmem:[%s7802_s26 + $0x10] sm:$0xff]  }
  0x9d   : > { %v3043_v16 = vrot.slane %v7665_v7, 2  ;;  %v3059_v7 = vrot.slane %v7682_v63, 2 }
  0x9e   : > { %v2557_v14 = vor.u32 %v2556_v5, %v2553_v4  ;;  %v3057_v4 = vrot.slane %v7680_v60, 2  ;;  %v3569_v5 = vrot.slane %v7683_v61, 2 }
  0x9f   : > { %v3046_v35 = vsel %vm3041_vm5, %v3043_v16, %v3045_v29 }
  0xa0   : > { %v2558_v24 = vsel %vm2397_vm4, %v2548_v9, %v2557_v14  ;;  %v2567_v33 = vsel %vm2397_vm4, %v2557_v14, %v2566_v28  ;;  %v3060_v13 = vsel %vm3041_vm5, %v3057_v4, %v3059_v7 }
  0xa3   : > { %7303 = vmatmul.mubr.msk.bf16.gmra.mxu0 %vm343_vm1, %v2495_v23  ;;  %7269 = vmatmul.mubr.msk.bf16.gmra.mxu1 %vm343_vm1, %v1907_v26  ;;  %v1919_v23 = vsel %vm1372_vm3, %v1916_v59, %v1918_v12  ;;  %v3044_v26 = vsel %vm3041_vm5, %v3042_v15, %v3043_v16  ;;  %v3566_v59 = vsel %vm3041_vm5, %v3563_v54, %v3565_v44  ;;  %v7685_v12 = vld [vmem:[%s7802_s26 + $0x50] sm:$0xff]  }
  0xa4   : > { %7306 = vmatprep.mubr.msk.bf16.mxu0 %vm343_vm1, %v2504_v27  ;;  %7272 = vmatprep.mubr.msk.bf16.mxu1 %vm343_vm1, %v1909_v30  ;;  %v7669_v27 = vld [vmem:[%s7802_s26 + $0x20] sm:$0xff]   ;;  %v3556_v30 = vrot.slane %v7670_v22, 2  ;;  %v3058_v15 = vsel %vm3041_vm5, %v3055_v55, %v3057_v4  ;;  %v3571_v25 = vrot.slane %v7685_v12, 2 }
  0xa5   : > { %v3047_v32 = vrot.slane %v7669_v27, 2  ;;  %v7686_v22 = vld [vmem:[%s7802_s26 + $0x60] sm:$0xff]   ;;  %v3061_v27 = vrot.slane %v7684_v18, 2 }
  0xa6   : > { %v3558_v36 = vsel %vm3041_vm5, %v3556_v30, %v3557_v31  ;;  %v3063_v30 = vrot.slane %v7686_v22, 2  ;;  %v7697_v18 = vld [vmem:[%s7802_s26 + $0x80] sm:$0xff]  }
  0xa7   : > { %v3048_v39 = vsel %vm3041_vm5, %v3045_v29, %v3047_v32 }
  0xab   : > { %7307 = vmatmul.mubr.msk.bf16.gmra.mxu0 %vm343_vm1, %v2513_v41  ;;  %7273 = vmatmul.mubr.msk.bf16.gmra.mxu1 %vm343_vm1, %v1911_v47  ;;  %v7675_v41 = vld [vmem:[%s7802_s26 + $0x28] sm:$0xff]   ;;  %v3050_v47 = vsel %vm3041_vm5, %v3047_v32, %v3049_v8 }
  0xac   : > { %7310 = vmatprep.mubr.msk.bf16.mxu0 %vm343_vm1, %v2522_v48  ;;  %7276 = vmatprep.mubr.msk.bf16.mxu1 %vm343_vm1, %v1913_v51  ;;  %v3561_v11 = vrot.slane %v7675_v41, 2  ;;  %v4807_v48 = vsel %vm398_vm0, %v8036_v20, 0  ;;  %v3052_v51 = vsel %vm3041_vm5, %v3049_v8, %v3051_v43  ;;  %v3053_v20 = vrot.slane %v7676_v49, 2 }
  0xad   : > { %v3064_v41 = vsel %vm3041_vm5, %v3061_v27, %v3063_v30 }
  0xae   : > { %v3562_v52 = vsel %vm3041_vm5, %v3559_v42, %v3561_v11  ;;  %v3564_v56 = vsel %vm3041_vm5, %v3561_v11, %v3563_v54  ;;  %v3054_v58 = vsel %vm3041_vm5, %v3051_v43, %v3053_v20  ;;  %v3056_v62 = vsel %vm3041_vm5, %v3053_v20, %v3055_v55  ;;  %v7690_v42 = vld [vmem:[%s7802_s26 + $0x70] sm:$0xff]   ;;  %v7692_v55 = vld [vmem:[%s7802_s26 + $0x78] sm:$0xff]  }
  0xaf   : > { %v3575_v11 = vrot.slane %v7689_v34, 2  ;;  %v3067_v49 = vrot.slane %v7690_v42, 2  ;;  %v7703_v34 = vld [vmem:[%s7802_s26 + $0x10] sm:$0xfc]  }
  0xb3   : > { %7311 = vmatmul.mubr.msk.bf16.gmra.mxu0 %vm343_vm1, %v2531_v0  ;;  %7277 = vmatmul.mubr.msk.bf16.gmra.mxu1 %vm343_vm1, %v1915_v2  ;;  %v3567_v2 = vrot.slane %v7681_v57, 2 }
  0xb4   : > { %7314 = vmatprep.mubr.msk.bf16.mxu0 %vm343_vm1, %v2540_v3  ;;  %7280 = vmatprep.mubr.msk.bf16.mxu1 %vm343_vm1, %v1917_v6 }
  0xb5   : > { %v3568_v10 = vsel %vm3041_vm5, %v3565_v44, %v3567_v2  ;;  %v3570_v16 = vsel %vm3041_vm5, %v3567_v2, %v3569_v5  ;;  %v3069_v2 = vrot.slane %v7692_v55, 2 }
  0xbb   : > { %7315 = vmatmul.mubr.msk.bf16.gmra.mxu0 %vm343_vm1, %v2549_v19  ;;  %7281 = vmatmul.mubr.msk.bf16.gmra.mxu1 %vm343_vm1, %v1919_v23  ;;  %v7687_v19 = vld [vmem:[%s7802_s26 + $0x58] sm:$0xff]  }
  0xbc   : > { %7318 = vmatprep.mubr.msk.bf16.mxu0 %vm343_vm1, %v2558_v24  ;;  %7324 = vmatprep.mubr.msk.bf16.mxu1 %vm343_vm1, %v3044_v26  ;;  %v3573_v28 = vrot.slane %v7687_v19, 2 }
  0xbe   : > { %v3574_v37 = vsel %vm3041_vm5, %v3571_v25, %v3573_v28 }
  0xc3   : > { %7319 = vmatmul.mubr.msk.bf16.gmra.mxu0 %vm343_vm1, %v2567_v33  ;;  %7325 = vmatmul.mubr.msk.bf16.vlgmr.msra.gmra.mxu1 %vm343_vm1, %v3046_v35  ;;  %v3572_v33 = vsel %vm3041_vm5, %v3569_v5, %v3571_v25  ;;  %v8272_v25 = vld [vmem:[%s7802_s26 + $0x88] sm:$0xff]  }
  0xc4   : > { %7362 = vmatprep.mubr.msk.bf16.mxu0 %vm343_vm1, %v3558_v36  ;;  %7399 = vmatpush3.bf16.msra.mxu1 %v4296_v38  ;;  %v3062_v36 = vsel %vm3041_vm5, %v3059_v7, %v3061_v27  ;;  %v7688_v38 = vld [vmem:[%s7802_s26 + $0x68] sm:$0xff]   ;;  %v7704_v27 = vld [vmem:[%s7802_s26 + $0x18] sm:$0xff]  }
  0xc5   : > { %7328 = vmatprep.mubr.msk.bf16.mxu1 %vm343_vm1, %v3048_v39  ;;  %v7691_v39 = vld [vmem:[%s7802_s26 + $0x68] sm:$0xff]   ;;  %v3065_v46 = vrot.slane %v7688_v38, 2 }
  0xc7   : > { %v3066_v20 = vsel %vm3041_vm5, %v3063_v30, %v3065_v46 }
  0xcb   : > { %7363 = vmatmul.mubr.msk.bf16.vlgmr.msra.gmra.mxu0 %vm343_vm1, %v3560_v45  ;;  %7329 = vmatmul.mubr.msk.bf16.gmra.mxu1 %vm343_vm1, %v3050_v47  ;;  %v3577_v47 = vrot.slane %v7691_v39, 2  ;;  %v3583_v39 = vrot.slane %v7697_v18, 2  ;;  %v7700_v18 = vld [vmem:[%s7802_s26 + $0x98] ss:$0 sps:$4 sm:$0x33]  }
  0xcc   : > { %7437 = vmatpush3.bf16.msra.mxu0 %v4807_v48  ;;  %7332 = vmatprep.mubr.msk.bf16.mxu1 %vm343_vm1, %v3052_v51 }
  0xcd   : > { %7366 = vmatprep.mubr.msk.bf16.mxu0 %vm343_vm1, %v3562_v52  ;;  %v3576_v52 = vsel %vm3041_vm5, %v3573_v28, %v3575_v11  ;;  %v3578_v44 = vsel %vm3041_vm5, %v3575_v11, %v3577_v47  ;;  %v3585_v11 = vrot.slane %v8272_v25, 2 }
  0xd3   : > { %v8164_v0 = vpop.f32.mrf.mxu0  ;;  %7367 = vmatmul.mubr.msk.bf16.gmra.mxu0 %vm343_vm1, %v3564_v56  ;;  %v8167_v1 = vpop.f32.mrf.mxu1  ;;  %7333 = vmatmul.mubr.msk.bf16.gmra.mxu1 %vm343_vm1, %v3054_v58  ;;  %v7695_v56 = vld [vmem:[%s7802_s26 + $0x78] sm:$0xff]   ;;  %v3068_v58 = vsel %vm3041_vm5, %v3065_v46, %v3067_v49  ;;  %v4076_v46 = vshrl.u32 %v7704_v27, 16 }
  0xd4   : > { %7370 = vmatprep.mubr.msk.bf16.mxu0 %vm343_vm1, %v3566_v59  ;;  %7336 = vmatprep.mubr.msk.bf16.mxu1 %vm343_vm1, %v3056_v62  ;;  %v7694_v59 = vld [vmem:[%s7802_s26 + $0x80] sm:$0xff]   ;;  %v3579_v62 = vrot.slane %v7693_v53, 2  ;;  %v3581_v4 = vrot.slane %v7695_v56, 2  ;;  %v4068_v53 = vshrl.u32 %v7703_v34, 16 }
  0xd5   : > { %v8171_v3 = vpop.f32.mrf.mxu0  ;;  %v8174_v6 = vpop.f32.mrf.mxu1  ;;  %v3071_v7 = vrot.slane %v7694_v59, 2  ;;  %v7701_v59 = vld [vmem:[%s7802_s26 + $0x90] sm:$0xff]  }
  0xd6   : > { %v3582_v22 = vsel %vm3041_vm5, %v3579_v62, %v3581_v4 }
  0xd7   : > { %v8176_v9 = vpop.f32.mrf.mxu0  ;;  %v8178_v17 = vpop.f32.mrf.mxu1  ;;  %v3072_v30 = vsel %vm3041_vm5, %v3069_v2, %v3071_v7 }
  0xd9   : > { %v8182_v14 = vpop.f32.mrf.mxu0  ;;  %v8188_v21 = vpop.f32.mrf.mxu1 }
  0xdb   : > { %v8192_v23 = vpop.f32.mrf.mxu0  ;;  %7371 = vmatmul.mubr.msk.bf16.gmra.mxu0 %vm343_vm1, %v3568_v10  ;;  %v8195_v24 = vpop.f32.mrf.mxu1  ;;  %7337 = vmatmul.mubr.msk.bf16.gmra.mxu1 %vm343_vm1, %v3058_v15  ;;  %v3580_v15 = vsel %vm3041_vm5, %v3577_v47, %v3579_v62  ;;  %v4079_v47 = vshll.u32 %v7704_v27, 16  ;;  %v7706_v62 = vld [vmem:[%s7802_s26 + $0x20] sm:$0xff]  }
  0xdc   : > { %7374 = vmatprep.mubr.msk.bf16.mxu0 %vm343_vm1, %v3570_v16  ;;  %7340 = vmatprep.mubr.msk.bf16.mxu1 %vm343_vm1, %v3060_v13  ;;  %v7696_v16 = vld [vmem:[%s7802_s26 + $0x88] sm:$0xff]   ;;  %v3070_v13 = vsel %vm3041_vm5, %v3067_v49, %v3069_v2 }
  0xdd   : > { %v8199_v26 = vpop.f32.mrf.mxu0  ;;  %v8202_v29 = vpop.f32.mrf.mxu1  ;;  %v3073_v38 = vrot.slane %v7696_v16, 2  ;;  %v3586_v16 = vsel %vm3041_vm5, %v3583_v39, %v3585_v11 }
  0xdf   : > { %v8204_v31 = vpop.f32.mrf.mxu0  ;;  %v8206_v32 = vpop.f32.mrf.mxu1  ;;  %v3074_v56 = vsel %vm3041_vm5, %v3071_v7, %v3073_v38 }
  0xe1   : > { %v8210_v35 = vpop.f32.mrf.mxu0  ;;  %v8216_v40 = vpop.f32.mrf.mxu1 }
  0xe3   : > { %v8220_v8 = vpop.f32.mrf.mxu0  ;;  %7375 = vmatmul.mubr.msk.bf16.gmra.mxu0 %vm343_vm1, %v3572_v33  ;;  %v8223_v43 = vpop.f32.mrf.mxu1  ;;  %7341 = vmatmul.mubr.msk.bf16.gmra.mxu1 %vm343_vm1, %v3062_v36  ;;  %v8279_v33 = vld [vmem:[%s7802_s26 + $0x90] sm:$0xff]  }
  0xe4   : > { %7378 = vmatprep.mubr.msk.bf16.mxu0 %vm343_vm1, %v3574_v37  ;;  %7344 = vmatprep.mubr.msk.bf16.mxu1 %vm343_vm1, %v3064_v41 }
  0xe5   : > { %v8227_v45 = vpop.f32.mrf.mxu0  ;;  %v8230_v48 = vpop.f32.mrf.mxu1 }
  0xe7   : > { %v8232_v50 = vpop.f32.mrf.mxu0  ;;  %v8234_v51 = vpop.f32.mrf.mxu1 }
  0xe9   : > { %v8238_v54 = vpop.f32.mrf.mxu0  ;;  %v8244_v57 = vpop.f32.mrf.mxu1 }
  0xeb   : > { %v8248_v60 = vpop.f32.mrf.mxu0  ;;  %7379 = vmatmul.mubr.msk.bf16.gmra.mxu0 %vm343_vm1, %v3576_v52  ;;  %v8251_v61 = vpop.f32.mrf.mxu1  ;;  %7345 = vmatmul.mubr.msk.bf16.gmra.mxu1 %vm343_vm1, %v3066_v20  ;;  %v3075_v52 = vrot.slane %v8279_v33, 2  ;;  %v4071_v20 = vshll.u32 %v7703_v34, 16  ;;  %v7707_v33 = vld [vmem:[%s7802_s26 + $0x28] sm:$0xff]  }
  0xec   : > { %7382 = vmatprep.mubr.msk.bf16.mxu0 %vm343_vm1, %v3578_v44  ;;  %7348 = vmatprep.mubr.msk.bf16.mxu1 %vm343_vm1, %v3068_v58  ;;  %v3584_v58 = vsel %vm3041_vm5, %v3581_v4, %v3583_v39  ;;  %v3587_v39 = vrot.slane %v7701_v59, 2  ;;  %v4097_v59 = vshll.u32 %v7707_v33, 16 }
  0xed   : > { %v8255_v63 = vpop.f32.mrf.mxu0  ;;  %v8258_v5 = vpop.f32.mrf.mxu1  ;;  %v3076_v27 = vsel %vm3041_vm5, %v3073_v38, %v3075_v52  ;;  %v4073_v7 = vrot.slane %v4071_v20, 3 }
  0xef   : > { %v8260_v10 = vpop.f32.mrf.mxu0  ;;  %v8262_v12 = vpop.f32.mrf.mxu1 }
  0xf1   : > { %v8267_v19 = vpop.f32.mrf.mxu0  ;;  %v8275_v28 = vpop.f32.mrf.mxu1 }
  0xf3   : > { %v8282_v36 = vpop.f32.mrf.mxu0  ;;  %7383 = vmatmul.mubr.msk.bf16.gmra.mxu0 %vm343_vm1, %v3580_v15  ;;  %v7174_v37 = vpop.f32.mrf.mxu1  ;;  %7349 = vmatmul.mubr.msk.bf16.gmra.mxu1 %vm343_vm1, %v3070_v13  ;;  %v8306_v13 = vld [vmem:[%s7802_s26 + $0x98] sm:$0xff]  }
  0xf4   : > { %7386 = vmatprep.mubr.msk.bf16.mxu0 %vm343_vm1, %v3582_v22  ;;  %v1171_v41 = vadd.f32 %v7174_v37, %v8164_v0  ;;  %7352 = vmatprep.mubr.msk.bf16.mxu1 %vm343_vm1, %v3072_v30  ;;  %v4081_v22 = vrot.slane %v4079_v47, 3  ;;  %v4070_v30 = vrot.slane %v4068_v53, 2  ;;  %v4088_v47 = vshll.u32 %v7706_v62, 16 }
  0xf5   : > { %v8288_v42 = vpop.f32.mrf.mxu0  ;;  %v990_v49 = vpop.f32.mrf.mxu1  ;;  %v3589_v53 = vrot.slane %v8306_v13, 2 }
  0xf6   : > { %v1169_v44 = vadd.f32 %v990_v49, %v8171_v3  ;;  %v4078_v3 = vrot.slane %v4076_v46, 2  ;;  %v4085_v46 = vshrl.u32 %v7706_v62, 16 }
  0xf7   : > { %v8294_v55 = vpop.f32.mrf.mxu0  ;;  %v7175_v0 = vpop.f32.mrf.mxu1 }
  0xf8   : > { %v1172_v2 = vadd.f32 %v7175_v0, %v8176_v9  ;;  %v4082_v20 = vor.u32 %v4081_v22, %v4078_v3  ;;  %v4087_v13 = vrot.slane %v4085_v46, 2  ;;  %v4090_v3 = vrot.slane %v4088_v47, 3  ;;  %v7712_v46 = vld [vmem:[%s7802_s26 + $0x38] sm:$0xff]  }
  0xf9   : > { %v8301_v15 = vpop.f32.mrf.mxu0  ;;  %v993_v25 = vpop.f32.mrf.mxu1 }
  0xfa   : > { %v1170_v4 = vadd.f32 %v993_v25, %v8182_v14  ;;  %v3077_v14 = vrot.slane %v7700_v18, 2  ;;  %v3588_v18 = vsel %vm3041_vm5, %v3585_v11, %v3587_v39  ;;  %v4099_v11 = vrot.slane %v4097_v59, 3 }
  0xfb   : > { %v7212_v34 = vpop.f32.mrf.mxu0  ;;  %7387 = vmatmul.mubr.msk.bf16.gmra.mxu0 %vm343_vm1, %v3584_v58  ;;  %v7178_v9 = vpop.f32.mrf.mxu1  ;;  %7353 = vmatmul.mubr.msk.bf16.gmra.mxu1 %vm343_vm1, %v3074_v56  ;;  %v4074_v56 = vor.u32 %v4073_v7, %v4070_v30  ;;  %v4094_v58 = vshrl.u32 %v7707_v33, 16  ;;  %v7708_v33 = vld [vmem:[%s7802_s26 + $0x10] sm:$0xf8]  }
  0xfc   : > { %v8312_v37 = vadd.f32 %v7212_v34, %v1171_v41  ;;  %7390 = vmatprep.mubr.msk.bf16.mxu0 %vm343_vm1, %v3586_v16  ;;  %v1175_v38 = vadd.f32 %v7178_v9, %v8192_v23  ;;  %7356 = vmatprep.mubr.msk.bf16.mxu1 %vm343_vm1, %v3076_v27  ;;  %v7705_v23 = vld [vmem:[%s7802_s26 + $0xa0] ss:$0 sps:$4 sm:$0x33]   ;;  %v3078_v7 = vsel %vm3041_vm5, %v3075_v52, %v3077_v14  ;;  %v7710_v34 = vld [vmem:[%s7802_s26 + $0x30] sm:$0xff]  }
  0xfd   : > { %v1501_v49 = vpop.f32.mrf.mxu0  ;;  %v1006_v41 = vpop.f32.mrf.mxu1  ;;  %v4106_v59 = vshll.u32 %v7710_v34, 16 }
  0xfe   : > { %v8319_v0 = vadd.f32 %v1501_v49, %v1169_v44  ;;  %v1173_v62 = vadd.f32 %v1006_v41, %v8199_v26  ;;  %v8327_v44 = vld [vmem:[%s7802_s26 + $0x18] sm:$0xff]   ;;  %v3590_v26 = vsel %vm3041_vm5, %v3587_v39, %v3589_v53  ;;  %v4096_v41 = vrot.slane %v4094_v58, 2 }
  0xff   : > { %v7213_v16 = vpop.f32.mrf.mxu0  ;;  %v7179_v25 = vpop.f32.mrf.mxu1  ;;  %v4716_v39 = vrot.slane %v8327_v44, 3  ;;  %v4103_v58 = vshrl.u32 %v7710_v34, 16  ;;  %v7714_v34 = vld [vmem:[%s7802_s26 + $0x40] sm:$0xff]  }
 0x100   : > { %v8323_v27 = vadd.f32 %v7213_v16, %v1172_v2  ;;  %v1176_v22 = vadd.f32 %v7179_v25, %v8204_v31  ;;  %v4083_v2 = vsel %vm4066_vm6, %v4074_v56, %v4082_v20  ;;  %v3591_v31 = vrot.slane %v7705_v23, 2 }
 0x101   : > { %v1504_v30 = vpop.f32.mrf.mxu0  ;;  %v1009_v9 = vpop.f32.mrf.mxu1 }
 0x102   : > { %v8334_v49 = vadd.f32 %v1504_v30, %v1170_v4  ;;  %v1174_v47 = vadd.f32 %v1009_v9, %v8210_v35  ;;  %v4091_v4 = vor.u32 %v4090_v3, %v4087_v13  ;;  %v4715_v35 = vrot.slane %v7708_v33, 3  ;;  %v7711_v9 = vld [vmem:[%s7802_s26 + $0x20] sm:$0xff]  }
 0x103   : > { %v7216_v16 = vpop.f32.mrf.mxu0  ;;  %7391 = vmatmul.mubr.msk.bf16.gmra.mxu0 %vm343_vm1, %v3588_v18  ;;  %v7182_v25 = vpop.f32.mrf.mxu1  ;;  %7357 = vmatmul.mubr.msk.bf16.gmra.mxu1 %vm343_vm1, %v3078_v7  ;;  %v4100_v18 = vor.u32 %v4099_v11, %v4096_v41  ;;  %v4112_v30 = vshrl.u32 %v7712_v46, 16  ;;  %v4115_v13 = vshll.u32 %v7712_v46, 16  ;;  %v4105_v11 = vrot.slane %v4103_v58, 2 }
 0x104   : > { %v8340_v52 = vadd.f32 %v7216_v16, %v1175_v38  ;;  %7394 = vmatprep.mubr.msk.bf16.mxu0 %vm343_vm1, %v3590_v26  ;;  %v1179_v14 = vadd.f32 %v7182_v25, %v8220_v8  ;;  %7400 = vmatprep.mubr.msk.bf16.mxu1 %vm343_vm1, %v4083_v2  ;;  %v3592_v26 = vsel %vm3041_vm5, %v3589_v53, %v3591_v31  ;;  %v4108_v46 = vrot.slane %v4106_v59, 3  ;;  %v8359_v16 = vld [vmem:[%s7802_s26 + $0x28] sm:$0xff]  }
 0x105   : > { %v1517_v56 = vpop.f32.mrf.mxu0  ;;  %v1022_v38 = vpop.f32.mrf.mxu1  ;;  %v4092_v33 = vsel %vm4066_vm6, %v4082_v20, %v4091_v4  ;;  %v4717_v41 = vsel %vm4714_vm7, %v4715_v35, %v4716_v39  ;;  %v4117_v53 = vrot.slane %v4115_v13, 3  ;;  %v7716_v31 = vld [vmem:[%s7802_s26 + $0x48] sm:$0xff]   ;;  %v4718_v35 = vrot.slane %v7711_v9, 3 }
 0x106   : > { %v8347_v23 = vadd.f32 %v1517_v56, %v1173_v62  ;;  %v1177_v3 = vadd.f32 %v1022_v38, %v8227_v45  ;;  %v4114_v56 = vrot.slane %v4112_v30, 2  ;;  %v4124_v58 = vshll.u32 %v7714_v34, 16 }
 0x107   : > { %v7217_v44 = vpop.f32.mrf.mxu0  ;;  %v7183_v7 = vpop.f32.mrf.mxu1  ;;  %v4720_v30 = vrot.slane %v8359_v16, 3  ;;  %v7715_v16 = vld [vmem:[%s7802_s26 + $0x30] sm:$0xff]  }
 0x108   : > { %v8350_v8 = vadd.f32 %v7217_v44, %v1176_v22  ;;  %v1180_v62 = vadd.f32 %v7183_v7, %v8232_v50  ;;  %v4101_v22 = vsel %vm4066_vm6, %v4091_v4, %v4100_v18 }
 0x109   : > { %v1520_v2 = vpop.f32.mrf.mxu0  ;;  %v1025_v45 = vpop.f32.mrf.mxu1 }
 0x10a   : > { %v8361_v25 = vadd.f32 %v1520_v2, %v1174_v47  ;;  %v1178_v20 = vadd.f32 %v1025_v45, %v8238_v54  ;;  %v4121_v47 = vshrl.u32 %v7714_v34, 16  ;;  %v4109_v54 = vor.u32 %v4108_v46, %v4105_v11 }
 0x10b   : > { %v7220_v38 = vpop.f32.mrf.mxu0  ;;  %7395 = vmatmul.mubr.msk.bf16.gmra.mxu0 %vm343_vm1, %v3592_v26  ;;  %v7186_v50 = vpop.f32.mrf.mxu1  ;;  %7401 = vmatmul.mubr.msk.bf16.vlgmr.msra.gmra.mxu1 %vm343_vm1, %v4092_v33  ;;  %v4130_v26 = vshrl.u32 %v7716_v31, 16  ;;  %v4133_v33 = vshll.u32 %v7716_v31, 16  ;;  %v4126_v46 = vrot.slane %v4124_v58, 3 }
 0x10c   : > { %v8367_v44 = vadd.f32 %v7220_v38, %v1179_v14  ;;  %7438 = vmatprep.mubr.msk.bf16.mxu0 %vm343_vm1, %v4717_v41  ;;  %v1183_v4 = vadd.f32 %v7186_v50, %v8248_v60  ;;  %7404 = vmatprep.mubr.msk.bf16.mxu1 %vm343_vm1, %v4101_v22  ;;  %v4118_v14 = vor.u32 %v4117_v53, %v4114_v56  ;;  %v4123_v11 = vrot.slane %v4121_v47, 2  ;;  %v8385_v53 = vld [vmem:[%s7802_s26 + $0x38] sm:$0xff]  }
 0x10d   : > { %v1533_v59 = vpop.f32.mrf.mxu0  ;;  %v1038_v13 = vpop.f32.mrf.mxu1  ;;  %v4719_v41 = vsel %vm4714_vm7, %v4716_v39, %v4718_v35  ;;  %v4110_v22 = vsel %vm4066_vm6, %v4100_v18, %v4109_v54  ;;  %v4721_v56 = vsel %vm4714_vm7, %v4718_v35, %v4720_v30  ;;  %v4132_v50 = vrot.slane %v4130_v26, 2  ;;  %v7720_v47 = vld [vmem:[%s7802_s26 + $0x58] sm:$0xff]  }
 0x10e   : > { %v8374_v7 = vadd.f32 %v1533_v59, %v1177_v3  ;;  %v1181_v9 = vadd.f32 %v1038_v13, %v8255_v63  ;;  %v7718_v63 = vld [vmem:[%s7802_s26 + $0x50] sm:$0xff]   ;;  %v4135_v39 = vrot.slane %v4133_v33, 3  ;;  %v4127_v35 = vor.u32 %v4126_v46, %v4123_v11 }
 0x10f   : > { %v7221_v34 = vpop.f32.mrf.mxu0  ;;  %v7187_v2 = vpop.f32.mrf.mxu1  ;;  %v4139_v26 = vshrl.u32 %v7718_v63, 16  ;;  %v4142_v33 = vshll.u32 %v7718_v63, 16  ;;  %v4151_v11 = vshll.u32 %v7720_v47, 16  ;;  %v7722_v63 = vld [vmem:[%s7802_s26 + $0x60] sm:$0xff]  }
 0x110   : > { %v8377_v60 = vadd.f32 %v7221_v34, %v1180_v62  ;;  %v1184_v3 = vadd.f32 %v7187_v2, %v8260_v10  ;;  %v4119_v62 = vsel %vm4066_vm6, %v4109_v54, %v4118_v14  ;;  %v4136_v2 = vor.u32 %v4135_v39, %v4132_v50 }
 0x111   : > { %v1536_v45 = vpop.f32.mrf.mxu0  ;;  %v1041_v31 = vpop.f32.mrf.mxu1  ;;  %v4141_v50 = vrot.slane %v4139_v26, 2  ;;  %v4144_v39 = vrot.slane %v4142_v33, 3  ;;  %v4157_v26 = vshrl.u32 %v7722_v63, 16 }
 0x112   : > { %v8388_v38 = vadd.f32 %v1536_v45, %v1178_v20  ;;  %v1182_v58 = vadd.f32 %v1041_v31, %v8267_v19  ;;  %v4722_v20 = vrot.slane %v7715_v16, 3  ;;  %v4724_v19 = vrot.slane %v8385_v53, 3  ;;  %v7719_v53 = vld [vmem:[%s7802_s26 + $0x40] sm:$0xff]  }
 0x113   : > { %v7224_v59 = vpop.f32.mrf.mxu0  ;;  %7439 = vmatmul.mubr.msk.bf16.vlgmr.msra.gmra.mxu0 %vm343_vm1, %v4719_v41  ;;  %v7190_v10 = vpop.f32.mrf.mxu1  ;;  %7405 = vmatmul.mubr.msk.bf16.gmra.mxu1 %vm343_vm1, %v4110_v22  ;;  %v4148_v41 = vshrl.u32 %v7720_v47, 16  ;;  %v4128_v22 = vsel %vm4066_vm6, %v4118_v14, %v4127_v35  ;;  %v8413_v47 = vld [vmem:[%s7802_s26 + $0x48] sm:$0xff]  }
 0x114   : > { %v8394_v18 = vadd.f32 %v7224_v59, %v1183_v4  ;;  %7442 = vmatprep.mubr.msk.bf16.mxu0 %vm343_vm1, %v4721_v56  ;;  %v1187_v13 = vadd.f32 %v7190_v10, %v8282_v36  ;;  %7408 = vmatprep.mubr.msk.bf16.mxu1 %vm343_vm1, %v4119_v62  ;;  %v4723_v56 = vsel %vm4714_vm7, %v4720_v30, %v4722_v20 }
 0x115   : > { %v1549_v54 = vpop.f32.mrf.mxu0  ;;  %v1054_v34 = vpop.f32.mrf.mxu1  ;;  %v4725_v62 = vsel %vm4714_vm7, %v4722_v20, %v4724_v19  ;;  %v4150_v14 = vrot.slane %v4148_v41, 2  ;;  %v4726_v20 = vrot.slane %v7719_v53, 3 }
 0x116   : > { %v8401_v4 = vadd.f32 %v1549_v54, %v1181_v9  ;;  %v1185_v46 = vadd.f32 %v1054_v34, %v8288_v42  ;;  %v7724_v42 = vld [vmem:[%s7802_s26 + $0x68] sm:$0xff]   ;;  %v4153_v54 = vrot.slane %v4151_v11, 3 }
 0x117   : > { %v7225_v36 = vpop.f32.mrf.mxu0  ;;  %v7191_v16 = vpop.f32.mrf.mxu1  ;;  %v4166_v41 = vshrl.u32 %v7724_v42, 16  ;;  %v4169_v11 = vshll.u32 %v7724_v42, 16 }
 0x118   : > { %v8404_v45 = vadd.f32 %v7225_v36, %v1184_v3  ;;  %v1188_v9 = vadd.f32 %v7191_v16, %v8294_v55  ;;  %v4137_v3 = vsel %vm4066_vm6, %v4127_v35, %v4136_v2  ;;  %v4145_v35 = vor.u32 %v4144_v39, %v4141_v50  ;;  %v7723_v50 = vld [vmem:[%s7802_s26 + $0x50] sm:$0xff]  }
 0x119   : > { %v1552_v31 = vpop.f32.mrf.mxu0  ;;  %v1057_v59 = vpop.f32.mrf.mxu1 }
 0x11a   : > { %v8416_v10 = vadd.f32 %v1552_v31, %v1182_v58  ;;  %v1186_v30 = vadd.f32 %v1057_v59, %v8301_v15  ;;  %v4160_v58 = vshll.u32 %v7722_v63, 16  ;;  %v4728_v15 = vrot.slane %v8413_v47, 3 }
 0x11b   : > { %v7228_v34 = vpop.f32.mrf.mxu0  ;;  %7443 = vmatmul.mubr.msk.bf16.gmra.mxu0 %vm343_vm1, %v4723_v56  ;;  %v7194_v55 = vpop.f32.mrf.mxu1  ;;  %7409 = vmatmul.mubr.msk.bf16.gmra.mxu1 %vm343_vm1, %v4128_v22  ;;  %v4154_v22 = vor.u32 %v4153_v54, %v4150_v14  ;;  %v4727_v63 = vsel %vm4714_vm7, %v4724_v19, %v4726_v20  ;;  %v4146_v47 = vsel %vm4066_vm6, %v4136_v2, %v4145_v35  ;;  %v7726_v14 = vld [vmem:[%s7802_s26 + $0x70] sm:$0xff]  }
 0x11c   : > { %v8421_v36 = vadd.f32 %v7228_v34, %v1187_v13  ;;  %7446 = vmatprep.mubr.msk.bf16.mxu0 %vm343_vm1, %v4725_v62  ;;  %7412 = vmatprep.mubr.msk.bf16.mxu1 %vm343_vm1, %v4137_v3  ;;  %v4159_v62 = vrot.slane %v4157_v26, 2  ;;  %v4162_v59 = vrot.slane %v4160_v58, 3  ;;  %v4729_v42 = vsel %vm4714_vm7, %v4726_v20, %v4728_v15  ;;  %v7728_v26 = vld [vmem:[%s7802_s26 + $0x78] sm:$0xff]  }
 0x11d   : > { %v1565_v33 = vpop.f32.mrf.mxu0  ;;  %v1070_v16 = vpop.f32.mrf.mxu1  ;;  %v4168_v3 = vrot.slane %v4166_v41, 2  ;;  %v4171_v34 = vrot.slane %v4169_v11, 3  ;;  %v1191_v54 = vadd.f32 %v7194_v55, %v8167_v1  ;;  %v4155_v19 = vsel %vm4066_vm6, %v4145_v35, %v4154_v22 }
 0x11e   : > { %v8427_v13 = vadd.f32 %v1565_v33, %v1185_v46  ;;  %v8436_v46 = vld [vmem:[%s7802_s26 + $0x58] sm:$0xff]   ;;  %v1189_v2 = vadd.f32 %v1070_v16, %v8174_v6  ;;  %v4163_v1 = vor.u32 %v4162_v59, %v4159_v62  ;;  %v4730_v55 = vrot.slane %v7723_v50, 3  ;;  %v7727_v59 = vld [vmem:[%s7802_s26 + $0x60] sm:$0xff]  }
 0x11f   : > { %v7229_v56 = vpop.f32.mrf.mxu0  ;;  %v7195_v31 = vpop.f32.mrf.mxu1  ;;  %v4172_v35 = vor.u32 %v4171_v34, %v4168_v3  ;;  %v4732_v41 = vrot.slane %v8436_v46, 3  ;;  %v4175_v11 = vshrl.u32 %v7726_v14, 16 }
 0x120   : > { %v8429_v53 = vadd.f32 %v7229_v56, %v1188_v9  ;;  %v1192_v6 = vadd.f32 %v7195_v31, %v8178_v17  ;;  %v4164_v34 = vsel %vm4066_vm6, %v4154_v22, %v4163_v1  ;;  %v4731_v46 = vsel %vm4714_vm7, %v4728_v15, %v4730_v55 }
 0x121   : > { %v1568_v39 = vpop.f32.mrf.mxu0  ;;  %v1073_v9 = vpop.f32.mrf.mxu1  ;;  %v4173_v31 = vsel %vm4066_vm6, %v4163_v1, %v4172_v35  ;;  %v4734_v15 = vrot.slane %v7727_v59, 3 }
 0x122   : > { %v8440_v33 = vadd.f32 %v1568_v39, %v1186_v30  ;;  %v1190_v50 = vadd.f32 %v1073_v9, %v8188_v21 }
 0x123   : > { %v7232_v58 = vpop.f32.mrf.mxu0  ;;  %7447 = vmatmul.mubr.msk.bf16.gmra.mxu0 %vm343_vm1, %v4727_v63  ;;  %v7198_v56 = vpop.f32.mrf.mxu1  ;;  %7413 = vmatmul.mubr.msk.bf16.gmra.mxu1 %vm343_vm1, %v4146_v47  ;;  %v4178_v63 = vshll.u32 %v7726_v14, 16  ;;  %v4184_v47 = vshrl.u32 %v7728_v26, 16  ;;  %v7730_v14 = vld [vmem:[%s7802_s26 + $0x80] sm:$0xff]  }
 0x124   : > { %v8446_v20 = vadd.f32 %v7232_v58, %v1191_v54  ;;  %7450 = vmatprep.mubr.msk.bf16.mxu0 %vm343_vm1, %v4729_v42  ;;  %7416 = vmatprep.mubr.msk.bf16.mxu1 %vm343_vm1, %v4155_v19  ;;  %v4187_v42 = vshll.u32 %v7728_v26, 16  ;;  %v4733_v19 = vsel %vm4714_vm7, %v4730_v55, %v4732_v41  ;;  %v4177_v58 = vrot.slane %v4175_v11, 2  ;;  %v8465_v26 = vld [vmem:[%s7802_s26 + $0x68] sm:$0xff]  }
 0x125   : > { %v1581_v30 = vpop.f32.mrf.mxu0  ;;  %v1086_v16 = vpop.f32.mrf.mxu1  ;;  %v1195_v21 = vadd.f32 %v7198_v56, %v8195_v24  ;;  %v4193_v11 = vshrl.u32 %v7730_v14, 16  ;;  %v4196_v24 = vshll.u32 %v7730_v14, 16 }
 0x126   : > { %v8453_v39 = vadd.f32 %v1581_v30, %v1189_v2  ;;  %v4180_v2 = vrot.slane %v4178_v63, 3  ;;  %v7732_v30 = vld [vmem:[%s7802_s26 + $0x88] sm:$0xff]   ;;  %v4189_v22 = vrot.slane %v4187_v42, 3  ;;  %v1193_v1 = vadd.f32 %v1086_v16, %v8202_v29 }
 0x127   : > { %v7233_v62 = vpop.f32.mrf.mxu0  ;;  %v7199_v54 = vpop.f32.mrf.mxu1  ;;  %v4202_v42 = vshrl.u32 %v7732_v30, 16  ;;  %v4205_v59 = vshll.u32 %v7732_v30, 16 }
 0x128   : > { %10658 = vst [vmem:[#allocation3_spill] sm:$0xff] %v8453_v39  ;;  %v8457_v3 = vadd.f32 %v7233_v62, %v1192_v6  ;;  %v4186_v62 = vrot.slane %v4184_v47, 2  ;;  %v4181_v63 = vor.u32 %v4180_v2, %v4177_v58  ;;  %v4736_v47 = vrot.slane %v8465_v26, 3  ;;  %v7731_v2 = vld [vmem:[%s7802_s26 + $0x70] sm:$0xff]  }
 0x129   : > { %v1584_v17 = vpop.f32.mrf.mxu0  ;;  %v1089_v9 = vpop.f32.mrf.mxu1  ;;  %v1196_v29 = vadd.f32 %v7199_v54, %v8206_v32  ;;  %v4198_v58 = vrot.slane %v4196_v24, 3  ;;  %v4204_v30 = vrot.slane %v4202_v42, 2 }
 0x12a   : > { %10659 = vst [vmem:[#allocation4_spill] sm:$0xff] %v8457_v3  ;;  %v8469_v6 = vadd.f32 %v1584_v17, %v1190_v50  ;;  %v1194_v14 = vadd.f32 %v1089_v9, %v8216_v40  ;;  %v4182_v32 = vsel %vm4066_vm6, %v4172_v35, %v4181_v63  ;;  %v4737_v54 = vsel %vm4714_vm7, %v4734_v15, %v4736_v47 }
 0x12b   : > { %v7236_v3 = vpop.f32.mrf.mxu0  ;;  %7451 = vmatmul.mubr.msk.bf16.gmra.mxu0 %vm343_vm1, %v4731_v46  ;;  %v7202_v39 = vpop.f32.mrf.mxu1  ;;  %7417 = vmatmul.mubr.msk.bf16.gmra.mxu1 %vm343_vm1, %v4164_v34  ;;  %v4735_v46 = vsel %vm4714_vm7, %v4732_v41, %v4734_v15 }
 0x12c   : > { %v8473_v55 = vadd.f32 %v7236_v3, %v1195_v21  ;;  %7454 = vmatprep.mubr.msk.bf16.mxu0 %vm343_vm1, %v4733_v19  ;;  %7420 = vmatprep.mubr.msk.bf16.mxu1 %vm343_vm1, %v4173_v31  ;;  %v4190_v3 = vor.u32 %v4189_v22, %v4186_v62  ;;  %v4195_v19 = vrot.slane %v4193_v11, 2  ;;  %v4207_v21 = vrot.slane %v4205_v59, 3  ;;  %v8490_v62 = vld [vmem:[%s7802_s26 + $0x78] sm:$0xff]   ;;  %v7734_v22 = vld [vmem:[%s7802_s26 + $0x90] sm:$0xff]  }
 0x12d   : > { %v1597_v56 = vpop.f32.mrf.mxu0  ;;  %v1102_v16 = vpop.f32.mrf.mxu1  ;;  %v1199_v41 = vadd.f32 %v7202_v39, %v8223_v43  ;;  %v7736_v11 = vld [vmem:[%s7802_s26 + $0x98] sm:$0xff]   ;;  %v4738_v43 = vrot.slane %v7731_v2, 3  ;;  %v4740_v59 = vrot.slane %v8490_v62, 3  ;;  %v8516_v62 = vld [vmem:[%s7802_s26 + $0x88] sm:$0xff]  }
 0x12e   : > { %v8480_v50 = vadd.f32 %v1597_v56, %v1193_v1  ;;  %v4191_v1 = vsel %vm4066_vm6, %v4181_v63, %v4190_v3  ;;  %v1197_v35 = vadd.f32 %v1102_v16, %v8230_v48  ;;  %v4199_v42 = vor.u32 %v4198_v58, %v4195_v19 }
 0x12f   : > { %v7237_v34 = vpop.f32.mrf.mxu0  ;;  %v7203_v17 = vpop.f32.mrf.mxu1  ;;  %v4208_v63 = vor.u32 %v4207_v21, %v4204_v30  ;;  %v4739_v30 = vsel %vm4714_vm7, %v4736_v47, %v4738_v43  ;;  %v7735_v21 = vld [vmem:[%s7802_s26 + $0x80] sm:$0xff]  }
 0x130   : > { %v8484_v31 = vadd.f32 %v7237_v34, %v1196_v29  ;;  %v4211_v29 = vshrl.u32 %v7734_v22, 16  ;;  %v4214_v34 = vshll.u32 %v7734_v22, 16  ;;  %v1200_v48 = vadd.f32 %v7203_v17, %v8234_v51 }
 0x131   : > { %v1600_v26 = vpop.f32.mrf.mxu0  ;;  %v1105_v40 = vpop.f32.mrf.mxu1  ;;  %v4209_v17 = vsel %vm4066_vm6, %v4199_v42, %v4208_v63  ;;  %v4741_v22 = vsel %vm4714_vm7, %v4738_v43, %v4740_v59  ;;  %v4742_v43 = vrot.slane %v7735_v21, 3 }
 0x132   : > { %v8494_v9 = vadd.f32 %v1600_v26, %v1194_v14  ;;  %v4220_v14 = vshrl.u32 %v7736_v11, 16  ;;  %v4223_v26 = vshll.u32 %v7736_v11, 16  ;;  %v1198_v58 = vadd.f32 %v1105_v40, %v8244_v57  ;;  %v7738_v11 = vld [vmem:[%s7802_s26 + $0xa0] ss:$0 sps:$4 sm:$0x77]  }
 0x133   : > { %v7240_v24 = vpop.f32.mrf.mxu0  ;;  %7455 = vmatmul.mubr.msk.bf16.gmra.mxu0 %vm343_vm1, %v4735_v46  ;;  %v7206_v56 = vpop.f32.mrf.mxu1  ;;  %7421 = vmatmul.mubr.msk.bf16.gmra.mxu1 %vm343_vm1, %v4182_v32 }
 0x134   : > { %v8500_v15 = vadd.f32 %v7240_v24, %v1199_v41  ;;  %7458 = vmatprep.mubr.msk.bf16.mxu0 %vm343_vm1, %v4737_v54  ;;  %7424 = vmatprep.mubr.msk.bf16.mxu1 %vm343_vm1, %v4191_v1  ;;  %v4200_v54 = vsel %vm4066_vm6, %v4190_v3, %v4199_v42  ;;  %v4213_v41 = vrot.slane %v4211_v29, 2  ;;  %v4216_v1 = vrot.slane %v4214_v34, 3 }
 0x135   : > { %v1613_v39 = vpop.f32.mrf.mxu0  ;;  %v1118_v16 = vpop.f32.mrf.mxu1  ;;  %v1203_v57 = vadd.f32 %v7206_v56, %v8251_v61  ;;  %v4225_v3 = vrot.slane %v4223_v26, 3  ;;  %v4744_v61 = vrot.slane %v8516_v62, 3  ;;  %v4232_v26 = vshll.u32 %v7738_v11, 16 }
 0x136   : > { %v8507_v46 = vadd.f32 %v1613_v39, %v1197_v35  ;;  %v4222_v35 = vrot.slane %v4220_v14, 2  ;;  %v1201_v47 = vadd.f32 %v1118_v16, %v8258_v5  ;;  %v4217_v34 = vor.u32 %v4216_v1, %v4213_v41 }
 0x137   : > { %v7241_v19 = vpop.f32.mrf.mxu0  ;;  %v7207_v2 = vpop.f32.mrf.mxu1  ;;  %v4229_v14 = vshrl.u32 %v7738_v11, 16  ;;  %v4234_v11 = vrot.slane %v4232_v26, 3 }
 0x138   : > { %v8510_v32 = vadd.f32 %v7241_v19, %v1200_v48  ;;  %v1204_v5 = vadd.f32 %v7207_v2, %v8262_v12  ;;  %v4218_v41 = vsel %vm4066_vm6, %v4208_v63, %v4217_v34 }
 0x139   : > { %v1616_v51 = vpop.f32.mrf.mxu0  ;;  %v1121_v40 = vpop.f32.mrf.mxu1  ;;  %v4231_v1 = vrot.slane %v4229_v14, 2 }
 0x13a   : > { %v8522_v24 = vadd.f32 %v1616_v51, %v1198_v58  ;;  %v4226_v58 = vor.u32 %v4225_v3, %v4222_v35  ;;  %v1202_v21 = vadd.f32 %v1121_v40, %v8275_v28  ;;  %v4743_v51 = vsel %vm4714_vm7, %v4740_v59, %v4742_v43 }
 0x13b   : > { %v7244_v39 = vpop.f32.mrf.mxu0  ;;  %7459 = vmatmul.mubr.msk.bf16.gmra.mxu0 %vm343_vm1, %v4739_v30  ;;  %v7250_v42 = vpop.f32.mrf.mxu1  ;;  %7425 = vmatmul.mubr.msk.bf16.gmra.mxu1 %vm343_vm1, %v4200_v54 }
 0x13c   : > { %v8526_v48 = vadd.f32 %v7244_v39, %v1203_v57  ;;  %7462 = vmatprep.mubr.msk.bf16.mxu0 %vm343_vm1, %v4741_v22  ;;  %v2196_v56 = vadd.f32 %v7250_v42, %v8312_v37  ;;  %7428 = vmatprep.mubr.msk.bf16.mxu1 %vm343_vm1, %v4209_v17  ;;  %v4745_v17 = vsel %vm4714_vm7, %v4742_v43, %v4744_v61  ;;  %v7739_v22 = vld [vmem:[%s7802_s26 + $0x90] sm:$0xff]   ;;  %v7740_v57 = vld [vmem:[%s7802_s26 + $0x98] sm:$0xff]  }
 0x13d   : > { %v1629_v29 = vpop.f32.mrf.mxu0  ;;  %v2015_v19 = vpop.f32.mrf.mxu1  ;;  %v4227_v28 = vsel %vm4066_vm6, %v4217_v34, %v4226_v58  ;;  %v4235_v42 = vor.u32 %v4234_v11, %v4231_v1  ;;  %v4748_v43 = vrot.slane %v7740_v57, 3 }
 0x13e   : > { %v8534_v16 = vadd.f32 %v1629_v29, %v1201_v47  ;;  %v2194_v54 = vadd.f32 %v2015_v19, %v8319_v0  ;;  %v7741_v19 = vld [vmem:[%s7802_s26 + $0xa0] ss:$0 sps:$4 sm:$0x77]  }
 0x13f   : > { %v7245_v30 = vpop.f32.mrf.mxu0  ;;  %v7251_v62 = vpop.f32.mrf.mxu1 }
 0x140   : > { %v8538_v37 = vadd.f32 %v7245_v30, %v1204_v5  ;;  %v2197_v12 = vadd.f32 %v7251_v62, %v8323_v27  ;;  %v4746_v27 = vrot.slane %v7739_v22, 3 }
 0x141   : > { %v1632_v2 = vpop.f32.mrf.mxu0  ;;  %v2018_v35 = vpop.f32.mrf.mxu1 }
 0x142   : > { %v8546_v0 = vadd.f32 %v1632_v2, %v1202_v21  ;;  %v2195_v40 = vadd.f32 %v2018_v35, %v8334_v49  ;;  %v4747_v5 = vsel %vm4714_vm7, %v4744_v61, %v4746_v27  ;;  %v4236_v21 = vsel %vm4066_vm6, %v4226_v58, %v4235_v42 }
 0x143   : > { %v7288_v3 = vpop.f32.mrf.mxu0  ;;  %7463 = vmatmul.mubr.msk.bf16.gmra.mxu0 %vm343_vm1, %v4743_v51  ;;  %v7254_v59 = vpop.f32.mrf.mxu1  ;;  %7429 = vmatmul.mubr.msk.bf16.gmra.mxu1 %vm343_vm1, %v4218_v41  ;;  %v4749_v62 = vsel %vm4714_vm7, %v4746_v27, %v4748_v43 }
 0x144   : > { %v8551_v39 = vadd.f32 %v7288_v3, %v2196_v56  ;;  %7466 = vmatprep.mubr.msk.bf16.mxu0 %vm343_vm1, %v4745_v17  ;;  %v2200_v63 = vadd.f32 %v7254_v59, %v8340_v52  ;;  %7432 = vmatprep.mubr.msk.bf16.mxu1 %vm343_vm1, %v4227_v28 }
 0x145   : > { %v2659_v47 = vpop.f32.mrf.mxu0  ;;  %v2031_v49 = vpop.f32.mrf.mxu1 }
 0x146   : > { %v8557_v29 = vadd.f32 %v2659_v47, %v2194_v54  ;;  %v2198_v34 = vadd.f32 %v2031_v49, %v8347_v23 }
 0x147   : > { %v7289_v56 = vpop.f32.mrf.mxu0  ;;  %v7255_v14 = vpop.f32.mrf.mxu1 }
 0x148   : > { %v8560_v26 = vadd.f32 %v7289_v56, %v2197_v12  ;;  %v2201_v30 = vadd.f32 %v7255_v14, %v8350_v8  ;;  %v4750_v8 = vrot.slane %v7741_v19, 3 }
 0x149   : > { %v2662_v52 = vpop.f32.mrf.mxu0  ;;  %v2034_v51 = vpop.f32.mrf.mxu1 }
 0x14a   : > { %v8567_v17 = vadd.f32 %v2662_v52, %v2195_v40  ;;  %v2199_v54 = vadd.f32 %v2034_v51, %v8361_v25  ;;  %v4751_v35 = vsel %vm4714_vm7, %v4748_v43, %v4750_v8 }
 0x14b   : > { %v7292_v23 = vpop.f32.mrf.mxu0  ;;  %7467 = vmatmul.mubr.msk.bf16.gmra.mxu0 %vm343_vm1, %v4747_v5  ;;  %v7258_v22 = vpop.f32.mrf.mxu1  ;;  %7433 = vmatmul.mubr.msk.bf16.gmra.mxu1 %vm343_vm1, %v4236_v21 }
 0x14c   : > { %v8571_v12 = vadd.f32 %v7292_v23, %v2200_v63  ;;  %7470 = vmatprep.mubr.msk.bf16.mxu0 %vm343_vm1, %v4749_v62  ;;  %v2204_v61 = vadd.f32 %v7258_v22, %v8367_v44 }
 0x14d   : > { %v2675_v58 = vpop.f32.mrf.mxu0  ;;  %v2047_v2 = vpop.f32.mrf.mxu1 }
 0x14e   : > { %v8576_v41 = vadd.f32 %v2675_v58, %v2198_v34  ;;  %v2202_v1 = vadd.f32 %v2047_v2, %v8374_v7 }
 0x14f   : > { %v7293_v25 = vpop.f32.mrf.mxu0  ;;  %v7259_v11 = vpop.f32.mrf.mxu1 }
 0x150   : > { %v8579_v57 = vadd.f32 %v7293_v25, %v2201_v30  ;;  %v2205_v28 = vadd.f32 %v7259_v11, %v8377_v60 }
 0x151   : > { %v2678_v40 = vpop.f32.mrf.mxu0  ;;  %v2050_v3 = vpop.f32.mrf.mxu1 }
 0x152   : > { %v8583_v59 = vadd.f32 %v2678_v40, %v2199_v54  ;;  %v2203_v44 = vadd.f32 %v2050_v3, %v8388_v38 }
 0x153   : > { %v7296_v27 = vpop.f32.mrf.mxu0  ;;  %7471 = vmatmul.mubr.msk.bf16.gmra.mxu0 %vm343_vm1, %v4751_v35  ;;  %v7262_v63 = vpop.f32.mrf.mxu1 }
 0x154   : > { %v8587_v47 = vadd.f32 %v7296_v27, %v2204_v61  ;;  %v2208_v7 = vadd.f32 %v7262_v63, %v8394_v18 }
 0x155   : > { %v2691_v42 = vpop.f32.mrf.mxu0  ;;  %v2063_v49 = vpop.f32.mrf.mxu1 }
 0x156   : > { %v8590_v34 = vadd.f32 %v2691_v42, %v2202_v1  ;;  %v2206_v60 = vadd.f32 %v2063_v49, %v8401_v4  ;;  %v10661_v42 = vld [vmem:[#allocation4_spill] sm:$0xff] }
 0x157   : > { %v7297_v43 = vpop.f32.mrf.mxu0  ;;  %v7263_v56 = vpop.f32.mrf.mxu1 }
 0x158   : > { %v8593_v14 = vadd.f32 %v7297_v43, %v2205_v28  ;;  %v2209_v38 = vadd.f32 %v7263_v56, %v8404_v45 }
 0x159   : > { %v2694_v5 = vpop.f32.mrf.mxu0  ;;  %v2066_v19 = vpop.f32.mrf.mxu1 }
 0x15a   : > { %v8596_v30 = vadd.f32 %v2694_v5, %v2203_v44  ;;  %v2207_v52 = vadd.f32 %v2066_v19, %v8416_v10  ;;  %v10660_v44 = vld [vmem:[#allocation3_spill] sm:$0xff] }
 0x15b   : > { %v7300_v21 = vpop.f32.mrf.mxu0  ;;  %v7266_v18 = vpop.f32.mrf.mxu1 }
 0x15c   : > { %v8599_v62 = vadd.f32 %v7300_v21, %v2208_v7  ;;  %v2212_v51 = vadd.f32 %v7266_v18, %v8421_v36 }
 0x15d   : > { %v2707_v54 = vpop.f32.mrf.mxu0  ;;  %v2079_v4 = vpop.f32.mrf.mxu1 }
 0x15e   : > { %v8602_v23 = vadd.f32 %v2707_v54, %v2206_v60  ;;  %v2210_v22 = vadd.f32 %v2079_v4, %v8427_v13 }
 0x15f   : > { %v7301_v8 = vpop.f32.mrf.mxu0  ;;  %v7267_v45 = vpop.f32.mrf.mxu1 }
 0x160   : > { %v8605_v61 = vadd.f32 %v7301_v8, %v2209_v38  ;;  %v2213_v58 = vadd.f32 %v7267_v45, %v8429_v53 }
 0x161   : > { %v2710_v2 = vpop.f32.mrf.mxu0  ;;  %v2082_v10 = vpop.f32.mrf.mxu1 }
 0x162   : > { %v8608_v1 = vadd.f32 %v2710_v2, %v2207_v52  ;;  %v2211_v25 = vadd.f32 %v2082_v10, %v8440_v33 }
 0x163   : > { %v7304_v11 = vpop.f32.mrf.mxu0  ;;  %v7270_v36 = vpop.f32.mrf.mxu1 }
 0x164   : > { %v8611_v35 = vadd.f32 %v7304_v11, %v2212_v51  ;;  %v2216_v28 = vadd.f32 %v7270_v36, %v8446_v20 }
 0x165   : > { %v2723_v40 = vpop.f32.mrf.mxu0  ;;  %v2095_v13 = vpop.f32.mrf.mxu1 }
 0x166   : > { %v8614_v3 = vadd.f32 %v2723_v40, %v2210_v22  ;;  %v2214_v27 = vadd.f32 %v2095_v13, %v10660_v44 }
 0x167   : > { %v7305_v63 = vpop.f32.mrf.mxu0  ;;  %v7271_v53 = vpop.f32.mrf.mxu1 }
 0x168   : > { %v8617_v7 = vadd.f32 %v7305_v63, %v2213_v58  ;;  %v2217_v49 = vadd.f32 %v7271_v53, %v10661_v42 }
 0x169   : > { %v2726_v60 = vpop.f32.mrf.mxu0  ;;  %v2098_v33 = vpop.f32.mrf.mxu1 }
 0x16a   : > { %v8620_v43 = vadd.f32 %v2726_v60, %v2211_v25  ;;  %v2215_v56 = vadd.f32 %v2098_v33, %v8469_v6 }
 0x16b   : > { %v7308_v38 = vpop.f32.mrf.mxu0  ;;  %v7274_v20 = vpop.f32.mrf.mxu1 }
 0x16c   : > { %v8623_v5 = vadd.f32 %v7308_v38, %v2216_v28  ;;  %v2220_v19 = vadd.f32 %v7274_v20, %v8473_v55  ;;  %v5310_v55 = vlaneseq }
 0x16d   : > { %v2739_v52 = vpop.f32.mrf.mxu0  ;;  %v2111_v21 = vpop.f32.mrf.mxu1 }
 0x16e   : > { %v8626_v18 = vadd.f32 %v2739_v52, %v2214_v27  ;;  %v2218_v51 = vadd.f32 %v2111_v21, %v8480_v50  ;;  %v8641_v44 = vshrl.u32 %v5310_v55, 7 }
 0x16f   : > { %v7309_v54 = vpop.f32.mrf.mxu0  ;;  %v7275_v4 = vpop.f32.mrf.mxu1 }
 0x170   : > { %v8629_v22 = vadd.f32 %v7309_v54, %v2217_v49  ;;  %v2221_v8 = vadd.f32 %v7275_v4, %v8484_v31  ;;  %v8650_v33 = vadd.s32 16, %v8641_v44 }
 0x171   : > { %v2742_v45 = vpop.f32.mrf.mxu0  ;;  %v2114_v6 = vpop.f32.mrf.mxu1 }
 0x172   : > { %v8632_v58 = vadd.f32 %v2742_v45, %v2215_v56  ;;  %v2219_v2 = vadd.f32 %v2114_v6, %v8494_v9  ;;  %v8668_v45 = vadd.s32 8, %v8641_v44 }
 0x173   : > { %v7312_v10 = vpop.f32.mrf.mxu0  ;;  %v7278_v25 = vpop.f32.mrf.mxu1 }
 0x174   : > { %v8635_v11 = vadd.f32 %v7312_v10, %v2220_v19  ;;  %v2224_v36 = vadd.f32 %v7278_v25, %v8500_v15  ;;  %v8678_v25 = vadd.s32 48, %v8641_v44 }
 0x175   : > { %v2755_v50 = vpop.f32.mrf.mxu0  ;;  %v2127_v28 = vpop.f32.mrf.mxu1 }
 0x176   : > { %v8638_v40 = vadd.f32 %v2755_v50, %v2218_v51  ;;  %v2222_v13 = vadd.f32 %v2127_v28, %v8507_v46  ;;  %v8659_v51 = vmul.u32.u64.low 3817748708, %v8650_v33  ;;  %v8660_v54 = vmul.u32.u64.high 3817748708, %v8650_v33, %v8659_v51 }
 0x177   : > { %v7313_v31 = vpop.f32.mrf.mxu0  ;;  %v7279_v27 = vpop.f32.mrf.mxu1 }
 0x178   : > { %v8643_v63 = vadd.f32 %v7313_v31, %v2221_v8  ;;  %v2225_v9 = vadd.f32 %v7279_v27, %v8510_v32 }
 0x179   : > { %v2758_v53 = vpop.f32.mrf.mxu0  ;;  %v2130_v42 = vpop.f32.mrf.mxu1 }
 0x17a   : > { %v8646_v49 = vadd.f32 %v2758_v53, %v2219_v2  ;;  %v2223_v15 = vadd.f32 %v2130_v42, %v8522_v24  ;;  %v8663_v24 = vadd.s32 24, %v8641_v44 }
 0x17b   : > { %v7316_v60 = vpop.f32.mrf.mxu0  ;;  %v7282_v56 = vpop.f32.mrf.mxu1 }
 0x17c   : > { %v8652_v46 = vadd.f32 %v7316_v60, %v2224_v36  ;;  %v2228_v38 = vadd.f32 %v7282_v56, %v8526_v48 }
 0x17d   : > { %v2771_v20 = vpop.f32.mrf.mxu0  ;;  %v2143_v19 = vpop.f32.mrf.mxu1 }
 0x17e   : > { %v8655_v52 = vadd.f32 %v2771_v20, %v2222_v13  ;;  %v2226_v32 = vadd.f32 %v2143_v19, %v8534_v16  ;;  %v8672_v2 = vmul.u32.u64.low 3817748708, %v8641_v44  ;;  %v8673_v16 = vmul.u32.u64.high 3817748708, %v8641_v44, %v8672_v2 }
 0x17f   : > { %v7317_v21 = vpop.f32.mrf.mxu0  ;;  %v7283_v4 = vpop.f32.mrf.mxu1  ;;  %v8682_v28 = vmul.u32.u64.low 3817748708, %v8663_v24  ;;  %v8683_v13 = vmul.u32.u64.high 3817748708, %v8663_v24, %v8682_v28 }
 0x180   : > { %v8665_v8 = vadd.f32 %v7317_v21, %v2225_v9  ;;  %v2229_v48 = vadd.f32 %v7283_v4, %v8538_v37  ;;  %v8688_v27 = vmul.u32.u64.low 3817748708, %v8668_v45  ;;  %v8689_v9 = vmul.u32.u64.high 3817748708, %v8668_v45, %v8688_v27 }
 0x181   : > { %v2774_v6 = vpop.f32.mrf.mxu0  ;;  %v2146_v10 = vpop.f32.mrf.mxu1  ;;  %v8715_v27 = vadd.s32 56, %v8641_v44 }
 0x182   : > { %v8675_v55 = vadd.f32 %v2774_v6, %v2223_v15  ;;  %v2227_v36 = vadd.f32 %v2146_v10, %v8546_v0  ;;  %v8695_v0 = vmul.u32.u64.low 3817748708, %v8678_v25  ;;  %v8696_v56 = vmul.u32.u64.high 3817748708, %v8678_v25, %v8695_v0 }
 0x183   : > { %v7320_v50 = vpop.f32.mrf.mxu0  ;;  %v7326_v37 = vpop.f32.mrf.mxu1  ;;  %v8707_v10 = vadd.s32 32, %v8641_v44 }
 0x184   : > { %v8685_v31 = vadd.f32 %v7320_v50, %v2228_v38  ;;  %v3355_v53 = vadd.f32 %v7326_v37, %v8551_v39  ;;  %v5375_v38 = vshrl.u32 %v8660_v54, 4  ;;  %v5353_v39 = vshrl.u32 %v8673_v16, 4 }
 0x185   : > { %v2787_v42 = vpop.f32.mrf.mxu0  ;;  %v3174_v60 = vpop.f32.mrf.mxu1  ;;  %v5386_v54 = vshrl.u32 %v8683_v13, 4 }
 0x186   : > { %v8692_v15 = vadd.f32 %v2787_v42, %v2226_v32  ;;  %v3353_v20 = vadd.f32 %v3174_v60, %v8557_v29  ;;  %v5376_v28 = vmul.u32 18, %v5375_v38  ;;  %v5354_v42 = vmul.u32 18, %v5353_v39 }
 0x187   : > { %v7321_v19 = vpop.f32.mrf.mxu0  ;;  %v7327_v51 = vpop.f32.mrf.mxu1 }
 0x188   : > { %v8700_v21 = vadd.f32 %v7321_v19, %v2229_v48  ;;  %v3356_v4 = vadd.f32 %v7327_v51, %v8560_v26  ;;  %v5364_v26 = vshrl.u32 %v8689_v9, 4  ;;  %v8727_v9 = vsub.s32 %v8650_v33, %v5376_v28 }
 0x189   : > { %v2790_v6 = vpop.f32.mrf.mxu0  ;;  %v3177_v2 = vpop.f32.mrf.mxu1  ;;  %v8722_v19 = vmul.u32.u64.low 3817748708, %v8707_v10  ;;  %v8723_v13 = vmul.u32.u64.high 3817748708, %v8707_v10, %v8722_v19  ;;  %v5387_v51 = vmul.u32 18, %v5386_v54  ;;  %v8742_v33 = vsub.s32 %v8641_v44, %v5354_v42 }
 0x18a   : > { %v8704_v32 = vadd.f32 %v2790_v6, %v2227_v36  ;;  %v3354_v50 = vadd.f32 %v3177_v2, %v8567_v17  ;;  %v5419_v17 = vshrl.u32 %v8696_v56, 4  ;;  %vm5745_vm8 = vcmp.ne.s32.totalorder %v8727_v9, 0 }
 0x18b   : > { %v7364_v29 = vpop.f32.mrf.mxu0  ;;  %v7330_v48 = vpop.f32.mrf.mxu1  ;;  %v8735_v56 = vmul.u32.u64.low 3817748708, %v8715_v27  ;;  %v8736_v2 = vmul.u32.u64.high 3817748708, %v8715_v27, %v8735_v56  ;;  %vm5781_vm9 = vcmp.lt.s32.totalorder %v8727_v9, 0  ;;  %vm5743_vm10 = vcmp.ne.s32.totalorder %v8742_v33, 0 }
 0x18c   : > { %10662 = vst [vmem:[#allocation3_spill] sm:$0xff] %v8704_v32  ;;  %v8711_v37 = vadd.f32 %v7364_v29, %v3355_v53  ;;  %v3359_v16 = vadd.f32 %v7330_v48, %v8571_v12  ;;  %v8730_v12 = vadd.s32 40, %v8641_v44  ;;  %v5420_v28 = vmul.u32 18, %v5419_v17  ;;  %vm8801_vm1 = vmand %vm5781_vm9, %vm5745_vm8 }
 0x18d   : > { %v3684_v36 = vpop.f32.mrf.mxu0  ;;  %v3190_v60 = vpop.f32.mrf.mxu1  ;;  %vm5779_vm11 = vcmp.lt.s32.totalorder %v8742_v33, 0  ;;  %v8777_v56 = vadd.s32 64, %v8641_v44 }
 0x18e   : > { %10663 = vst [vmem:[#allocation4_spill] sm:$0xff] %v8711_v37  ;;  %v8718_v0 = vadd.f32 %v3684_v36, %v3353_v20  ;;  %v3357_v53 = vadd.f32 %v3190_v60, %v8576_v41  ;;  %v5365_v20 = vmul.u32 18, %v5364_v26  ;;  %vm8816_vm2 = vmand %vm5779_vm11, %vm5743_vm10 }
 0x18f   : > { %v7365_v38 = vpop.f32.mrf.mxu0  ;;  %v7331_v6 = vpop.f32.mrf.mxu1  ;;  %v8749_v26 = vmul.u32.u64.low 3817748708, %v8730_v12  ;;  %v8750_v19 = vmul.u32.u64.high 3817748708, %v8730_v12, %v8749_v26 }
 0x190   : > { %10664 = vst [vmem:[#allocation5_spill] sm:$0xff] %v8718_v0  ;;  %v8732_v39 = vadd.f32 %v7365_v38, %v3356_v4  ;;  %v3360_v29 = vadd.f32 %v7331_v6, %v8579_v57  ;;  %v8746_v4 = vsub.s32 %v8663_v24, %v5387_v51  ;;  %v8764_v24 = vadd.s32 80, %v8641_v44 }
 0x191   : > { %v3687_v48 = vpop.f32.mrf.mxu0  ;;  %v3193_v41 = vpop.f32.mrf.mxu1 }
 0x192   : > { %10665 = vst [vmem:[#allocation6_spill] sm:$0xff] %v8732_v39  ;;  %v8739_v36 = vadd.f32 %v3687_v48, %v3354_v50  ;;  %v3358_v54 = vadd.f32 %v3193_v41, %v8583_v59  ;;  %v8756_v50 = vsub.s32 %v8668_v45, %v5365_v20  ;;  %v8761_v59 = vadd.s32 18, %v8727_v9 }
 0x193   : > { %v7368_v60 = vpop.f32.mrf.mxu0  ;;  %v7334_v38 = vpop.f32.mrf.mxu1  ;;  %v5397_v45 = vshrl.u32 %v8723_v13, 4  ;;  %vm5746_vm12 = vcmp.ne.s32.totalorder %v8746_v4, 0  ;;  %vm5782_vm13 = vcmp.lt.s32.totalorder %v8746_v4, 0 }
 0x194   : > { %10666 = vst [vmem:[#allocation7_spill] sm:$0xff] %v8739_v36  ;;  %v8752_v57 = vadd.f32 %v7368_v60, %v3359_v16  ;;  %v3363_v42 = vadd.f32 %v7334_v38, %v8587_v47  ;;  %v8770_v16 = vsub.s32 %v8678_v25, %v5420_v28  ;;  %vm5744_vm14 = vcmp.ne.s32.totalorder %v8756_v50, 0  ;;  %vm8832_vm4 = vmand %vm5782_vm13, %vm5746_vm12 }
 0x195   : > { %v3700_v17 = vpop.f32.mrf.mxu0  ;;  %v3206_v51 = vpop.f32.mrf.mxu1  ;;  %v5430_v25 = vshrl.u32 %v8736_v2, 4  ;;  %vm5780_vm15 = vcmp.lt.s32.totalorder %v8756_v50, 0  ;;  %v8787_v41 = vmul.u32.u64.low 3817748708, %v8764_v24  ;;  %v8788_v28 = vmul.u32.u64.high 3817748708, %v8764_v24, %v8787_v41 }
 0x196   : > { %10667 = vst [vmem:[#allocation8_spill] sm:$0xff] %v8752_v57  ;;  %v8766_v6 = vadd.f32 %v3700_v17, %v3357_v53  ;;  %10669 = vst [vmem:[#allocation10_spill] sm:$0xff] %v8770_v16  ;;  %v3361_v47 = vadd.f32 %v3206_v51, %v8590_v34  ;;  %vm5749_vm0 = vcmp.ne.s32.totalorder %v8770_v16, 0  ;;  %v8794_v38 = vadd.s32 88, %v8641_v44 }
 0x197   : > { %v7369_v20 = vpop.f32.mrf.mxu0  ;;  %v7335_v48 = vpop.f32.mrf.mxu1  ;;  %vm5785_vm3 = vcmp.lt.s32.totalorder %v8770_v16, 0  ;;  %vm8848_vm5 = vmand %vm5780_vm15, %vm5744_vm14 }
 0x198   : > { %10668 = vst [vmem:[#allocation9_spill] sm:$0xff] %v8766_v6  ;;  %v8779_v53 = vadd.f32 %v7369_v20, %v3360_v29  ;;  %v3364_v13 = vadd.f32 %v7335_v48, %v8593_v14  ;;  %v5398_v29 = vmul.u32 18, %v5397_v45  ;;  %vm8864_vm6 = vmand %vm5785_vm3, %vm5749_vm0 }
 0x199   : > { %v3703_v34 = vpop.f32.mrf.mxu0  ;;  %v3209_v60 = vpop.f32.mrf.mxu1  ;;  %v8807_v51 = vmul.u32.u64.low 3817748708, %v8777_v56  ;;  %v8808_v20 = vmul.u32.u64.high 3817748708, %v8777_v56, %v8807_v51 }
 0x19a   : > { %10670 = vst [vmem:[#allocation11_spill] sm:$0xff] %v8779_v53  ;;  %v8790_v26 = vadd.f32 %v3703_v34, %v3358_v54  ;;  %v3362_v2 = vadd.f32 %v3209_v60, %v8596_v30  ;;  %v5408_v54 = vshrl.u32 %v8750_v19, 4  ;;  %v5431_v34 = vmul.u32 18, %v5430_v25 }
 0x19b   : > { %v7372_v17 = vpop.f32.mrf.mxu0  ;;  %v7338_v45 = vpop.f32.mrf.mxu1  ;;  %v8822_v19 = vadd.s32 72, %v8641_v44  ;;  %v8837_v51 = vadd.s32 18, %v8746_v4  ;;  %v8840_v25 = vadd.s32 18, %v8756_v50 }
 0x19c   : > { %10671 = vst [vmem:[#allocation12_spill] sm:$0xff] %v8790_v26  ;;  %v8810_v48 = vadd.f32 %v7372_v17, %v3363_v42  ;;  %v3367_v41 = vadd.f32 %v7338_v45, %v8599_v62  ;;  %v8826_v42 = vadd.s32 18, %v8742_v33  ;;  %v8853_v26 = vadd.s32 18, %v8770_v16 }
 0x19d   : > { %v3716_v60 = vpop.f32.mrf.mxu0  ;;  %v8856_v53 = vmul.u32.u64.low 3817748708, %v8794_v38  ;;  %v8857_v57 = vmul.u32.u64.high 3817748708, %v8794_v38, %v8856_v53 }
 0x19e   : > { %10674 = vst [vmem:[#allocation13_spill] sm:$0xff] %v8810_v48  ;;  %v3222_v48 = vpop.f32.mrf.mxu1  ;;  %v8842_v62 = vadd.f32 %v3716_v60, %v3361_v47  ;;  %10682 = vst [vmem:[#allocation15_spill] sm:$0xff] %v8853_v26  ;;  %v10683_v47 = vmov 0  ;;  %v8869_v60 = vsub.s32 %v8707_v10, %v5398_v29  ;;  %v8874_v53 = vsub.s32 %v8715_v27, %v5431_v34 }
 0x19f   : > { %v3365_v6 = vadd.f32 %v3222_v48, %v8602_v23  ;;  %v7373_v36 = vpop.f32.mrf.mxu0  ;;  %v10684_v47 = vsel %vm8864_vm6, 4294967295, %v10683_v47  ;;  %v8877_v23 = vmul.u32.u64.low 3817748708, %v8822_v19  ;;  %v8878_v48 = vmul.u32.u64.high 3817748708, %v8822_v19, %v8877_v23 }
 0x1a0   : > { %10679 = vst [vmem:[#allocation14_spill] sm:$0xff] %v8842_v62  ;;  %10685 = vst [vmem:[#allocation16_spill] sm:$0xff] %v10684_v47  ;;  %v5409_v62 = vmul.u32 18, %v5408_v54  ;;  %v7339_v39 = vpop.f32.mrf.mxu1  ;;  %v8871_v0 = vadd.f32 %v7373_v36, %v3364_v13  ;;  %v5463_v27 = vshrl.u32 %v8788_v28, 4  ;;  %vm5747_vm7 = vcmp.ne.s32.totalorder %v8869_v60, 0 }
 0x1a1   : > { %10686 = vst [vmem:[#allocation17_spill] sm:$0xff] %v8869_v60  ;;  %10688 = vst [vmem:[#allocation19_spill] sm:$0xff] %v8874_v53  ;;  %v3368_v37 = vadd.f32 %v7339_v39, %v8605_v61  ;;  %v3719_v32 = vpop.f32.mrf.mxu0  ;;  %vm5783_vm8 = vcmp.lt.s32.totalorder %v8869_v60, 0  ;;  %v8914_v10 = vadd.s32 18, %v8869_v60  ;;  %vm5750_vm9 = vcmp.ne.s32.totalorder %v8874_v53, 0 }
 0x1a2   : > { %10687 = vst [vmem:[#allocation18_spill] sm:$0xff] %v8871_v0  ;;  %v3225_v13 = vpop.f32.mrf.mxu1  ;;  %v8890_v29 = vadd.f32 %v3719_v32, %v3362_v2  ;;  %v8907_v32 = vsub.s32 %v8730_v12, %v5409_v62  ;;  %v5441_v2 = vshrl.u32 %v8808_v20, 4  ;;  %vm5786_vm10 = vcmp.lt.s32.totalorder %v8874_v53, 0  ;;  %vm8940_vm13 = vmand %vm5783_vm8, %vm5747_vm7 }
 0x1a3   : > { %v3366_v28 = vadd.f32 %v3225_v13, %v8608_v1  ;;  %v7376_v34 = vpop.f32.mrf.mxu0  ;;  %10692 = vst [vmem:[#allocation23_spill] sm:$0xff] %v8914_v10  ;;  %v5464_v54 = vmul.u32 18, %v5463_v27  ;;  %v8920_v12 = vadd.s32 112, %v8641_v44  ;;  %v8929_v39 = vadd.s32 96, %v8641_v44  ;;  %vm8956_vm14 = vmand %vm5786_vm10, %vm5750_vm9 }
 0x1a4   : > { %10689 = vst [vmem:[#allocation20_spill] sm:$0xff] %v8890_v29  ;;  %10690 = vst [vmem:[#allocation21_spill] sm:$0xff] %v8907_v32  ;;  %v7342_v23 = vpop.f32.mrf.mxu1  ;;  %v8910_v61 = vadd.f32 %v7376_v34, %v3367_v41  ;;  %v8925_v41 = vadd.s32 18, %v8874_v53  ;;  %v5474_v34 = vshrl.u32 %v8857_v57, 4  ;;  %vm5748_vm11 = vcmp.ne.s32.totalorder %v8907_v32, 0 }
 0x1a5   : > { %v3371_v1 = vadd.f32 %v7342_v23, %v8611_v35  ;;  %v3732_v13 = vpop.f32.mrf.mxu0  ;;  %vm5784_vm12 = vcmp.lt.s32.totalorder %v8907_v32, 0  ;;  %v5442_v27 = vmul.u32 18, %v5441_v2  ;;  %v10696_v57 = vmov 0 }
 0x1a6   : > { %10691 = vst [vmem:[#allocation22_spill] sm:$0xff] %v8910_v61  ;;  %v3238_v20 = vpop.f32.mrf.mxu1  ;;  %v8922_v62 = vadd.f32 %v3732_v13, %v3365_v6  ;;  %10694 = vst [vmem:[#allocation25_spill] sm:$0xff] %v8925_v41  ;;  %v10697_v57 = vsel %vm8940_vm13, 4294967295, %v10696_v57  ;;  %v8945_v6 = vadd.s32 18, %v8907_v32  ;;  %v8949_v13 = vadd.s32 120, %v8641_v44 }
 0x1a7   : > { %v3369_v35 = vadd.f32 %v3238_v20, %v8614_v3  ;;  %v7377_v23 = vpop.f32.mrf.mxu0  ;;  %v5452_v3 = vshrl.u32 %v8878_v48, 4  ;;  %v10699_v20 = vmov 0  ;;  %vm8973_vm15 = vmand %vm5784_vm12, %vm5748_vm11 }
 0x1a8   : > { %10693 = vst [vmem:[#allocation24_spill] sm:$0xff] %v8922_v62  ;;  %v7343_v36 = vpop.f32.mrf.mxu1  ;;  %v8934_v61 = vadd.f32 %v7377_v23, %v3368_v37  ;;  %10698 = vst [vmem:[#allocation27_spill] sm:$0xff] %v8945_v6  ;;  %v10700_v20 = vsel %vm8956_vm14, 4294967295, %v10699_v20  ;;  %v8961_v23 = vsub.s32 %v8764_v24, %v5464_v54 }
 0x1a9   : > { %v3372_v2 = vadd.f32 %v7343_v36, %v8617_v7  ;;  %v3735_v37 = vpop.f32.mrf.mxu0  ;;  %10701 = vst [vmem:[#allocation28_spill] sm:$0xff] %v10700_v20  ;;  %v10703_v7 = vmov 0  ;;  %v5475_v36 = vmul.u32 18, %v5474_v34  ;;  %v5453_v26 = vmul.u32 18, %v5452_v3 }
 0x1aa   : > { %10695 = vst [vmem:[#allocation26_spill] sm:$0xff] %v8934_v61  ;;  %v8964_v61 = vmul.u32.u64.low 3817748708, %v8920_v12  ;;  %v8965_v48 = vmul.u32.u64.high 3817748708, %v8920_v12, %v8964_v61  ;;  %v3241_v62 = vpop.f32.mrf.mxu1  ;;  %v8967_v29 = vadd.f32 %v3735_v37, %v3366_v28  ;;  %v10704_v7 = vsel %vm8973_vm15, 4294967295, %v10703_v7 }
 0x1ab   : > { %10705 = vst [vmem:[#allocation30_spill] sm:$0xff] %v10704_v7  ;;  %v8978_v0 = vmul.u32.u64.low 3817748708, %v8929_v39  ;;  %v8979_v24 = vmul.u32.u64.high 3817748708, %v8929_v39, %v8978_v0  ;;  %v3370_v54 = vadd.f32 %v3241_v62, %v8620_v43  ;;  %v7380_v16 = vpop.f32.mrf.mxu0  ;;  %v8987_v28 = vsub.s32 %v8777_v56, %v5442_v27 }
 0x1ac   : > { %10702 = vst [vmem:[#allocation29_spill] sm:$0xff] %v8967_v29  ;;  %v8990_v37 = vadd.s32 104, %v8641_v44  ;;  %v7346_v29 = vpop.f32.mrf.mxu1  ;;  %v8992_v34 = vadd.f32 %v7380_v16, %v3371_v1  ;;  %v8995_v0 = vmul.u32.u64.low 3817748708, %v8949_v13  ;;  %v8996_v47 = vmul.u32.u64.high 3817748708, %v8949_v13, %v8995_v0 }
 0x1ad   : > { %v3375_v43 = vadd.f32 %v7346_v29, %v8623_v5  ;;  %v3748_v62 = vpop.f32.mrf.mxu0  ;;  %vm5753_vm0 = vcmp.ne.s32.totalorder %v8961_v23, 0  ;;  %vm5789_vm3 = vcmp.lt.s32.totalorder %v8961_v23, 0  ;;  %v9012_v5 = vadd.s32 18, %v8961_v23 }
 0x1ae   : > { %10706 = vst [vmem:[#allocation31_spill] sm:$0xff] %v8992_v34  ;;  %v3254_v16 = vpop.f32.mrf.mxu1  ;;  %v9008_v1 = vadd.f32 %v3748_v62, %v3369_v35  ;;  %v9015_v29 = vsub.s32 %v8794_v38, %v5475_v36  ;;  %v9019_v56 = vmul.u32.u64.low 3817748708, %v8990_v37  ;;  %v9020_v61 = vmul.u32.u64.high 3817748708, %v8990_v37, %v9019_v56  ;;  %vm9076_vm11 = vmand %vm5789_vm3, %vm5753_vm0 }
 0x1af   : > { %v3373_v3 = vadd.f32 %v3254_v16, %v8626_v18  ;;  %v7381_v0 = vpop.f32.mrf.mxu0  ;;  %v9023_v27 = vadd.s32 144, %v8641_v44  ;;  %vm5751_vm7 = vcmp.ne.s32.totalorder %v8987_v28, 0  ;;  %vm5787_vm8 = vcmp.lt.s32.totalorder %v8987_v28, 0 }
 0x1b0   : > { %10707 = vst [vmem:[#allocation32_spill] sm:$0xff] %v9008_v1  ;;  %10708 = vst [vmem:[#allocation33_spill] sm:$0xff] %v9015_v29  ;;  %v7347_v35 = vpop.f32.mrf.mxu1  ;;  %v9025_v62 = vadd.f32 %v7381_v0, %v3372_v2  ;;  %v9030_v38 = vsub.s32 %v8822_v19, %v5453_v26  ;;  %v9034_v16 = vadd.s32 18, %v8987_v28  ;;  %v5507_v56 = vshrl.u32 %v8965_v48, 4 }
 0x1b1   : > { %v3376_v18 = vadd.f32 %v7347_v35, %v8629_v22  ;;  %v3751_v36 = vpop.f32.mrf.mxu0  ;;  %v9038_v34 = vadd.s32 128, %v8641_v44  ;;  %vm5754_vm9 = vcmp.ne.s32.totalorder %v9015_v29, 0  ;;  %vm5790_vm10 = vcmp.lt.s32.totalorder %v9015_v29, 0  ;;  %vm9091_vm12 = vmand %vm5787_vm8, %vm5751_vm7 }
 0x1b2   : > { %10709 = vst [vmem:[#allocation34_spill] sm:$0xff] %v9025_v62  ;;  %v3257_v2 = vpop.f32.mrf.mxu1  ;;  %v9040_v0 = vadd.f32 %v3751_v36, %v3370_v54  ;;  %v5485_v26 = vshrl.u32 %v8979_v24, 4  ;;  %v9047_v35 = vmul.u32.u64.low 3817748708, %v9023_v27  ;;  %v9048_v62 = vmul.u32.u64.high 3817748708, %v9023_v27, %v9047_v35  ;;  %vm9104_vm0 = vmand %vm5790_vm10, %vm5754_vm9 }
 0x1b3   : > { %v3374_v22 = vadd.f32 %v3257_v2, %v8632_v58  ;;  %v7384_v19 = vpop.f32.mrf.mxu0  ;;  %v9051_v48 = vadd.s32 152, %v8641_v44  ;;  %v5518_v54 = vshrl.u32 %v8996_v47, 4  ;;  %v9058_v36 = vadd.s32 136, %v8641_v44 }
 0x1b4   : > { %10710 = vst [vmem:[#allocation35_spill] sm:$0xff] %v9040_v0  ;;  %v7350_v1 = vpop.f32.mrf.mxu1  ;;  %v9053_v53 = vadd.f32 %v7384_v19, %v3375_v43  ;;  %v5508_v2 = vmul.u32 18, %v5507_v56  ;;  %v9062_v0 = vmul.u32.u64.low 3817748708, %v9038_v34  ;;  %v9063_v35 = vmul.u32.u64.high 3817748708, %v9038_v34, %v9062_v0 }
 0x1b5   : > { %v3379_v58 = vadd.f32 %v7350_v1, %v8635_v11  ;;  %v3764_v24 = vpop.f32.mrf.mxu0  ;;  %v5486_v43 = vmul.u32 18, %v5485_v26  ;;  %v9069_v19 = vadd.s32 176, %v8641_v44  ;;  %v10713_v11 = vmov 0 }
 0x1b6   : > { %10711 = vst [vmem:[#allocation36_spill] sm:$0xff] %v9053_v53  ;;  %v3270_v41 = vpop.f32.mrf.mxu1  ;;  %v9065_v20 = vadd.f32 %v3764_v24, %v3373_v3  ;;  %v10714_v11 = vsel %vm9076_vm11, 4294967295, %v10713_v11  ;;  %v5496_v1 = vshrl.u32 %v9020_v61, 4  ;;  %vm10724_vm3 = vcmp.ne.s32.totalorder %v9030_v38, 0 }
 0x1b7   : > { %v3377_v47 = vadd.f32 %v3270_v41, %v8638_v40  ;;  %v7385_v53 = vpop.f32.mrf.mxu0  ;;  %v9082_v3 = vmul.u32.u64.low 3817748708, %v9051_v48  ;;  %v9083_v56 = vmul.u32.u64.high 3817748708, %v9051_v48, %v9082_v3  ;;  %v10716_v40 = vmov 0 }
 0x1b8   : > { %10712 = vst [vmem:[#allocation37_spill] sm:$0xff] %v9065_v20  ;;  %v7351_v0 = vpop.f32.mrf.mxu1  ;;  %v9085_v26 = vadd.f32 %v7385_v53, %v3376_v18  ;;  %v10717_v40 = vsel %vm9091_vm12, 4294967295, %v10716_v40  ;;  %v5519_v41 = vmul.u32 18, %v5518_v54  ;;  %v10718_v53 = vmov 0 }
 0x1b9   : > { %v9096_v24 = vmul.u32.u64.low 3817748708, %v9058_v36  ;;  %v9097_v20 = vmul.u32.u64.high 3817748708, %v9058_v36, %v9096_v24  ;;  %v3380_v61 = vadd.f32 %v7351_v0, %v8643_v63  ;;  %v3767_v32 = vpop.f32.mrf.mxu0  ;;  %v10719_v53 = vsel %vm9104_vm0, 4294967295, %v10718_v53 }
 0x1ba   : > { %10715 = vst [vmem:[#allocation38_spill] sm:$0xff] %v9085_v26  ;;  %10720 = vst [vmem:[#allocation39_spill] sm:$0xff] %v10719_v53  ;;  %v9109_v18 = vadd.s32 18, %v9015_v29  ;;  %v9112_v54 = vadd.s32 18, %v9030_v38  ;;  %v9115_v3 = vsub.s32 %v8920_v12, %v5508_v2  ;;  %v3273_v24 = vpop.f32.mrf.mxu1  ;;  %v9117_v63 = vadd.f32 %v3767_v32, %v3374_v22 }
 0x1bb   : > { %vm10725_vm7 = vcmp.lt.s32.totalorder %v9030_v38, 0  ;;  %v10726_v0 = vmov 0  ;;  %v9128_v26 = vsub.s32 %v8929_v39, %v5486_v43  ;;  %v3378_v12 = vadd.f32 %v3273_v24, %v8646_v49  ;;  %v7388_v2 = vpop.f32.mrf.mxu0 }
 0x1bc   : > { %10721 = vst [vmem:[#allocation40_spill] sm:$0xff] %v9109_v18  ;;  %10722 = vst [vmem:[#allocation41_spill] sm:$0xff] %v9115_v3  ;;  %v9131_v6 = vmul.u32.u64.low 3817748708, %v9069_v19  ;;  %v9132_v7 = vmul.u32.u64.high 3817748708, %v9069_v19, %v9131_v6  ;;  %v5497_v22 = vmul.u32 18, %v5496_v1  ;;  %v7354_v60 = vpop.f32.mrf.mxu1  ;;  %v9140_v10 = vadd.f32 %v7388_v2, %v3379_v58 }
 0x1bd   : > { %10723 = vst [vmem:[#allocation42_spill] sm:$0xff] %v9117_v63  ;;  %vm9123_vm8 = vmand %vm10725_vm7, %vm10724_vm3  ;;  %v5551_v63 = vshrl.u32 %v9048_v62, 4  ;;  %v9147_v6 = vsub.s32 %v8949_v13, %v5519_v41  ;;  %v9150_v49 = vadd.s32 160, %v8641_v44  ;;  %v3383_v43 = vadd.f32 %v7354_v60, %v8652_v46  ;;  %v3780_v24 = vpop.f32.mrf.mxu0 }
 0x1be   : > { %v10727_v0 = vsel %vm9123_vm8, 4294967295, %v10726_v0  ;;  %10728 = vst [vmem:[#allocation43_spill] sm:$0xff] %v9128_v26  ;;  %10729 = vst [vmem:[#allocation44_spill] sm:$0xff] %v9140_v10  ;;  %v5529_v1 = vshrl.u32 %v9063_v35, 4  ;;  %v3286_v13 = vpop.f32.mrf.mxu1  ;;  %v9162_v41 = vadd.f32 %v3780_v24, %v3377_v47  ;;  %vm5757_vm9 = vcmp.ne.s32.totalorder %v9115_v3, 0 }
 0x1bf   : > { %v9167_v46 = vadd.s32 18, %v9115_v3  ;;  %v9170_v60 = vadd.s32 18, %v9128_v26  ;;  %v9173_v2 = vadd.s32 184, %v8641_v44  ;;  %v3381_v62 = vadd.f32 %v3286_v13, %v8655_v52  ;;  %v7389_v32 = vpop.f32.mrf.mxu0 }
 0x1c0   : > { %10730 = vst [vmem:[#allocation45_spill] sm:$0xff] %v9162_v41  ;;  %vm5755_vm3 = vcmp.ne.s32.totalorder %v9128_v26, 0  ;;  %v9179_v35 = vsub.s32 %v8990_v37, %v5497_v22  ;;  %v5552_v47 = vmul.u32 18, %v5551_v63  ;;  %v5562_v24 = vshrl.u32 %v9083_v56, 4  ;;  %v7355_v58 = vpop.f32.mrf.mxu1 }
 0x1c1   : > { %10731 = vst [vmem:[#allocation46_spill] sm:$0xff] %v9167_v46  ;;  %10732 = vst [vmem:[#allocation47_spill] sm:$0xff] %v9170_v60  ;;  %v9182_v39 = vadd.f32 %v7389_v32, %v3380_v61  ;;  %v5540_v10 = vshrl.u32 %v9097_v20, 4  ;;  %v9187_v52 = vmul.u32.u64.low 3817748708, %v9150_v49  ;;  %v9188_v13 = vmul.u32.u64.high 3817748708, %v9150_v49, %v9187_v52  ;;  %v3783_v29 = vpop.f32.mrf.mxu0 }
 0x1c2   : > { %v3384_v41 = vadd.f32 %v7355_v58, %v8665_v8  ;;  %v5530_v37 = vmul.u32 18, %v5529_v1  ;;  %v9193_v63 = vadd.s32 168, %v8641_v44  ;;  %v3289_v56 = vpop.f32.mrf.mxu1  ;;  %v9195_v61 = vadd.f32 %v3783_v29, %v3378_v12 }
 0x1c3   : > { %10733 = vst [vmem:[#allocation48_spill] sm:$0xff] %v9182_v39  ;;  %v5595_v32 = vshrl.u32 %v9132_v7, 4  ;;  %v9199_v20 = vmul.u32.u64.low 3817748708, %v9173_v2  ;;  %v9200_v22 = vmul.u32.u64.high 3817748708, %v9173_v2, %v9199_v20  ;;  %v3382_v52 = vadd.f32 %v3289_v56, %v8675_v55  ;;  %v7392_v39 = vpop.f32.mrf.mxu0 }
 0x1c4   : > { %10734 = vst [vmem:[#allocation49_spill] sm:$0xff] %v9195_v61  ;;  %v9204_v8 = vadd.s32 18, %v9147_v6  ;;  %v9207_v58 = vsub.s32 %v9023_v27, %v5552_v47  ;;  %v5563_v1 = vmul.u32 18, %v5562_v24  ;;  %v7358_v18 = vpop.f32.mrf.mxu1  ;;  %v9209_v53 = vadd.f32 %v7392_v39, %v3383_v43 }
 0x1c5   : > { %v5541_v7 = vmul.u32 18, %v5540_v10  ;;  %v3387_v29 = vadd.f32 %v7358_v18, %v8685_v31  ;;  %v3796_v12 = vpop.f32.mrf.mxu0  ;;  %v9215_v55 = vmul.u32.u64.low 3817748708, %v9193_v63  ;;  %v9216_v56 = vmul.u32.u64.high 3817748708, %v9193_v63, %v9215_v55 }
 0x1c6   : > { %10735 = vst [vmem:[#allocation50_spill] sm:$0xff] %v9207_v58  ;;  %10736 = vst [vmem:[#allocation51_spill] sm:$0xff] %v9209_v53  ;;  %v9219_v20 = vadd.s32 208, %v8641_v44  ;;  %v3302_v27 = vpop.f32.mrf.mxu1  ;;  %v9221_v47 = vadd.f32 %v3796_v12, %v3381_v62  ;;  %v9224_v39 = vadd.s32 18, %v9179_v35  ;;  %v9227_v43 = vsub.s32 %v9038_v34, %v5530_v37 }
 0x1c7   : > { %v5596_v10 = vmul.u32 18, %v5595_v32  ;;  %v3385_v31 = vadd.f32 %v3302_v27, %v8692_v15  ;;  %v7393_v18 = vpop.f32.mrf.mxu0  ;;  %v9233_v24 = vsub.s32 %v9051_v48, %v5563_v1  ;;  %v9238_v12 = vadd.s32 18, %v9207_v58 }
 0x1c8   : > { %10737 = vst [vmem:[#allocation52_spill] sm:$0xff] %v9221_v47  ;;  %v7359_v55 = vpop.f32.mrf.mxu1  ;;  %v9235_v62 = vadd.f32 %v7393_v18, %v3384_v41  ;;  %v9241_v34 = vsub.s32 %v9058_v36, %v5541_v7  ;;  %v5573_v37 = vshrl.u32 %v9188_v13, 4  ;;  %vm10742_vm7 = vcmp.lt.s32.totalorder %v9115_v3, 0 }
 0x1c9   : > { %10738 = vst [vmem:[#allocation53_spill] sm:$0xff] %v9233_v24  ;;  %10740 = vst [vmem:[#allocation55_spill] sm:$0xff] %v9238_v12  ;;  %v3388_v15 = vadd.f32 %v7359_v55, %v8700_v21  ;;  %v3799_v32 = vpop.f32.mrf.mxu0  ;;  %v10743_v48 = vmov 0  ;;  %v9254_v41 = vmul.u32.u64.low 3817748708, %v9219_v20  ;;  %v9255_v1 = vmul.u32.u64.high 3817748708, %v9219_v20, %v9254_v41  ;;  %v10752_v55 = vld [vmem:[#allocation3_spill] sm:$0xff] }
 0x1ca   : > { %10739 = vst [vmem:[#allocation54_spill] sm:$0xff] %v9235_v62  ;;  %10741 = vst [vmem:[#allocation56_spill] sm:$0xff] %v9241_v34  ;;  %v9258_v36 = vadd.s32 192, %v8641_v44  ;;  %v3305_v7 = vpop.f32.mrf.mxu1  ;;  %v9260_v13 = vadd.f32 %v3799_v32, %v3382_v52  ;;  %vm10747_vm0 = vcmp.lt.s32.totalorder %v9128_v26, 0  ;;  %v10748_v21 = vmov 0 }
 0x1cb   : > { %vm9249_vm10 = vmand %vm10742_vm7, %vm5757_vm9  ;;  %v9272_v27 = vsub.s32 %v9069_v19, %v5596_v10  ;;  %v5606_v18 = vshrl.u32 %v9200_v22, 4  ;;  %v3386_v41 = vadd.f32 %v3305_v7, %v10752_v55  ;;  %v7396_v62 = vpop.f32.mrf.mxu0  ;;  %vm10753_vm7 = vcmp.ne.s32.totalorder %v9147_v6, 0 }
 0x1cc   : > { %v10744_v48 = vsel %vm9249_vm10, 4294967295, %v10743_v48  ;;  %10746 = vst [vmem:[#allocation58_spill] sm:$0xff] %v9260_v13  ;;  %vm9266_vm11 = vmand %vm10747_vm0, %vm5755_vm3  ;;  %vm10754_vm8 = vcmp.lt.s32.totalorder %v9147_v6, 0  ;;  %v10755_v52 = vmov 0  ;;  %v9286_v32 = vadd.s32 18, %v9227_v43  ;;  %v7402_v22 = vpop.f32.mrf.mxu1 }
 0x1cd   : > { %10745 = vst [vmem:[#allocation57_spill] sm:$0xff] %v10744_v48  ;;  %v10749_v21 = vsel %vm9266_vm11, 4294967295, %v10748_v21  ;;  %10751 = vst [vmem:[#allocation60_spill] sm:$0xff] %v9272_v27  ;;  %v9289_v19 = vadd.f32 %v7396_v62, %v3387_v29  ;;  %vm10758_vm9 = vcmp.ne.s32.totalorder %v9179_v35, 0  ;;  %vm10759_vm14 = vcmp.lt.s32.totalorder %v9179_v35, 0  ;;  %v3812_v55 = vpop.f32.mrf.mxu0 }
 0x1ce   : > { %10750 = vst [vmem:[#allocation59_spill] sm:$0xff] %v10749_v21  ;;  %vm9280_vm12 = vmand %vm10754_vm8, %vm10753_vm7  ;;  %vm5798_vm8 = vcmp.lt.s32.totalorder %v9233_v24, 0  ;;  %v5574_v7 = vmul.u32 18, %v5573_v37  ;;  %vm10762_vm0 = vcmp.ne.s32.totalorder %v9207_v58, 0  ;;  %vm10763_vm3 = vcmp.lt.s32.totalorder %v9207_v58, 0  ;;  %v4332_v37 = vpop.f32.mrf.mxu1  ;;  %v10835_v58 = vld [vmem:[#allocation9_spill] sm:$0xff] }
 0x1cf   : > { %v10756_v52 = vsel %vm9280_vm12, 4294967295, %v10755_v52  ;;  %10757 = vst [vmem:[#allocation3_spill] sm:$0xff] %v9289_v19  ;;  %vm9295_vm6 = vmand %vm10759_vm14, %vm10758_vm9  ;;  %v10764_v29 = vmov 0  ;;  %vm5796_vm13 = vcmp.lt.s32.totalorder %v9241_v34, 0  ;;  %v5584_v62 = vshrl.u32 %v9216_v56, 4  ;;  %v7397_v61 = vpop.f32.mrf.mxu0 }
 0x1d0   : > { %vm9305_vm15 = vmand %vm10763_vm3, %vm10762_vm0  ;;  %v9312_v19 = vmul.u32.u64.low 3817748708, %v9258_v36  ;;  %v9313_v13 = vmul.u32.u64.high 3817748708, %v9258_v36, %v9312_v19  ;;  %v9315_v53 = vadd.f32 %v3812_v55, %v3385_v31  ;;  %vm10768_vm14 = vcmp.ne.s32.totalorder %v9227_v43, 0  ;;  %v7403_v3 = vpop.f32.mrf.mxu1 }
 0x1d1   : > { %v10765_v29 = vsel %vm9305_vm15, 4294967295, %v10764_v29  ;;  %vm10769_vm9 = vcmp.lt.s32.totalorder %v9227_v43, 0  ;;  %v10770_v47 = vmov 0  ;;  %v5607_v56 = vmul.u32 18, %v5606_v18 }
 0x1d2   : > { %10766 = vst [vmem:[#allocation61_spill] sm:$0xff] %v10765_v29  ;;  %10767 = vst [vmem:[#allocation62_spill] sm:$0xff] %v9315_v53  ;;  %v10773_v55 = vmov 0  ;;  %v9344_v18 = vadd.s32 18, %v9233_v24  ;;  %v9347_v53 = vadd.s32 216, %v8641_v44  ;;  %v9349_v31 = vadd.f32 %v7397_v61, %v3388_v15  ;;  %v3815_v61 = vpop.f32.mrf.mxu0  ;;  %v10836_v29 = vld [vmem:[#allocation28_spill] sm:$0xff] }
 0x1d3   : > { %vm9321_vm7 = vmand %vm10769_vm9, %vm10768_vm14  ;;  %vm10772_vm14 = vcmp.ne.s32.totalorder %v9233_v24, 0  ;;  %vm10778_vm3 = vcmp.ne.s32.totalorder %v9241_v34, 0  ;;  %v10779_v19 = vmov 0  ;;  %v9360_v46 = vadd.s32 18, %v9241_v34  ;;  %v10809_v24 = vld [vmem:[#allocation17_spill] sm:$0xff] }
 0x1d4   : > { %v10771_v47 = vsel %vm9321_vm7, 4294967295, %v10770_v47  ;;  %vm9339_vm9 = vmand %vm5798_vm8, %vm10772_vm14  ;;  %10776 = vst [vmem:[#allocation64_spill] sm:$0xff] %v9344_v18  ;;  %v9363_v48 = vadd.s32 18, %v9272_v27  ;;  %v9366_v26 = vsub.s32 %v9150_v49, %v5574_v7  ;;  %v10782_v15 = vsel %vm8816_vm2, %v8826_v42, %v8742_v33  ;;  %v4335_v49 = vpop.f32.mrf.mxu1  ;;  %v10804_v33 = vld [vmem:[#allocation4_spill] sm:$0xff]  ;;  %v10838_v34 = vld [vmem:[#allocation25_spill] sm:$0xff] }
 0x1d5   : > { %v10774_v55 = vsel %vm9339_vm9, 4294967295, %v10773_v55  ;;  %10777 = vst [vmem:[#allocation65_spill] sm:$0xff] %v9349_v31  ;;  %vm9355_vm0 = vmand %vm5796_vm13, %vm10778_vm3  ;;  %vm9373_vm8 = vcmp.lt.s32.totalorder %v10782_v15, 16  ;;  %v10783_v31 = vmov 0  ;;  %v10786_v60 = vsel %vm8848_vm5, %v8840_v25, %v8756_v50 }
 0x1d6   : > { %10775 = vst [vmem:[#allocation63_spill] sm:$0xff] %v10774_v55  ;;  %v10780_v19 = vsel %vm9355_vm0, 4294967295, %v10779_v19  ;;  %10781 = vst [vmem:[#allocation66_spill] sm:$0xff] %v9363_v48  ;;  %v10784_v31 = vsel %vm9373_vm8, 4294967295, %v10783_v31  ;;  %vm9382_vm13 = vcmp.lt.s32.totalorder %v10786_v60, 16  ;;  %v10787_v21 = vmov 0  ;;  %v7406_v14 = vpop.f32.mrf.mxu1 }
 0x1d7   : > { %10785 = vst [vmem:[#allocation67_spill] sm:$0xff] %v10784_v31  ;;  %v10788_v21 = vsel %vm9382_vm13, 4294967295, %v10787_v21  ;;  %vm10790_vm2 = vcmp.ne.s32.totalorder %v9272_v27, 0  ;;  %vm10791_vm3 = vcmp.lt.s32.totalorder %v9272_v27, 0  ;;  %v10792_v50 = vmov 0  ;;  %v10805_v27 = vld [vmem:[#allocation5_spill] sm:$0xff] }
 0x1d8   : > { %10789 = vst [vmem:[#allocation68_spill] sm:$0xff] %v10788_v21  ;;  %vm9398_vm14 = vmand %vm10791_vm3, %vm10790_vm2  ;;  %v5585_v42 = vmul.u32 18, %v5584_v62  ;;  %v5639_v25 = vshrl.u32 %v9255_v1, 4  ;;  %v9403_v45 = vadd.f32 %v3815_v61, %v3386_v41  ;;  %v9414_v15 = vsub.s32 %v9173_v2, %v5607_v56  ;;  %v7440_v62 = vpop.f32.mrf.mxu0  ;;  %v10806_v48 = vld [vmem:[#allocation6_spill] sm:$0xff] }
 0x1d9   : > { %v10793_v50 = vsel %vm9398_vm14, 4294967295, %v10792_v50  ;;  %v10796_v1 = vsel %vm8801_vm1, %v8761_v59, %v8727_v9  ;;  %v10797_v41 = vmov 0  ;;  %v9434_v2 = vadd.s32 200, %v8641_v44 }
 0x1da   : > { %10794 = vst [vmem:[#allocation69_spill] sm:$0xff] %v10793_v50  ;;  %10795 = vst [vmem:[#allocation70_spill] sm:$0xff] %v9403_v45  ;;  %vm9421_vm5 = vcmp.lt.s32.totalorder %v10796_v1, 16  ;;  %v9430_v60 = vmul.u32.u64.low 3817748708, %v9347_v53  ;;  %v9431_v7 = vmul.u32.u64.high 3817748708, %v9347_v53, %v9430_v60  ;;  %v4843_v56 = vpop.f32.mrf.mxu0  ;;  %v10801_v1 = vmov 0 }
 0x1db   : > { %v10798_v41 = vsel %vm9421_vm5, 4294967295, %v10797_v41  ;;  %v10800_v60 = vsel %vm8832_vm4, %v8837_v51, %v8746_v4  ;;  %v9457_v61 = vadd.s32 18, %v9366_v26  ;;  %v9460_v59 = vsub.s32 %v9193_v63, %v5585_v42  ;;  %v4348_v4 = vpop.f32.mrf.mxu1  ;;  %v10818_v42 = vld [vmem:[#allocation30_spill] sm:$0xff] }
 0x1dc   : > { %10799 = vst [vmem:[#allocation71_spill] sm:$0xff] %v10798_v41  ;;  %vm9452_vm3 = vcmp.lt.s32.totalorder %v10800_v60, 16  ;;  %v5640_v9 = vmul.u32 18, %v5639_v25  ;;  %v5617_v30 = vshrl.u32 %v9313_v13, 4  ;;  %v4513_v45 = vadd.f32 %v7402_v22, %v10804_v33  ;;  %v7441_v51 = vpop.f32.mrf.mxu0  ;;  %v10808_v60 = vld [vmem:[#allocation23_spill] sm:$0xff] }
 0x1dd   : > { %v10802_v1 = vsel %vm9452_vm3, 4294967295, %v10801_v1  ;;  %v4511_v17 = vadd.f32 %v4332_v37, %v10805_v27  ;;  %v4514_v50 = vadd.f32 %v7403_v3, %v10806_v48  ;;  %vm10807_vm2 = vnez %v10697_v57  ;;  %v10814_v48 = vld [vmem:[#allocation7_spill] sm:$0xff] }
 0x1de   : > { %10803 = vst [vmem:[#allocation72_spill] sm:$0xff] %v10802_v1  ;;  %v10810_v18 = vsel %vm10807_vm2, %v10808_v60, %v10809_v24  ;;  %v10811_v63 = vmov 0  ;;  %v9478_v13 = vmul.u32.u64.low 3817748708, %v9434_v2  ;;  %v9479_v27 = vmul.u32.u64.high 3817748708, %v9434_v2, %v9478_v13  ;;  %v7407_v24 = vpop.f32.mrf.mxu1  ;;  %v4846_v33 = vpop.f32.mrf.mxu0  ;;  %v10820_v25 = vld [vmem:[#allocation27_spill] sm:$0xff]  ;;  %v10821_v60 = vld [vmem:[#allocation21_spill] sm:$0xff] }
 0x1df   : > { %vm9472_vm1 = vcmp.lt.s32.totalorder %v10810_v18, 16  ;;  %v9482_v3 = vadd.s32 240, %v8641_v44  ;;  %v4512_v22 = vadd.f32 %v4335_v49, %v10814_v48  ;;  %v9485_v37 = vadd.f32 %v7440_v62, %v4513_v45 }
 0x1e0   : > { %v10812_v63 = vsel %vm9472_vm1, 4294967295, %v10811_v63  ;;  %v9487_v57 = vadd.f32 %v4843_v56, %v4511_v17  ;;  %v9489_v18 = vadd.f32 %v7441_v51, %v4514_v50  ;;  %vm10819_vm2 = vnez %v10818_v42  ;;  %v4351_v17 = vpop.f32.mrf.mxu1  ;;  %v7444_v42 = vpop.f32.mrf.mxu0 }
 0x1e1   : > { %10813 = vst [vmem:[#allocation4_spill] sm:$0xff] %v10812_v63  ;;  %10815 = vst [vmem:[#allocation5_spill] sm:$0xff] %v9485_v37  ;;  %v10822_v13 = vsel %vm10819_vm2, %v10820_v25, %v10821_v60  ;;  %v10823_v49 = vmov 0  ;;  %v9506_v45 = vadd.s32 18, %v9414_v15  ;;  %v9510_v50 = vsub.s32 %v9219_v20, %v5640_v9  ;;  %v10828_v25 = vld [vmem:[#allocation16_spill] sm:$0xff]  ;;  %v10830_v60 = vld [vmem:[#allocation15_spill] sm:$0xff] }
 0x1e2   : > { %10816 = vst [vmem:[#allocation6_spill] sm:$0xff] %v9487_v57  ;;  %10817 = vst [vmem:[#allocation23_spill] sm:$0xff] %v9489_v18  ;;  %vm9501_vm14 = vcmp.lt.s32.totalorder %v10822_v13, 16  ;;  %v5618_v62 = vmul.u32 18, %v5617_v30  ;;  %v6862_v56 = vpack.c.bf16 %v9489_v18, %v9485_v37  ;;  %v9514_v51 = vadd.f32 %v4846_v33, %v4512_v22  ;;  %v10831_v13 = vld [vmem:[#allocation10_spill] sm:$0xff] }
 0x1e3   : > { %v10824_v49 = vsel %vm9501_vm14, 4294967295, %v10823_v49  ;;  %10826 = vst [vmem:[#allocation7_spill] sm:$0xff] %v9510_v50  ;;  %v9518_v48 = vadd.s32 18, %v9460_v59  ;;  %vm10829_vm9 = vnez %v10828_v25  ;;  %v10833_v20 = vmov 0 }
 0x1e4   : > { %10825 = vst [vmem:[#allocation17_spill] sm:$0xff] %v10824_v49  ;;  %10827 = vst [vmem:[#allocation30_spill] sm:$0xff] %v9514_v51  ;;  %v10832_v55 = vsel %vm10829_vm9, %v10830_v60, %v10831_v13  ;;  %v5650_v30 = vshrl.u32 %v9431_v7, 4  ;;  %v9531_v9 = vmul.u32.u64.low 3817748708, %v9482_v3  ;;  %v9532_v22 = vmul.u32.u64.high 3817748708, %v9482_v3, %v9531_v9  ;;  %v7410_v60 = vpop.f32.mrf.mxu1 }
 0x1e5   : > { %vm9525_vm4 = vcmp.lt.s32.totalorder %v10832_v55, 16  ;;  %v9535_v33 = vadd.s32 224, %v8641_v44  ;;  %v4515_v12 = vadd.f32 %v4348_v4, %v10835_v58  ;;  %v6103_v25 = vsel %vm9373_vm8, %v9487_v57, 0.0  ;;  %6944 = vst [vmem:[%s9494_s18 + $0x8] sm:$0xff] %v6862_v56   ;;  %v4859_v9 = vpop.f32.mrf.mxu0  ;;  %v10839_v58 = vld [vmem:[#allocation19_spill] sm:$0xff] }
 0x1e6   : > { %v10834_v20 = vsel %vm9525_vm4, 4294967295, %v10833_v20  ;;  %v6857_v55 = vpack.c.bf16 %v9514_v51, %v9487_v57  ;;  %v6104_v7 = vsel %vm9382_vm13, %v9514_v51, 0.0  ;;  %vm10837_vm9 = vnez %v10836_v29  ;;  %v4364_v21 = vpop.f32.mrf.mxu1 }
 0x1e7   : > { %v6139_v13 = vadd.f32 %v6104_v7, %v6103_v25  ;;  %v10840_v4 = vsel %vm10837_vm9, %v10838_v34, %v10839_v58  ;;  %v10841_v31 = vmov 0  ;;  %vm10844_vm8 = vcmp.ne.s32.totalorder %v9366_v26, 0  ;;  %v10848_v34 = vld [vmem:[#allocation8_spill] sm:$0xff]  ;;  %v10849_v58 = vld [vmem:[#allocation11_spill] sm:$0xff] }
 0x1e8   : > { %vm9552_vm2 = vcmp.lt.s32.totalorder %v10840_v4, 16  ;;  %vm10845_vm15 = vcmp.lt.s32.totalorder %v9366_v26, 0  ;;  %v9567_v29 = vsub.s32 %v9258_v36, %v5618_v62  ;;  %v4517_v25 = vadd.f32 %v7406_v14, %v10848_v34  ;;  %6858 = vst [vmem:[%s9494_s18] sm:$0xff] %v6857_v55   ;;  %v7445_v14 = vpop.f32.mrf.mxu0 }
 0x1e9   : > { %v10842_v31 = vsel %vm9552_vm2, 4294967295, %v10841_v31  ;;  %vm9560_vm0 = vmand %vm10845_vm15, %vm10844_vm8  ;;  %v6105_v7 = vsel %vm9421_vm5, %v9485_v37, 0.0  ;;  %v4518_v4 = vadd.f32 %v7407_v24, %v10849_v58  ;;  %v9575_v51 = vadd.f32 %v4859_v9, %v4515_v12  ;;  %v10893_v37 = vld [vmem:[#allocation43_spill] sm:$0xff] }
 0x1ea   : > { %10843 = vst [vmem:[#allocation27_spill] sm:$0xff] %v10842_v31  ;;  %vm10851_vm15 = vcmp.ne.s32.totalorder %v9414_v15, 0  ;;  %vm10852_vm8 = vcmp.lt.s32.totalorder %v9414_v15, 0  ;;  %v6140_v36 = vadd.f32 %v6139_v13, %v6105_v7  ;;  %vm10855_vm7 = vnez %v10717_v40  ;;  %v7411_v7 = vpop.f32.mrf.mxu1  ;;  %v4862_v41 = vpop.f32.mrf.mxu0 }
 0x1eb   : > { %10850 = vst [vmem:[#allocation21_spill] sm:$0xff] %v9575_v51  ;;  %vm9581_vm9 = vmand %vm10852_vm8, %vm10851_vm15  ;;  %v10856_v62 = vsel %vm10855_vm7, %v9034_v16, %v8987_v28  ;;  %v10857_v24 = vmov 0  ;;  %vm10860_vm5 = vcmp.ne.s32.totalorder %v9460_v59, 0  ;;  %vm10861_vm12 = vcmp.lt.s32.totalorder %v9460_v59, 0  ;;  %v10864_v16 = vld [vmem:[#allocation12_spill] sm:$0xff] }
 0x1ec   : > { %vm9590_vm13 = vcmp.lt.s32.totalorder %v10856_v62, 16  ;;  %vm9598_vm10 = vmand %vm10861_vm12, %vm10860_vm5  ;;  %v5628_v55 = vshrl.u32 %v9479_v27, 4  ;;  %v9604_v13 = vmul.u32.u64.low 3817748708, %v9535_v33  ;;  %v9605_v40 = vmul.u32.u64.high 3817748708, %v9535_v33, %v9604_v13 }
 0x1ed   : > { %v10858_v24 = vsel %vm9590_vm13, 4294967295, %v10857_v24  ;;  %v6106_v28 = vsel %vm9452_vm3, %v9489_v18, 0.0  ;;  %v4516_v9 = vadd.f32 %v4351_v17, %v10864_v16  ;;  %v9611_v34 = vadd.f32 %v7444_v42, %v4517_v25  ;;  %v4367_v25 = vpop.f32.mrf.mxu1  ;;  %v7448_v16 = vpop.f32.mrf.mxu0  ;;  %v10892_v18 = vld [vmem:[#allocation47_spill] sm:$0xff] }
 0x1ee   : > { %10859 = vst [vmem:[#allocation16_spill] sm:$0xff] %v10858_v24  ;;  %v9613_v58 = vadd.f32 %v7445_v14, %v4518_v4  ;;  %v6141_v62 = vadd.f32 %v6140_v36, %v6106_v28  ;;  %vm10865_vm12 = vnez %v10727_v0  ;;  %v10867_v13 = vmov 0  ;;  %v10880_v36 = vld [vmem:[#allocation14_spill] sm:$0xff] }
 0x1ef   : > { %v10866_v27 = vsel %vm10865_vm12, %v9112_v54, %v9030_v38  ;;  %v9633_v0 = vadd.s32 18, %v9510_v50  ;;  %v6107_v38 = vsel %vm9472_vm1, %v9575_v51, 0.0  ;;  %v9640_v4 = vadd.f32 %v4862_v41, %v4516_v9 }
 0x1f0   : > { %vm9620_vm7 = vcmp.lt.s32.totalorder %v10866_v27, 16  ;;  %v6872_v54 = vpack.c.bf16 %v9613_v58, %v9611_v34  ;;  %vm10871_vm5 = vcmp.ne.s32.totalorder %v9510_v50, 0  ;;  %vm10872_vm15 = vcmp.lt.s32.totalorder %v9510_v50, 0 }
 0x1f1   : > { %v10868_v13 = vsel %vm9620_vm7, 4294967295, %v10867_v13  ;;  %10870 = vst [vmem:[#allocation10_spill] sm:$0xff] %v9640_v4  ;;  %vm9650_vm8 = vmand %vm10872_vm15, %vm10871_vm5  ;;  %v6142_v28 = vadd.f32 %v6141_v62, %v6107_v38  ;;  %vm10875_vm12 = vnez %v10714_v11  ;;  %v10877_v9 = vmov 0  ;;  %v4875_v38 = vpop.f32.mrf.mxu0 }
 0x1f2   : > { %10869 = vst [vmem:[#allocation15_spill] sm:$0xff] %v10868_v13  ;;  %v10876_v41 = vsel %vm10875_vm12, %v9012_v5, %v8961_v23  ;;  %vm5767_vm3 = vcmp.ne.s32.totalorder %v9567_v29, 0  ;;  %v5651_v27 = vmul.u32 18, %v5650_v30  ;;  %v5629_v42 = vmul.u32 18, %v5628_v55  ;;  %6946 = vst [vmem:[%s9494_s18 + $0x18] sm:$0xff] %v6872_v54   ;;  %v7414_v23 = vpop.f32.mrf.mxu1  ;;  %v10883_v30 = vld [vmem:[#allocation40_spill] sm:$0xff] }
 0x1f3   : > { %vm9659_vm1 = vcmp.lt.s32.totalorder %v10876_v41, 16  ;;  %v4519_v17 = vadd.f32 %v4364_v21, %v10880_v36  ;;  %v6867_v62 = vpack.c.bf16 %v9640_v4, %v9575_v51  ;;  %v6108_v11 = vsel %vm9501_vm14, %v9640_v4, 0.0  ;;  %v10881_v41 = vld [vmem:[#allocation39_spill] sm:$0xff]  ;;  %v10884_v55 = vld [vmem:[#allocation33_spill] sm:$0xff]  ;;  %v7449_v51 = vpop.f32.mrf.mxu0 }
 0x1f4   : > { %v10878_v9 = vsel %vm9659_vm1, 4294967295, %v10877_v9  ;;  %vm5803_vm5 = vcmp.lt.s32.totalorder %v9567_v29, 0  ;;  %v6143_v5 = vadd.f32 %v6142_v28, %v6108_v11  ;;  %vm10882_vm15 = vnez %v10881_v41  ;;  %v10889_v11 = vld [vmem:[#allocation13_spill] sm:$0xff] }
 0x1f5   : > { %10879 = vst [vmem:[#allocation9_spill] sm:$0xff] %v10878_v9  ;;  %v10885_v63 = vsel %vm10882_vm15, %v10883_v30, %v10884_v55  ;;  %v10886_v21 = vmov 0  ;;  %v9686_v36 = vadd.s32 18, %v9567_v29  ;;  %v5683_v28 = vshrl.u32 %v9532_v22, 4  ;;  %6945 = vst [vmem:[%s9494_s18 + $0x10] sm:$0xff] %v6867_v62   ;;  %v4380_v55 = vpop.f32.mrf.mxu1  ;;  %v10950_v9 = vld [vmem:[#allocation64_spill] sm:$0xff] }
 0x1f6   : > { %vm9677_vm12 = vcmp.lt.s32.totalorder %v10885_v63, 16  ;;  %v4521_v49 = vadd.f32 %v7410_v60, %v10889_v11  ;;  %v6109_v41 = vsel %vm9525_vm4, %v9611_v34, 0.0  ;;  %v10890_v63 = vld [vmem:[#allocation18_spill] sm:$0xff]  ;;  %v9695_v1 = vadd.f32 %v4875_v38, %v4519_v17  ;;  %vm9710_vm4 = vmand %vm5803_vm5, %vm5767_vm3 }
 0x1f7   : > { %v10887_v21 = vsel %vm9677_vm12, 4294967295, %v10886_v21  ;;  %v4522_v30 = vadd.f32 %v7411_v7, %v10890_v63  ;;  %v6144_v4 = vadd.f32 %v6143_v5, %v6109_v41  ;;  %v10894_v50 = vsel %vm9266_vm11, %v10892_v18, %v10893_v37  ;;  %v7415_v38 = vpop.f32.mrf.mxu1  ;;  %v4878_v41 = vpop.f32.mrf.mxu0  ;;  %v10910_v63 = vld [vmem:[#allocation41_spill] sm:$0xff] }
 0x1f8   : > { %10888 = vst [vmem:[#allocation28_spill] sm:$0xff] %v10887_v21  ;;  %vm9702_vm15 = vcmp.lt.s32.totalorder %v10894_v50, 16  ;;  %v10895_v22 = vmov 0  ;;  %v9715_v7 = vsub.s32 %v9347_v53, %v5651_v27  ;;  %v9718_v17 = vsub.s32 %v9434_v2, %v5629_v42  ;;  %v10900_v50 = vld [vmem:[#allocation20_spill] sm:$0xff]  ;;  %v10907_v27 = vld [vmem:[#allocation57_spill] sm:$0xff]  ;;  %v10948_v21 = vld [vmem:[#allocation63_spill] sm:$0xff] }
 0x1f9   : > { %v10896_v22 = vsel %vm9702_vm15, 4294967295, %v10895_v22  ;;  %v5661_v37 = vshrl.u32 %v9605_v40, 4  ;;  %v6110_v18 = vsel %vm9552_vm2, %v9613_v58, 0.0  ;;  %v4520_v62 = vadd.f32 %v4367_v25, %v10900_v50  ;;  %v10921_v25 = vld [vmem:[#allocation22_spill] sm:$0xff] }
 0x1fa   : > { %10897 = vst [vmem:[#allocation25_spill] sm:$0xff] %v10896_v22  ;;  %v9725_v5 = vadd.f32 %v7448_v16, %v4521_v49  ;;  %v9727_v54 = vadd.f32 %v7449_v51, %v4522_v30  ;;  %v6145_v11 = vadd.f32 %v6144_v4, %v6110_v18  ;;  %v10903_v53 = vsel %vm9295_vm6, %v9224_v39, %v9179_v35  ;;  %v4383_v35 = vpop.f32.mrf.mxu1  ;;  %v7452_v16 = vpop.f32.mrf.mxu0 }
 0x1fb   : > { %vm9734_vm11 = vcmp.lt.s32.totalorder %v10903_v53, 16  ;;  %v10904_v2 = vmov 0  ;;  %v5684_v40 = vmul.u32 18, %v5683_v28  ;;  %v9739_v42 = vadd.s32 248, %v8641_v44  ;;  %v10909_v28 = vld [vmem:[#allocation46_spill] sm:$0xff] }
 0x1fc   : > { %10901 = vst [vmem:[#allocation19_spill] sm:$0xff] %v9725_v5  ;;  %10902 = vst [vmem:[#allocation8_spill] sm:$0xff] %v9727_v54  ;;  %v10905_v2 = vsel %vm9734_vm11, 4294967295, %v10904_v2  ;;  %v9742_v49 = vadd.s32 232, %v8641_v44  ;;  %v6111_v51 = vsel %vm9590_vm13, %v9695_v1, 0.0  ;;  %v6882_v10 = vpack.c.bf16 %v9727_v54, %v9725_v5 }
 0x1fd   : > { %10906 = vst [vmem:[#allocation11_spill] sm:$0xff] %v10905_v2  ;;  %v9749_v39 = vadd.f32 %v4878_v41, %v4520_v62  ;;  %v6146_v4 = vadd.f32 %v6145_v11, %v6111_v51  ;;  %vm10908_vm6 = vnez %v10907_v27  ;;  %v10912_v18 = vmov 0  ;;  %v10915_v62 = vld [vmem:[#allocation24_spill] sm:$0xff]  ;;  %v7418_v51 = vpop.f32.mrf.mxu1 }
 0x1fe   : > { %v10911_v30 = vsel %vm10908_vm6, %v10909_v28, %v10910_v63  ;;  %vm5768_vm5 = vcmp.ne.s32.totalorder %v9718_v17, 0  ;;  %v5662_v50 = vmul.u32 18, %v5661_v37  ;;  %v4523_v41 = vadd.f32 %v4380_v55, %v10915_v62  ;;  %6948 = vst [vmem:[%s9494_s18 + $0x28] sm:$0xff] %v6882_v10   ;;  %v4891_v63 = vpop.f32.mrf.mxu0 }
 0x1ff   : > { %vm9760_vm3 = vcmp.lt.s32.totalorder %v10911_v30, 16  ;;  %v6877_v11 = vpack.c.bf16 %v9749_v39, %v9695_v1  ;;  %v6112_v53 = vsel %vm9620_vm7, %v9749_v39, 0.0  ;;  %v9774_v27 = vadd.s32 18, %v9718_v17 }
 0x200   : > { %v10913_v18 = vsel %vm9760_vm3, 4294967295, %v10912_v18  ;;  %v6147_v28 = vadd.f32 %v6146_v4, %v6112_v53  ;;  %vm10916_vm6 = vnez %v10756_v52  ;;  %v10918_v55 = vmov 0  ;;  %v10922_v4 = vld [vmem:[#allocation26_spill] sm:$0xff] }
 0x201   : > { %10914 = vst [vmem:[#allocation12_spill] sm:$0xff] %v10913_v18  ;;  %v10917_v37 = vsel %vm10916_vm6, %v9204_v8, %v9147_v6  ;;  %v9786_v10 = vsub.s32 %v9482_v3, %v5684_v40  ;;  %v9789_v30 = vmul.u32.u64.low 3817748708, %v9739_v42  ;;  %v9790_v62 = vmul.u32.u64.high 3817748708, %v9739_v42, %v9789_v30  ;;  %6947 = vst [vmem:[%s9494_s18 + $0x20] sm:$0xff] %v6877_v11   ;;  %v4396_v6 = vpop.f32.mrf.mxu1  ;;  %v10973_v18 = vld [vmem:[#allocation37_spill] sm:$0xff] }
 0x202   : > { %vm9781_vm13 = vcmp.lt.s32.totalorder %v10917_v37, 16  ;;  %v4525_v13 = vadd.f32 %v7414_v23, %v10921_v25  ;;  %v6113_v52 = vsel %vm9659_vm1, %v9725_v5, 0.0  ;;  %v4526_v53 = vadd.f32 %v7415_v38, %v10922_v4  ;;  %v7453_v23 = vpop.f32.mrf.mxu0  ;;  %v10932_v37 = vld [vmem:[#allocation29_spill] sm:$0xff] }
 0x203   : > { %v10919_v55 = vsel %vm9781_vm13, 4294967295, %v10918_v55  ;;  %v9798_v8 = vadd.f32 %v4891_v63, %v4523_v41  ;;  %vm10924_vm6 = vcmp.lt.s32.totalorder %v9718_v17, 0  ;;  %v6148_v40 = vadd.f32 %v6147_v28, %v6113_v52 }
 0x204   : > { %10920 = vst [vmem:[#allocation14_spill] sm:$0xff] %v10919_v55  ;;  %vm9804_vm7 = vmand %vm10924_vm6, %vm5768_vm5  ;;  %vm10927_vm2 = vnez %v10771_v47  ;;  %v10929_v38 = vmov 0  ;;  %v9818_v41 = vsub.s32 %v9535_v33, %v5662_v50  ;;  %v6114_v28 = vsel %vm9677_vm12, %v9727_v54, 0.0  ;;  %v4894_v4 = vpop.f32.mrf.mxu0  ;;  %v10934_v33 = vld [vmem:[#allocation56_spill] sm:$0xff]  ;;  %v10951_v54 = vld [vmem:[#allocation53_spill] sm:$0xff] }
 0x205   : > { %10923 = vst [vmem:[#allocation39_spill] sm:$0xff] %v9798_v8  ;;  %v10928_v25 = vsel %vm10927_vm2, %v9286_v32, %v9227_v43  ;;  %v9821_v11 = vmul.u32.u64.low 3817748708, %v9742_v49  ;;  %v9822_v63 = vmul.u32.u64.high 3817748708, %v9742_v49, %v9821_v11  ;;  %v4524_v47 = vadd.f32 %v4383_v35, %v10932_v37  ;;  %v7419_v43 = vpop.f32.mrf.mxu1  ;;  %v10941_v37 = vld [vmem:[#allocation55_spill] sm:$0xff] }
 0x206   : > { %vm9813_vm1 = vcmp.lt.s32.totalorder %v10928_v25, 16  ;;  %v9828_v30 = vadd.f32 %v7452_v16, %v4525_v13  ;;  %v9830_v32 = vadd.f32 %v7453_v23, %v4526_v53  ;;  %v6149_v52 = vadd.f32 %v6148_v40, %v6114_v28  ;;  %v7456_v11 = vpop.f32.mrf.mxu0  ;;  %v10939_v28 = vld [vmem:[#allocation61_spill] sm:$0xff] }
 0x207   : > { %v10930_v38 = vsel %vm9813_vm1, 4294967295, %v10929_v38  ;;  %vm10933_vm2 = vnez %v10780_v19  ;;  %v10936_v25 = vmov 0  ;;  %v9844_v13 = vadd.s32 18, %v9715_v7  ;;  %v4399_v53 = vpop.f32.mrf.mxu1 }
 0x208   : > { %10931 = vst [vmem:[#allocation40_spill] sm:$0xff] %v10930_v38  ;;  %v10935_v50 = vsel %vm10933_vm2, %v9360_v46, %v10934_v33  ;;  %v9851_v35 = vadd.s32 272, %v8641_v44  ;;  %v6115_v46 = vsel %vm9702_vm15, %v9798_v8, 0.0  ;;  %v6892_v16 = vpack.c.bf16 %v9830_v32, %v9828_v30  ;;  %v10942_v33 = vld [vmem:[#allocation50_spill] sm:$0xff] }
 0x209   : > { %vm9837_vm5 = vcmp.lt.s32.totalorder %v10935_v50, 16  ;;  %v9858_v40 = vadd.f32 %v4894_v4, %v4524_v47  ;;  %v6150_v23 = vadd.f32 %v6149_v52, %v6115_v46  ;;  %vm10940_vm12 = vnez %v10939_v28  ;;  %v10947_v52 = vld [vmem:[#allocation32_spill] sm:$0xff] }
 0x20a   : > { %v10937_v25 = vsel %vm9837_vm5, 4294967295, %v10936_v25  ;;  %v10943_v50 = vsel %vm10940_vm12, %v10941_v37, %v10942_v33  ;;  %v10944_v19 = vmov 0  ;;  %v9872_v22 = vadd.s32 18, %v9786_v10  ;;  %6950 = vst [vmem:[%s9494_s18 + $0x38] sm:$0xff] %v6892_v16   ;;  %v7422_v37 = vpop.f32.mrf.mxu1 }
 0x20b   : > { %10938 = vst [vmem:[#allocation33_spill] sm:$0xff] %v10937_v25  ;;  %vm9866_vm6 = vcmp.lt.s32.totalorder %v10943_v50, 16  ;;  %v9875_v47 = vadd.s32 256, %v8641_v44  ;;  %v4527_v4 = vadd.f32 %v4396_v6, %v10947_v52  ;;  %v6887_v46 = vpack.c.bf16 %v9858_v40, %v9798_v8  ;;  %v4907_v50 = vpop.f32.mrf.mxu0  ;;  %v10956_v8 = vld [vmem:[#allocation31_spill] sm:$0xff] }
 0x20c   : > { %v10945_v19 = vsel %vm9866_vm6, 4294967295, %v10944_v19  ;;  %v6116_v28 = vsel %vm9734_vm11, %v9858_v40, 0.0  ;;  %vm10949_vm15 = vnez %v10948_v21  ;;  %v10953_v6 = vmov 0  ;;  %v10957_v21 = vld [vmem:[#allocation34_spill] sm:$0xff] }
 0x20d   : > { %10946 = vst [vmem:[#allocation13_spill] sm:$0xff] %v10945_v19  ;;  %v6151_v33 = vadd.f32 %v6150_v23, %v6116_v28  ;;  %v10952_v24 = vsel %vm10949_vm15, %v10950_v9, %v10951_v54  ;;  %v5694_v16 = vshrl.u32 %v9790_v62, 4  ;;  %v4529_v5 = vadd.f32 %v7418_v51, %v10956_v8  ;;  %6949 = vst [vmem:[%s9494_s18 + $0x30] sm:$0xff] %v6887_v46   ;;  %v4412_v9 = vpop.f32.mrf.mxu1  ;;  %v7457_v31 = vpop.f32.mrf.mxu0 }
 0x20e   : > { %vm9890_vm2 = vcmp.lt.s32.totalorder %v10952_v24, 16  ;;  %v9896_v52 = vmul.u32.u64.low 3817748708, %v9851_v35  ;;  %v9897_v2 = vmul.u32.u64.high 3817748708, %v9851_v35, %v9896_v52  ;;  %v6117_v23 = vsel %vm9760_vm3, %v9828_v30, 0.0 }
 0x20f   : > { %v10954_v6 = vsel %vm9890_vm2, 4294967295, %v10953_v6  ;;  %v4530_v28 = vadd.f32 %v7419_v43, %v10957_v21  ;;  %v9905_v24 = vadd.f32 %v4907_v50, %v4527_v4  ;;  %v6152_v54 = vadd.f32 %v6151_v33, %v6117_v23  ;;  %v10961_v4 = vld [vmem:[#allocation35_spill] sm:$0xff]  ;;  %v4910_v50 = vpop.f32.mrf.mxu0 }
 0x210   : > { %10955 = vst [vmem:[#allocation18_spill] sm:$0xff] %v10954_v6  ;;  %v10958_v62 = vsel %vm9560_vm0, %v9457_v61, %v9366_v26  ;;  %v5672_v51 = vshrl.u32 %v9822_v63, 4  ;;  %v9919_v8 = vadd.s32 264, %v8641_v44  ;;  %v6118_v43 = vsel %vm9781_vm13, %v9830_v32, 0.0  ;;  %v7423_v26 = vpop.f32.mrf.mxu1 }
 0x211   : > { %vm9912_vm15 = vcmp.lt.s32.totalorder %v10958_v62, 16  ;;  %v4528_v56 = vadd.f32 %v4399_v53, %v10961_v4  ;;  %v9925_v46 = vadd.f32 %v7456_v11, %v4529_v5  ;;  %v9927_v61 = vadd.f32 %v7457_v31, %v4530_v28  ;;  %v10965_v62 = vld [vmem:[#allocation69_spill] sm:$0xff]  ;;  %v10968_v4 = vld [vmem:[#allocation60_spill] sm:$0xff] }
 0x212   : > { %v6153_v33 = vadd.f32 %v6152_v54, %v6118_v43  ;;  %v10962_v63 = vsel %vm9598_vm10, %v9518_v48, %v9460_v59  ;;  %v9939_v21 = vmul.u32.u64.low 3817748708, %v9875_v47  ;;  %v9940_v53 = vmul.u32.u64.high 3817748708, %v9875_v47, %v9939_v21  ;;  %v4415_v11 = vpop.f32.mrf.mxu1  ;;  %v7460_v54 = vpop.f32.mrf.mxu0  ;;  %v10967_v43 = vld [vmem:[#allocation66_spill] sm:$0xff] }
 0x213   : > { %vm9934_vm0 = vcmp.lt.s32.totalorder %v10962_v63, 16  ;;  %v9943_v5 = vadd.s32 280, %v8641_v44  ;;  %v6119_v31 = vsel %vm9813_vm1, %v9905_v24, 0.0  ;;  %v6902_v12 = vpack.c.bf16 %v9927_v61, %v9925_v46 }
 0x214   : > { %v9950_v59 = vadd.f32 %v4910_v50, %v4528_v56  ;;  %v5695_v48 = vmul.u32 18, %v5694_v16  ;;  %v6154_v28 = vadd.f32 %v6153_v33, %v6119_v31  ;;  %vm10966_vm10 = vnez %v10965_v62  ;;  %v7426_v50 = vpop.f32.mrf.mxu1 }
 0x215   : > { %v10969_v63 = vsel %vm10966_vm10, %v10967_v43, %v10968_v4  ;;  %v10970_v44 = vmov 0  ;;  %v5673_v21 = vmul.u32 18, %v5672_v51  ;;  %v4531_v56 = vadd.f32 %v4412_v9, %v10973_v18  ;;  %6952 = vst [vmem:[%s9494_s18 + $0x48] sm:$0xff] %v6902_v12   ;;  %v4923_v9 = vpop.f32.mrf.mxu0  ;;  %v10985_v4 = vld [vmem:[#allocation36_spill] sm:$0xff] }
 0x216   : > { %vm9957_vm12 = vcmp.lt.s32.totalorder %v10969_v63, 16  ;;  %v9962_v38 = vmul.u32.u64.low 3817748708, %v9919_v8  ;;  %v9963_v55 = vmul.u32.u64.high 3817748708, %v9919_v8, %v9962_v38  ;;  %v6897_v16 = vpack.c.bf16 %v9950_v59, %v9905_v24  ;;  %v10986_v63 = vld [vmem:[#allocation38_spill] sm:$0xff] }
 0x217   : > { %v10971_v44 = vsel %vm9957_vm12, 4294967295, %v10970_v44  ;;  %v6120_v33 = vsel %vm9837_vm5, %v9950_v59, 0.0  ;;  %vm10974_vm10 = vcmp.ne.s32.totalorder %v9715_v7, 0  ;;  %vm10975_vm1 = vcmp.lt.s32.totalorder %v9715_v7, 0 }
 0x218   : > { %10972 = vst [vmem:[#allocation59_spill] sm:$0xff] %v10971_v44  ;;  %vm9976_vm13 = vmand %vm10975_vm1, %vm10974_vm10  ;;  %v9981_v18 = vadd.s32 18, %v9818_v41  ;;  %v6155_v38 = vadd.f32 %v6154_v28, %v6120_v33  ;;  %v10978_v31 = vsel %vm9581_vm9, %v9506_v45, %v9414_v15  ;;  %vm10981_vm3 = vcmp.ne.s32.totalorder %v9786_v10, 0  ;;  %v11043_v44 = vld [vmem:[#allocation65_spill] sm:$0xff] }
 0x219   : > { %vm9988_vm5 = vcmp.lt.s32.totalorder %v10978_v31, 16  ;;  %vm10982_vm1 = vcmp.lt.s32.totalorder %v9786_v10, 0  ;;  %v5727_v28 = vshrl.u32 %v9897_v2, 4  ;;  %v4533_v15 = vadd.f32 %v7422_v37, %v10985_v4  ;;  %6951 = vst [vmem:[%s9494_s18 + $0x40] sm:$0xff] %v6897_v16   ;;  %v4428_v31 = vpop.f32.mrf.mxu1  ;;  %v7461_v37 = vpop.f32.mrf.mxu0  ;;  %v11002_v2 = vld [vmem:[#allocation45_spill] sm:$0xff] }
 0x21a   : > { %vm9996_vm10 = vmand %vm10982_vm1, %vm10981_vm3  ;;  %v10002_v43 = vmul.u32.u64.low 3817748708, %v9943_v5  ;;  %v10003_v57 = vmul.u32.u64.high 3817748708, %v9943_v5, %v10002_v43  ;;  %v6121_v45 = vsel %vm9866_vm6, %v9925_v46, 0.0  ;;  %v4534_v33 = vadd.f32 %v7423_v26, %v10986_v63 }
 0x21b   : > { %v10011_v25 = vadd.f32 %v4923_v9, %v4531_v56  ;;  %vm10987_vm9 = vcmp.ne.s32.totalorder %v9818_v41, 0  ;;  %vm10988_vm3 = vcmp.lt.s32.totalorder %v9818_v41, 0  ;;  %v6156_v43 = vadd.f32 %v6155_v38, %v6121_v45  ;;  %v7427_v45 = vpop.f32.mrf.mxu1  ;;  %v4926_v51 = vpop.f32.mrf.mxu0 }
 0x21c   : > { %vm10017_vm1 = vmand %vm10988_vm3, %vm10987_vm9  ;;  %v10991_v4 = vsel %vm9710_vm4, %v9686_v36, %v9567_v29  ;;  %v5914_v56 = vsel %vm9976_vm13, %v9844_v13, %v9715_v7  ;;  %v10035_v16 = vsub.s32 %v9739_v42, %v5695_v48  ;;  %v10038_v38 = vsub.s32 %v9742_v49, %v5673_v21  ;;  %v10994_v29 = vld [vmem:[#allocation42_spill] sm:$0xff] }
 0x21d   : > { %vm10026_vm6 = vcmp.lt.s32.totalorder %v10991_v4, 16  ;;  %v6122_v60 = vsel %vm9890_vm2, %v9927_v61, 0.0  ;;  %v4532_v36 = vadd.f32 %v4415_v11, %v10994_v29  ;;  %v10044_v9 = vadd.f32 %v7460_v54, %v4533_v15  ;;  %v4431_v11 = vpop.f32.mrf.mxu1  ;;  %v7464_v15 = vpop.f32.mrf.mxu0 }
 0x21e   : > { %v10046_v63 = vadd.f32 %v7461_v37, %v4534_v33  ;;  %v6157_v4 = vadd.f32 %v6156_v43, %v6122_v60  ;;  %v10995_v7 = vsel %vm9804_vm7, %v9774_v27, %v9718_v17  ;;  %v5917_v49 = vsel %vm9996_vm10, %v9872_v22, %v9786_v10  ;;  %v10998_v33 = vld [vmem:[#allocation7_spill] sm:$0xff]  ;;  %v11035_v22 = vld [vmem:[#allocation62_spill] sm:$0xff] }
 0x21f   : > { %vm10053_vm13 = vcmp.lt.s32.totalorder %v10995_v7, 16  ;;  %v5915_v13 = vsel %vm10017_vm1, %v9981_v18, %v9818_v41  ;;  %v5705_v3 = vshrl.u32 %v9940_v53, 4  ;;  %v6123_v17 = vsel %vm9912_vm15, %v10011_v25, 0.0  ;;  %v7430_v43 = vpop.f32.mrf.mxu1  ;;  %v4939_v60 = vpop.f32.mrf.mxu0 }
 0x220   : > { %v6912_v27 = vpack.c.bf16 %v10046_v63, %v10044_v9  ;;  %v10071_v48 = vadd.f32 %v4926_v51, %v4532_v36  ;;  %v5728_v54 = vmul.u32 18, %v5727_v28  ;;  %v6158_v21 = vadd.f32 %v6157_v4, %v6123_v17  ;;  %v11005_v4 = vld [vmem:[#allocation44_spill] sm:$0xff] }
 0x221   : > { %v10999_v41 = vsel %vm9650_vm8, %v9633_v0, %v10998_v33  ;;  %vm5772_vm7 = vcmp.ne.s32.totalorder %v10038_v38, 0  ;;  %vm5808_vm9 = vcmp.lt.s32.totalorder %v10038_v38, 0  ;;  %v5716_v18 = vshrl.u32 %v9963_v55, 4  ;;  %v11006_v17 = vld [vmem:[#allocation48_spill] sm:$0xff] }
 0x222   : > { %vm10078_vm4 = vcmp.lt.s32.totalorder %v10999_v41, 16  ;;  %v4535_v28 = vadd.f32 %v4428_v31, %v11002_v2  ;;  %6954 = vst [vmem:[%s9494_s18 + $0x58] sm:$0xff] %v6912_v27   ;;  %v6907_v14 = vpack.c.bf16 %v10071_v48, %v10011_v25  ;;  %v6124_v0 = vsel %vm9934_vm0, %v10071_v48, 0.0  ;;  %vm10111_vm1 = vmand %vm5808_vm9, %vm5772_vm7 }
 0x223   : > { %v6159_v37 = vadd.f32 %v6158_v21, %v6124_v0  ;;  %vm10093_vm3 = vcmp.lt.s32.totalorder %v5914_v56, 16  ;;  %v11003_v29 = vmov 0  ;;  %v5880_v55 = vadd.s32 18, %v10038_v38  ;;  %v4444_v21 = vpop.f32.mrf.mxu1 }
 0x224   : > { %v11004_v29 = vsel %vm10093_vm3, 4294967295, %v11003_v29  ;;  %v5706_v31 = vmul.u32 18, %v5705_v3  ;;  %v5738_v36 = vshrl.u32 %v10003_v57, 4  ;;  %v4537_v51 = vadd.f32 %v7426_v50, %v11005_v4  ;;  %6953 = vst [vmem:[%s9494_s18 + $0x50] sm:$0xff] %v6907_v14   ;;  %v7465_v50 = vpop.f32.mrf.mxu0 }
 0x225   : > { %v6125_v7 = vsel %vm9957_vm12, %v10044_v9, 0.0  ;;  %v4538_v27 = vadd.f32 %v7427_v45, %v11006_v17  ;;  %v10105_v33 = vadd.f32 %v4939_v60, %v4535_v28  ;;  %vm10115_vm8 = vcmp.lt.s32.totalorder %v5915_v13, 16  ;;  %v11011_v28 = vld [vmem:[#allocation49_spill] sm:$0xff] }
 0x226   : > { %v6160_v57 = vadd.f32 %v6159_v37, %v6125_v7  ;;  %v11009_v3 = vmov 0  ;;  %vm5810_vm12 = vcmp.lt.s32.totalorder %v10035_v16, 0  ;;  %v10121_v45 = vsub.s32 %v9851_v35, %v5728_v54  ;;  %v7431_v37 = vpop.f32.mrf.mxu1  ;;  %v4942_v4 = vpop.f32.mrf.mxu0 }
 0x227   : > { %v11010_v3 = vsel %vm10115_vm8, 4294967295, %v11009_v3  ;;  %v5717_v41 = vmul.u32 18, %v5716_v18  ;;  %v6126_v2 = vsel %vm9988_vm5, %v10046_v63, 0.0  ;;  %v4536_v14 = vadd.f32 %v4431_v11, %v11011_v28 }
 0x228   : > { %v10127_v0 = vadd.f32 %v7464_v15, %v4537_v51  ;;  %v10129_v60 = vadd.f32 %v7465_v50, %v4538_v27  ;;  %v6161_v13 = vadd.f32 %v6160_v57, %v6126_v2  ;;  %v5916_v35 = vsel %vm10111_vm1, %v5880_v55, %v10038_v38  ;;  %v4447_v51 = vpop.f32.mrf.mxu1  ;;  %v7468_v57 = vpop.f32.mrf.mxu0  ;;  %v11012_v38 = vld [vmem:[#allocation52_spill] sm:$0xff] }
 0x229   : > { %v10135_v54 = vsub.s32 %v9875_v47, %v5706_v31  ;;  %v5739_v18 = vmul.u32 18, %v5738_v36  ;;  %v6127_v11 = vsel %vm10026_vm6, %v10105_v33, 0.0  ;;  %v10142_v7 = vadd.f32 %v4942_v4, %v4536_v14 }
 0x22a   : > { %v6922_v15 = vpack.c.bf16 %v10129_v60, %v10127_v0  ;;  %v5882_v17 = vadd.s32 18, %v10035_v16  ;;  %v6162_v27 = vadd.f32 %v6161_v13, %v6127_v11  ;;  %v10148_v47 = vsub.s32 %v9919_v8, %v5717_v41  ;;  %v7434_v56 = vpop.f32.mrf.mxu1  ;;  %v4955_v28 = vpop.f32.mrf.mxu0  ;;  %v11016_v13 = vld [vmem:[#allocation54_spill] sm:$0xff] }
 0x22b   : > { %v4539_v55 = vadd.f32 %v4444_v21, %v11012_v38  ;;  %v6917_v31 = vpack.c.bf16 %v10142_v7, %v10105_v33  ;;  %v6128_v36 = vsel %vm10053_vm13, %v10142_v7, 0.0  ;;  %vm10157_vm1 = vcmp.lt.s32.totalorder %v5916_v35, 16  ;;  %v11015_v21 = vld [vmem:[#allocation51_spill] sm:$0xff]  ;;  %v11020_v38 = vld [vmem:[#allocation58_spill] sm:$0xff] }
 0x22c   : > { %6956 = vst [vmem:[%s9494_s18 + $0x68] sm:$0xff] %v6922_v15   ;;  %v6163_v2 = vadd.f32 %v6162_v27, %v6128_v36  ;;  %v10164_v8 = vsub.s32 %v9943_v5, %v5739_v18  ;;  %v4541_v41 = vadd.f32 %v7430_v43, %v11015_v21  ;;  %v6129_v14 = vsel %vm10078_vm4, %v10127_v0, 0.0  ;;  %v4460_v35 = vpop.f32.mrf.mxu1  ;;  %v7469_v27 = vpop.f32.mrf.mxu0 }
 0x22d   : > { %v4542_v4 = vadd.f32 %v7431_v37, %v11016_v13  ;;  %6955 = vst [vmem:[%s9494_s18 + $0x60] sm:$0xff] %v6917_v31   ;;  %v10172_v11 = vadd.f32 %v4955_v28, %v4539_v55  ;;  %vm11017_vm9 = vcmp.ne.s32.totalorder %v10035_v16, 0  ;;  %v5883_v43 = vadd.s32 18, %v10135_v54 }
 0x22e   : > { %v6164_v15 = vadd.f32 %v6163_v2, %v6129_v14  ;;  %vm10178_vm7 = vmand %vm5810_vm12, %vm11017_vm9  ;;  %v6130_v37 = vsel %vm10093_vm3, %v10129_v60, 0.0  ;;  %v4540_v55 = vadd.f32 %v4447_v51, %v11020_v38  ;;  %v10189_v31 = vadd.f32 %v7468_v57, %v4541_v41  ;;  %v7435_v28 = vpop.f32.mrf.mxu1  ;;  %v4958_v21 = vpop.f32.mrf.mxu0 }
 0x22f   : > { %v10191_v36 = vadd.f32 %v7469_v27, %v4542_v4  ;;  %vm11021_vm12 = vcmp.ne.s32.totalorder %v10135_v54, 0  ;;  %vm11022_vm9 = vcmp.lt.s32.totalorder %v10135_v54, 0  ;;  %v5884_v51 = vadd.s32 18, %v10148_v47 }
 0x230   : > { %v6165_v2 = vadd.f32 %v6164_v15, %v6130_v37  ;;  %vm10197_vm2 = vmand %vm11022_vm9, %vm11021_vm12  ;;  %v6131_v57 = vsel %vm10115_vm8, %v10172_v11, 0.0  ;;  %v5918_v13 = vsel %vm10178_vm7, %v5882_v17, %v10035_v16  ;;  %v10212_v4 = vadd.f32 %v4958_v21, %v4540_v55  ;;  %v7472_v17 = vpop.f32.mrf.mxu0  ;;  %v4463_v21 = vpop.f32.mrf.mxu1 }
 0x231   : > { %v6932_v41 = vpack.c.bf16 %v10191_v36, %v10189_v31  ;;  %vm11025_vm12 = vcmp.ne.s32.totalorder %v10148_v47, 0  ;;  %vm11026_vm9 = vcmp.lt.s32.totalorder %v10148_v47, 0  ;;  %vm10227_vm11 = vcmp.lt.s32.totalorder %v5917_v49, 16 }
 0x232   : > { %vm10218_vm14 = vmand %vm11026_vm9, %vm11025_vm12  ;;  %v6166_v16 = vadd.f32 %v6165_v2, %v6131_v57  ;;  %vm11031_vm7 = vcmp.ne.s32.totalorder %v10121_v45, 0  ;;  %vm11032_vm8 = vcmp.lt.s32.totalorder %v10121_v45, 0  ;;  %v5885_v37 = vadd.s32 18, %v10121_v45 }
 0x233   : > { %vm10235_vm3 = vmand %vm11032_vm8, %vm11031_vm7  ;;  %v5886_v62 = vadd.s32 18, %v10164_v8  ;;  %v4543_v10 = vadd.f32 %v4460_v35, %v11035_v22  ;;  %6958 = vst [vmem:[%s9494_s18 + $0x78] sm:$0xff] %v6932_v41   ;;  %v6927_v49 = vpack.c.bf16 %v10212_v4, %v10172_v11  ;;  %v6132_v38 = vsel %vm10157_vm1, %v10212_v4, 0.0  ;;  %v4971_v41 = vpop.f32.mrf.mxu0  ;;  %v11057_v35 = vld [vmem:[#allocation5_spill] sm:$0xff] }
 0x234   : > { %v5919_v55 = vsel %vm10197_vm2, %v5883_v43, %v10135_v54  ;;  %vm11036_vm10 = vcmp.ne.s32.totalorder %v10164_v8, 0  ;;  %vm11037_vm8 = vcmp.lt.s32.totalorder %v10164_v8, 0  ;;  %vm10259_vm9 = vcmp.lt.s32.totalorder %v5918_v13, 16  ;;  %v11042_v54 = vld [vmem:[#allocation3_spill] sm:$0xff] }
 0x235   : > { %vm10255_vm12 = vmand %vm11037_vm8, %vm11036_vm10  ;;  %v6167_v57 = vadd.f32 %v6166_v16, %v6132_v38  ;;  %v5920_v14 = vsel %vm10218_vm14, %v5884_v51, %v10148_v47  ;;  %v4545_v43 = vadd.f32 %v7434_v56, %v11042_v54  ;;  %v6133_v22 = vsel %vm10227_vm11, %v10189_v31, 0.0  ;;  %6957 = vst [vmem:[%s9494_s18 + $0x70] sm:$0xff] %v6927_v49   ;;  %v7473_v47 = vpop.f32.mrf.mxu0 }
 0x236   : > { %v4546_v6 = vadd.f32 %v7435_v28, %v11043_v44  ;;  %v10272_v13 = vadd.f32 %v4971_v41, %v4543_v10  ;;  %v5921_v16 = vsel %vm10235_vm3, %v5885_v37, %v10121_v45  ;;  %vm10277_vm2 = vcmp.lt.s32.totalorder %v5919_v55, 16  ;;  %v11046_v28 = vld [vmem:[#allocation70_spill] sm:$0xff]  ;;  %v11062_v10 = vld [vmem:[#allocation23_spill] sm:$0xff] }
 0x237   : > { %v6168_v19 = vadd.f32 %v6167_v57, %v6133_v22  ;;  %v5922_v56 = vsel %vm10255_vm12, %v5886_v62, %v10164_v8  ;;  %v6134_v44 = vsel %vm10259_vm9, %v10191_v36, 0.0  ;;  %v4544_v51 = vadd.f32 %v4463_v21, %v11046_v28  ;;  %v4974_v37 = vpop.f32.mrf.mxu0  ;;  %v11064_v55 = vld [vmem:[#allocation71_spill] sm:$0xff] }
 0x238   : > { %v10288_v15 = vadd.f32 %v7472_v17, %v4545_v43  ;;  %v10290_v18 = vadd.f32 %v7473_v47, %v4546_v6  ;;  %vm5994_vm14 = vcmp.lt.s32.totalorder %v9943_v5, 286  ;;  %vm10293_vm3 = vcmp.lt.s32.totalorder %v5920_v14, 16 }
 0x239   : > { %v6169_v45 = vadd.f32 %v6168_v19, %v6134_v44  ;;  %v6135_v8 = vsel %vm10277_vm2, %v10272_v13, 0.0  ;;  %vm5958_vm7 = vcmp.lt.s32.totalorder %v5922_v56, 16  ;;  %v5055_v17 = vadd.f32 %v4974_v37, %v4544_v51 }
 0x23a   : > { %v6942_v62 = vpack.c.bf16 %v10290_v18, %v10288_v15  ;;  %vm10302_vm10 = vcmp.lt.s32.totalorder %v5921_v16, 16  ;;  %vm10310_vm8 = vmand %vm5958_vm7, %vm5994_vm14  ;;  %vm11073_vm12 = vnez %v10834_v20  ;;  %v11079_v20 = vld [vmem:[#allocation8_spill] sm:$0xff] }
 0x23b   : > { %v6170_v19 = vadd.f32 %v6169_v45, %v6135_v8  ;;  %v6937_v5 = vpack.c.bf16 %v5055_v17, %v10272_v13  ;;  %v6136_v49 = vsel %vm10293_vm3, %v5055_v17, 0.0  ;;  %v6137_v21 = vsel %vm10302_vm10, %v10288_v15, 0.0 }
 0x23c   : > { %6960 = vst [vmem:[%s9494_s18 + $0x88] sm:$0xff] %v6942_v62   ;;  %v6138_v41 = vsel %vm10310_vm8, %v10290_v18, 0.0 }
 0x23d   : > { %v6171_v2 = vadd.f32 %v6170_v19, %v6136_v49  ;;  %6959 = vst [vmem:[%s9494_s18 + $0x80] sm:$0xff] %v6937_v5  }
 0x23f   : > { %v6172_v57 = vadd.f32 %v6171_v2, %v6137_v21 }
 0x241   : > { %v6173_v14 = vadd.f32 %v6172_v57, %v6138_v41 }
 0x243   : > { %v6174_v54 = vrot.slane %v6173_v14, 4 }
 0x245   : > { %v6175_v43 = vadd.f32 %v6174_v54, %v6173_v14  ;;  %v11053_v14 = vld [vmem:[#allocation6_spill] sm:$0xff] }
 0x246   : > { %v11054_v54 = vld [vmem:[#allocation30_spill] sm:$0xff] }
 0x247   : > { %v6176_v22 = vrot.slane %v6175_v43, 2 }
 0x249   : > { %v6177_v16 = vadd.f32 %v6176_v22, %v6175_v43  ;;  %v11058_v22 = vld [vmem:[#allocation67_spill] sm:$0xff] }
 0x24b   : > { %v6178_v47 = vrot.slane %v6177_v16, 1 }
 0x24d   : > { %v6179_v56 = vadd.f32 %v6178_v47, %v6177_v16  ;;  %v11060_v16 = vld [vmem:[#allocation68_spill] sm:$0xff] }
 0x24f   : > { %6330 = vst [vmem:[%s211_s21] sm:$0x1] %v6179_v56  ;;  %v10325_v44 = vmul.f32 0.00390625, %v6179_v56 }
 0x251   : > { %v6194_v28 = vsub.f32 %v9858_v40, %v10325_v44  ;;  %v6197_v51 = vsub.f32 %v9905_v24, %v10325_v44  ;;  %v6198_v45 = vsub.f32 %v9950_v59, %v10325_v44  ;;  %v6199_v37 = vsub.f32 %v9925_v46, %v10325_v44  ;;  %v11103_v46 = vld [vmem:[#allocation59_spill] sm:$0xff] }
 0x252   : > { %v6200_v8 = vsub.f32 %v9927_v61, %v10325_v44  ;;  %v6201_v62 = vsub.f32 %v10011_v25, %v10325_v44  ;;  %v6202_v19 = vsub.f32 %v10071_v48, %v10325_v44  ;;  %v6203_v5 = vsub.f32 %v10044_v9, %v10325_v44 }
 0x253   : > { %v6204_v49 = vsub.f32 %v10046_v63, %v10325_v44  ;;  %v6205_v2 = vsub.f32 %v10105_v33, %v10325_v44  ;;  %v6206_v21 = vsub.f32 %v10142_v7, %v10325_v44  ;;  %v6207_v57 = vsub.f32 %v10127_v0, %v10325_v44 }
 0x254   : > { %v6208_v25 = vsub.f32 %v10129_v60, %v10325_v44  ;;  %v6209_v48 = vsub.f32 %v10172_v11, %v10325_v44  ;;  %v6210_v41 = vsub.f32 %v10212_v4, %v10325_v44  ;;  %v6211_v63 = vsub.f32 %v10189_v31, %v10325_v44 }
 0x255   : > { %v6212_v33 = vsub.f32 %v10191_v36, %v10325_v44  ;;  %v6213_v7 = vsub.f32 %v10272_v13, %v10325_v44  ;;  %v6214_v0 = vsub.f32 %v5055_v17, %v10325_v44  ;;  %v6215_v60 = vsub.f32 %v10288_v15, %v10325_v44 }
 0x256   : > { %v6216_v11 = vsub.f32 %v10290_v18, %v10325_v44  ;;  %v6181_v4 = vsub.f32 %v11053_v14, %v10325_v44  ;;  %v6182_v31 = vsub.f32 %v11054_v54, %v10325_v44  ;;  %v10374_v36 = vsel %vm9912_vm15, %v6201_v62, 0.0 }
 0x257   : > { %v10378_v13 = vsel %vm9934_vm0, %v6202_v19, 0.0  ;;  %v10382_v15 = vsel %vm9988_vm5, %v6204_v49, 0.0  ;;  %v10386_v18 = vsel %vm10026_vm6, %v6205_v2, 0.0  ;;  %v10390_v17 = vsel %vm10053_vm13, %v6206_v21, 0.0  ;;  %v11063_v19 = vld [vmem:[#allocation21_spill] sm:$0xff]  ;;  %v11066_v21 = vld [vmem:[#allocation10_spill] sm:$0xff] }
 0x258   : > { %v10394_v52 = vsel %vm10078_vm4, %v6207_v57, 0.0  ;;  %vm11055_vm15 = vnez %v11004_v29  ;;  %vm11056_vm0 = vnez %v11010_v3  ;;  %v10406_v26 = vsel %vm10157_vm1, %v6210_v41, 0.0 }
 0x259   : > { %v10398_v23 = vsel %vm11055_vm15, %v6208_v25, 0.0  ;;  %v10402_v12 = vsel %vm11056_vm0, %v6209_v48, 0.0  ;;  %v10410_v42 = vsel %vm10227_vm11, %v6211_v63, 0.0  ;;  %v10414_v53 = vsel %vm10259_vm9, %v6212_v33, 0.0  ;;  %v11067_v25 = vld [vmem:[#allocation72_spill] sm:$0xff] }
 0x25a   : > { %v10418_v29 = vsel %vm10277_vm2, %v6213_v7, 0.0  ;;  %v10422_v3 = vsel %vm10293_vm3, %v6214_v0, 0.0  ;;  %v10426_v50 = vsel %vm10302_vm10, %v6215_v60, 0.0  ;;  %v10430_v27 = vsel %vm10310_vm8, %v6216_v11, 0.0  ;;  %v11069_v7 = vld [vmem:[#allocation4_spill] sm:$0xff] }
 0x25b   : > { %v6183_v43 = vsub.f32 %v11057_v35, %v10325_v44  ;;  %vm11059_vm11 = vnez %v11058_v22  ;;  %vm11061_vm5 = vnez %v11060_v16  ;;  %v6184_v56 = vsub.f32 %v11062_v10, %v10325_v44 }
 0x25c   : > { %v6217_v38 = vsel %vm11059_vm11, %v6181_v4, 0.0  ;;  %v6218_v47 = vsel %vm11061_vm5, %v6182_v31, 0.0  ;;  %v6185_v49 = vsub.f32 %v11063_v19, %v10325_v44  ;;  %vm11065_vm6 = vnez %v11064_v55  ;;  %v11071_v4 = vld [vmem:[#allocation17_spill] sm:$0xff]  ;;  %v11077_v19 = vld [vmem:[#allocation16_spill] sm:$0xff] }
 0x25d   : > { %v6253_v62 = vmul.f32 %v6217_v38, %v6217_v38  ;;  %v6254_v6 = vmul.f32 %v6218_v47, %v6218_v47  ;;  %v6219_v2 = vsel %vm11065_vm6, %v6183_v43, 0.0  ;;  %v6186_v57 = vsub.f32 %v11066_v21, %v10325_v44  ;;  %v11074_v47 = vld [vmem:[#allocation27_spill] sm:$0xff] }
 0x25e   : > { %vm11068_vm13 = vnez %v11067_v25  ;;  %v6255_v41 = vmul.f32 %v6219_v2, %v6219_v2  ;;  %v6187_v33 = vsub.f32 %v9611_v34, %v10325_v44  ;;  %vm11070_vm4 = vnez %v11069_v7  ;;  %v11080_v21 = vld [vmem:[#allocation15_spill] sm:$0xff] }
 0x25f   : > { %v6220_v48 = vsel %vm11068_vm13, %v6184_v56, 0.0  ;;  %v6289_v63 = vadd.f32 %v6254_v6, %v6253_v62  ;;  %v6221_v0 = vsel %vm11070_vm4, %v6185_v49, 0.0  ;;  %v6188_v14 = vsub.f32 %v9613_v58, %v10325_v44  ;;  %v11076_v62 = vld [vmem:[#allocation19_spill] sm:$0xff] }
 0x260   : > { %v6256_v60 = vmul.f32 %v6220_v48, %v6220_v48  ;;  %vm11072_vm1 = vnez %v11071_v4  ;;  %v6257_v31 = vmul.f32 %v6221_v0, %v6221_v0  ;;  %v6189_v43 = vsub.f32 %v9695_v1, %v10325_v44  ;;  %v11082_v48 = vld [vmem:[#allocation39_spill] sm:$0xff] }
 0x261   : > { %v6290_v11 = vadd.f32 %v6289_v63, %v6255_v41  ;;  %v6222_v54 = vsel %vm11072_vm1, %v6186_v57, 0.0  ;;  %v6223_v22 = vsel %vm11073_vm12, %v6187_v33, 0.0  ;;  %v6190_v16 = vsub.f32 %v9749_v39, %v10325_v44  ;;  %v11083_v63 = vld [vmem:[#allocation9_spill] sm:$0xff] }
 0x262   : > { %v6258_v34 = vmul.f32 %v6222_v54, %v6222_v54  ;;  %vm11075_vm9 = vnez %v11074_v47  ;;  %v6259_v58 = vmul.f32 %v6223_v22, %v6223_v22  ;;  %v6191_v6 = vsub.f32 %v11076_v62, %v10325_v44 }
 0x263   : > { %v6291_v35 = vadd.f32 %v6290_v11, %v6256_v60  ;;  %v6224_v10 = vsel %vm11075_vm9, %v6188_v14, 0.0  ;;  %vm11078_vm2 = vnez %v11077_v19  ;;  %v6192_v2 = vsub.f32 %v11079_v20, %v10325_v44  ;;  %v11085_v60 = vld [vmem:[#allocation28_spill] sm:$0xff]  ;;  %v11097_v20 = vld [vmem:[#allocation33_spill] sm:$0xff] }
 0x264   : > { %v6225_v49 = vsel %vm11078_vm2, %v6189_v43, 0.0  ;;  %v6260_v1 = vmul.f32 %v6224_v10, %v6224_v10  ;;  %vm11081_vm14 = vnez %v11080_v21  ;;  %v6193_v41 = vsub.f32 %v11082_v48, %v10325_v44 }
 0x265   : > { %v6292_v38 = vadd.f32 %v6291_v35, %v6257_v31  ;;  %v6226_v57 = vsel %vm11081_vm14, %v6190_v16, 0.0  ;;  %v6261_v39 = vmul.f32 %v6225_v49, %v6225_v49  ;;  %vm11084_vm3 = vnez %v11083_v63  ;;  %v11087_v31 = vld [vmem:[#allocation25_spill] sm:$0xff] }
 0x266   : > { %v6227_v33 = vsel %vm11084_vm3, %v6191_v6, 0.0  ;;  %v6262_v7 = vmul.f32 %v6226_v57, %v6226_v57  ;;  %vm11086_vm7 = vnez %v11085_v60  ;;  %v6195_v54 = vsub.f32 %v9828_v30, %v10325_v44  ;;  %v11093_v6 = vld [vmem:[#allocation14_spill] sm:$0xff] }
 0x267   : > { %v6293_v56 = vadd.f32 %v6292_v38, %v6258_v34  ;;  %v6228_v11 = vsel %vm11086_vm7, %v6192_v2, 0.0  ;;  %v6263_v14 = vmul.f32 %v6227_v33, %v6227_v33  ;;  %vm11088_vm10 = vnez %v11087_v31  ;;  %v11089_v38 = vld [vmem:[#allocation11_spill] sm:$0xff] }
 0x268   : > { %v6229_v35 = vsel %vm11088_vm10, %v6193_v41, 0.0  ;;  %v6264_v43 = vmul.f32 %v6228_v11, %v6228_v11  ;;  %v6196_v34 = vsub.f32 %v9830_v32, %v10325_v44  ;;  %vm11090_vm8 = vnez %v11089_v38  ;;  %v11095_v32 = vld [vmem:[#allocation40_spill] sm:$0xff] }
 0x269   : > { %v6294_v55 = vadd.f32 %v6293_v56, %v6259_v58  ;;  %v6230_v16 = vsel %vm11090_vm8, %v6194_v28, 0.0  ;;  %v6265_v47 = vmul.f32 %v6229_v35, %v6229_v35  ;;  %v11091_v58 = vld [vmem:[#allocation12_spill] sm:$0xff]  ;;  %vm11094_vm0 = vnez %v11093_v6 }
 0x26a   : > { %vm11092_vm15 = vnez %v11091_v58  ;;  %v6266_v30 = vmul.f32 %v6230_v16, %v6230_v16  ;;  %v6232_v19 = vsel %vm11094_vm0, %v6196_v34, 0.0  ;;  %vm11096_vm11 = vnez %v11095_v32 }
 0x26b   : > { %v6295_v25 = vadd.f32 %v6294_v55, %v6260_v1  ;;  %v6231_v56 = vsel %vm11092_vm15, %v6195_v54, 0.0  ;;  %v6233_v40 = vsel %vm11096_vm11, %v6197_v51, 0.0  ;;  %v6268_v55 = vmul.f32 %v6232_v19, %v6232_v19  ;;  %v11101_v51 = vld [vmem:[#allocation18_spill] sm:$0xff] }
 0x26c   : > { %v6267_v49 = vmul.f32 %v6231_v56, %v6231_v56  ;;  %vm11098_vm5 = vnez %v11097_v20  ;;  %v6269_v21 = vmul.f32 %v6233_v40, %v6233_v40  ;;  %vm11102_vm13 = vnez %v11101_v51 }
 0x26d   : > { %v6296_v0 = vadd.f32 %v6295_v25, %v6261_v39  ;;  %v6234_v2 = vsel %vm11098_vm5, %v6198_v45, 0.0  ;;  %v11099_v39 = vld [vmem:[#allocation13_spill] sm:$0xff]  ;;  %v6236_v41 = vsel %vm11102_vm13, %v6200_v8, 0.0  ;;  %vm11104_vm4 = vnez %v11103_v46 }
 0x26e   : > { %vm11100_vm6 = vnez %v11099_v39  ;;  %v6270_v24 = vmul.f32 %v6234_v2, %v6234_v2  ;;  %v6272_v33 = vmul.f32 %v6236_v41, %v6236_v41  ;;  %v6274_v61 = vmul.f32 %v10378_v13, %v10378_v13 }
 0x26f   : > { %v6297_v4 = vadd.f32 %v6296_v0, %v6262_v7  ;;  %v6235_v25 = vsel %vm11100_vm6, %v6199_v37, 0.0  ;;  %v6273_v7 = vmul.f32 %v10374_v36, %v10374_v36  ;;  %v6239_v37 = vsel %vm11104_vm4, %v6203_v5, 0.0 }
 0x270   : > { %v6271_v59 = vmul.f32 %v6235_v25, %v6235_v25  ;;  %v6275_v11 = vmul.f32 %v6239_v37, %v6239_v37  ;;  %v6277_v36 = vmul.f32 %v10386_v18, %v10386_v18  ;;  %v6278_v9 = vmul.f32 %v10390_v17, %v10390_v17 }
 0x271   : > { %v6298_v22 = vadd.f32 %v6297_v4, %v6263_v14  ;;  %v6276_v14 = vmul.f32 %v10382_v15, %v10382_v15  ;;  %v6279_v5 = vmul.f32 %v10394_v52, %v10394_v52  ;;  %v6280_v13 = vmul.f32 %v10398_v23, %v10398_v23 }
 0x272   : > { %v6281_v15 = vmul.f32 %v10402_v12, %v10402_v12  ;;  %v6282_v18 = vmul.f32 %v10406_v26, %v10406_v26  ;;  %v6283_v17 = vmul.f32 %v10410_v42, %v10410_v42  ;;  %v6284_v52 = vmul.f32 %v10414_v53, %v10414_v53 }
 0x273   : > { %v6299_v10 = vadd.f32 %v6298_v22, %v6264_v43  ;;  %v6285_v23 = vmul.f32 %v10418_v29, %v10418_v29  ;;  %v6286_v12 = vmul.f32 %v10422_v3, %v10422_v3  ;;  %v6287_v26 = vmul.f32 %v10426_v50, %v10426_v50 }
 0x274   : > { %v6288_v42 = vmul.f32 %v10430_v27, %v10430_v27 }
 0x275   : > { %v6300_v62 = vadd.f32 %v6299_v10, %v6265_v47 }
 0x277   : > { %v6301_v1 = vadd.f32 %v6300_v62, %v6266_v30 }
 0x279   : > { %v6302_v28 = vadd.f32 %v6301_v1, %v6267_v49 }
 0x27b   : > { %v6303_v57 = vadd.f32 %v6302_v28, %v6268_v55 }
 0x27d   : > { %v6304_v48 = vadd.f32 %v6303_v57, %v6269_v21 }
 0x27f   : > { %v6305_v63 = vadd.f32 %v6304_v48, %v6270_v24 }
 0x281   : > { %v6306_v45 = vadd.f32 %v6305_v63, %v6271_v59 }
 0x283   : > { %v6307_v0 = vadd.f32 %v6306_v45, %v6272_v33 }
 0x285   : > { %v6308_v60 = vadd.f32 %v6307_v0, %v6273_v7 }
 0x287   : > { %v6309_v8 = vadd.f32 %v6308_v60, %v6274_v61 }
 0x289   : > { %v6310_v4 = vadd.f32 %v6309_v8, %v6275_v11 }
 0x28b   : > { %v6311_v54 = vadd.f32 %v6310_v4, %v6276_v14 }
 0x28d   : > { %v6312_v44 = vadd.f32 %v6311_v54, %v6277_v36 }
 0x28f   : > { %v6313_v31 = vadd.f32 %v6312_v44, %v6278_v9 }
 0x291   : > { %v6314_v35 = vadd.f32 %v6313_v31, %v6279_v5 }
 0x293   : > { %v6315_v43 = vadd.f32 %v6314_v35, %v6280_v13 }
 0x295   : > { %v6316_v22 = vadd.f32 %v6315_v43, %v6281_v15 }
 0x297   : > { %v6317_v34 = vadd.f32 %v6316_v22, %v6282_v18 }
 0x299   : > { %v6318_v38 = vadd.f32 %v6317_v34, %v6283_v17 }
 0x29b   : > { %v6319_v16 = vadd.f32 %v6318_v38, %v6284_v52 }
 0x29d   : > { %v6320_v47 = vadd.f32 %v6319_v16, %v6285_v23 }
 0x29f   : > { %v6321_v10 = vadd.f32 %v6320_v47, %v6286_v12 }
 0x2a1   : > { %v6322_v58 = vadd.f32 %v6321_v10, %v6287_v26 }
 0x2a3   : > { %v6323_v56 = vadd.f32 %v6322_v58, %v6288_v42 }
 0x2a5   : > { %v6324_v53 = vrot.slane %v6323_v56, 4 }
 0x2a7   : > { %v6325_v30 = vadd.f32 %v6324_v53, %v6323_v56 }
 0x2a9   : > { %v6326_v62 = vrot.slane %v6325_v30, 2 }
 0x2ab   : > { %v6327_v6 = vadd.f32 %v6326_v62, %v6325_v30 }
 0x2ad   : > { %v6328_v19 = vrot.slane %v6327_v6, 1 }
 0x2af   : > { %v6329_v29 = vadd.f32 %v6328_v19, %v6327_v6 }
 0x2b1   : > { %6331 = vst [vmem:[%s214_s24] sm:$0x1] %v6329_v29 }
 0x2b2 PF: > { %s15_s15 = sadd.s32 1, %s7748_s15  }
 0x2b3   : > { %p12_p4 = scmp.ge.s32.totalorder %s15_s15, 4  }
 0x2b5   :  { %14 = sbr.rel (!%p12_p4) target bundleno = 1 (0x1), region = 82 }

</bundles_post_ra>
